<compile_context>
chip_gen: v6e
topology: v6e:2x2x1
jax: 0.10.0
libtpu: 0.0.40
codegen_flags: <defaults>
</compile_context>

<pallas_src>
import math
from functools import partial

import jax
import jax.numpy as jnp
from jax.experimental import pallas as pl
from jax.experimental.pallas import tpu as pltpu

# ----------------------------------------------------------------------------
# Config (the PyTorch module is fully config-driven; these are the settings
# used for this synthetic instantiation).
# ----------------------------------------------------------------------------
CFG = dict(
    multires=2,                      # vertex positional embedding -> dim 3 + 3*2*2 = 15
    control_points=4,                # pose input raw dim = 12
    pose_embed_dim=8,                # combined_pose_dim = 16
    pose_mlp_width=32,
    mesh_deform_D=4, mesh_deform_W=64,
    uvw_deform_D=4, uvw_deform_W=64,
    pred_opacity=True, pred_color=True, color_W=32, color_D=2,
    max_d_scale=2.0,
    vertex_feature_dim=16,
    adaptive_strength=dict(
        enabled=True, hidden_dim=32, num_outputs=1, min_scale=0.5,
        outputs_to_scale=['d_xyz', 'd_rotation', 'd_scaling', 'd_uvw'],
        aggregation='mean'),
)

TILE = 256   # row tile (multiple of 8 sublanes; big enough to hide pipeline overhead)
LANE = 128   # lane-dense output / packed-parameter width


# ----------------------------------------------------------------------------
# Parameter initialization (deterministic, mirrors the torch init semantics).
# ----------------------------------------------------------------------------
def kaiming_uniform(key, fan_in, shape, a):
    gain = math.sqrt(2.0 / (1.0 + a * a))
    bound = gain * math.sqrt(3.0 / fan_in)
    return jax.random.uniform(key, shape, jnp.float32, minval=-bound, maxval=bound)


def build_plans(D, skips):
    """Symbolic per-layer input components ('x' | 'pose' | 'h') for the trunk."""
    plans = []
    comps = ['x']
    for i in range(D):
        plans.append(list(comps))
        comps = ['h']
        if i == 0:
            comps = ['h', 'pose']          # h = cat([h, pose]) after layer 0
        if i + 1 in skips:
            comps = ['x'] + comps          # h = cat([initial_input, h])
    return plans


def init_trunk(key, plans, dims, a=math.sqrt(5)):
    """Per layer: one weight per input component (pre-split) + one bias (1, W)."""
    params = []
    W = dims['h']
    keys = jax.random.split(key, len(plans))
    for comps, k in zip(plans, keys):
        fan_in = sum(dims[t] for t in comps)
        w_full = kaiming_uniform(k, fan_in, (fan_in, W), a)
        off = 0
        for t in comps:
            d = dims[t]
            params.append(w_full[off:off + d, :])
            off += d
        params.append(jnp.zeros((1, W), jnp.float32))
    return params


def init_deform_model(key, cfg):
    emb_dim = 3 + 3 * 2 * cfg['multires']
    combined_pose_dim = cfg['pose_embed_dim'] * 2
    params = {}
    keys = jax.random.split(key, 16)
    ki = iter(keys)

    # pose_embed: Linear(cp*3, pose_mlp_width) -> ReLU -> Linear(pose_mlp_width, pose_embed_dim)
    pid, pw = cfg['control_points'] * 3, cfg['pose_mlp_width']
    params['pose_w1'] = kaiming_uniform(next(ki), pid, (pid, pw), math.sqrt(5))
    params['pose_b1'] = jnp.zeros((1, pw), jnp.float32)
    params['pose_w2'] = kaiming_uniform(next(ki), pw, (pw, cfg['pose_embed_dim']), math.sqrt(5))
    params['pose_b2'] = jnp.zeros((1, cfg['pose_embed_dim']), jnp.float32)

    # StrengthPredictor
    asc = cfg['adaptive_strength']
    if asc['enabled']:
        vfd, hd, no = cfg['vertex_feature_dim'], asc['hidden_dim'], asc['num_outputs']
        params['str_w1'] = kaiming_uniform(next(ki), vfd, (vfd, hd), 0.0)
        params['str_b1'] = jnp.zeros((1, hd), jnp.float32)
        params['str_w2'] = kaiming_uniform(next(ki), hd, (hd, no), 0.0)
        params['str_b2'] = jnp.zeros((1, no), jnp.float32)

    # UvwDeformNetwork
    uvw_in = 3 + emb_dim * 3
    uvw_plans = build_plans(cfg['uvw_deform_D'], [cfg['uvw_deform_D'] // 2])
    params['uvw_trunk'] = init_trunk(
        next(ki), uvw_plans, {'x': uvw_in, 'pose': combined_pose_dim, 'h': cfg['uvw_deform_W']})
    params['uvw_head'] = [jax.random.normal(next(ki), (cfg['uvw_deform_W'], 3), jnp.float32) * 1e-5,
                          jnp.zeros((1, 3), jnp.float32)]

    # MeshDeformNetwork
    mesh_plans = build_plans(cfg['mesh_deform_D'], [cfg['mesh_deform_D'] // 2])
    params['mesh_trunk'] = init_trunk(
        next(ki), mesh_plans, {'x': emb_dim, 'pose': combined_pose_dim, 'h': cfg['mesh_deform_W']})
    W = cfg['mesh_deform_W']
    heads = []
    heads += [jax.random.normal(next(ki), (W, 3), jnp.float32) * 1e-5, jnp.zeros((1, 3), jnp.float32)]  # warp
    heads += [jax.random.normal(next(ki), (W, 3), jnp.float32) * 1e-8, jnp.zeros((1, 3), jnp.float32)]  # scaling
    heads += [jax.random.normal(next(ki), (W, 4), jnp.float32) * 1e-5, jnp.zeros((1, 4), jnp.float32)]  # rotation
    if cfg['pred_opacity']:
        heads += [jax.random.normal(next(ki), (W, 1), jnp.float32) * 1e-5, jnp.zeros((1, 1), jnp.float32)]
    if cfg['pred_color']:
        cW, cD, cin = cfg['color_W'], cfg['color_D'], W
        for _ in range(cD):
            heads += [kaiming_uniform(next(ki), cin, (cin, cW), math.sqrt(5)),
                      jnp.zeros((1, cW), jnp.float32)]
            cin = cW
        heads += [jax.random.normal(next(ki), (cin, 3), jnp.float32) * 1e-5,
                  jnp.zeros((1, 3), jnp.float32)]
    params['mesh_heads'] = heads
    return params


# ----------------------------------------------------------------------------
# Parameter packing: one (rows, 128) f32 resident buffer per network.
# Each parameter block starts at an 8-row (sublane-tile) boundary so in-kernel
# static slices are cheap.
# ----------------------------------------------------------------------------
def _round8(n):
    return ((n + 7) // 8) * 8


def pack_layout(shapes):
    """shapes -> (metas, total_rows); metas[i] = (row_offset, rows, cols)."""
    metas = []
    off = 0
    for (r, c) in shapes:
        metas.append((off, r, c))
        off += _round8(r)
    return metas, off


def pack_arrays(arrays, metas, total_rows, lane=LANE):
    buf = jnp.zeros((total_rows, lane), jnp.float32)
    for a, (off, r, c) in zip(arrays, metas):
        buf = buf.at[off:off + r, 0:c].set(a.astype(jnp.float32))
    return buf


def fold_pose_and_collect(trunk_params, plans_full, pose_emb):
    """Fold the pose contribution into the concat-layer bias and strip 'pose'
    from the plans.  Returns (flat array list in kernel-read order, plans)."""
    arrays = []
    plans = []
    it = iter(trunk_params)
    for comps in plans_full:
        ws = {}
        for tag in comps:
            ws[tag] = next(it)
        b = next(it)
        if 'pose' in comps:
            # exact: relu(h@Wh + pose@Wp + b) == relu(h@Wh + b') with b' = b + pose@Wp
            b = b + pose_emb.reshape(1, -1) @ ws['pose']
        comps_s = [t for t in comps if t != 'pose']
        plans.append(comps_s)
        arrays += [ws[t] for t in comps_s]
        arrays.append(b)
    return arrays, plans


def build_mesh_head_arrays(heads, cfg):
    """Pack warp/scaling/rotation/opacity into one (W,128) head matrix (fixed
    column offsets) and pad the color projection to 128 lanes at its offset."""
    W = cfg['mesh_deform_W']
    it = iter(heads)
    w_warp, b_warp = next(it), next(it)
    w_scal, b_scal = next(it), next(it)
    w_rot, b_rot = next(it), next(it)
    w_main = jnp.zeros((W, LANE), jnp.float32)
    b_main = jnp.zeros((1, LANE), jnp.float32)
    w_main = w_main.at[:, 0:3].set(w_warp);   b_main = b_main.at[:, 0:3].set(b_warp)
    w_main = w_main.at[:, 3:6].set(w_scal);   b_main = b_main.at[:, 3:6].set(b_scal)
    w_main = w_main.at[:, 6:10].set(w_rot);   b_main = b_main.at[:, 6:10].set(b_rot)
    offs = {'d_xyz': (0, 3), 'd_scaling': (3, 3), 'd_rotation': (6, 4)}
    col = 10
    if cfg['pred_opacity']:
        w_op, b_op = next(it), next(it)
        w_main = w_main.at[:, col:col + 1].set(w_op)
        b_main = b_main.at[:, col:col + 1].set(b_op)
        offs['d_opacity'] = (col, 1)
        col += 1
    arrays = [w_main, b_main]
    if cfg['pred_color']:
        for _ in range(cfg['color_D']):
            wc, bc = next(it), next(it)
            arrays += [wc, bc]
        wc3, bc3 = next(it), next(it)
        wc3p = jnp.zeros((wc3.shape[0], LANE), jnp.float32).at[:, col:col + 3].set(wc3)
        bc3p = jnp.zeros((1, LANE), jnp.float32).at[:, col:col + 3].set(bc3)
        arrays += [wc3p, bc3p]
        offs['d_color'] = (col, 3)
        col += 3
    return arrays, offs


# ----------------------------------------------------------------------------
# Pallas kernels
# ----------------------------------------------------------------------------
def make_net_kernel(plans, metas, head_fn):
    """Generic deform-MLP kernel.
    plans : per-layer list of component tags ('x' | 'h'); pose already folded
            into the bias.
    metas : static (row_offset, rows, cols) of each packed parameter, in the
            exact order the kernel reads them.
    head_fn(h, read) -> (TILE, LANE) lane-dense output slab."""
    def kernel(x_ref, p_ref, o_ref):
        counter = [0]

        def read():
            off, r, c = metas[counter[0]]
            counter[0] += 1
            return p_ref[off:off + r, 0:c]       # static slice of resident buffer

        x = x_ref[...]
        h = None
        for comps in plans:
            acc = None
            for tag in comps:
                v = x if tag == 'x' else h
                t = jnp.dot(v, read(), preferred_element_type=jnp.float32)
                acc = t if acc is None else acc + t
            h = jnp.maximum(acc + read(), 0.0)
        o_ref[...] = head_fn(h, read).astype(o_ref.dtype)
    return kernel


def uvw_head_fn(h, read):
    w, b = read(), read()                        # (W,128), (1,128): 3 live columns
    return jnp.dot(h, w, preferred_element_type=jnp.float32) + b


def make_mesh_head_fn(pred_color, color_D, max_d_scale, scal_lo, scal_hi):
    def head_fn(h, read):
        w, b = read(), read()                    # packed warp/scaling/rotation/opacity
        slab = jnp.dot(h, w, preferred_element_type=jnp.float32) + b
        if pred_color:
            c = h
            for _ in range(color_D):
                wc, bc = read(), read()
                c = jnp.maximum(jnp.dot(c, wc, preferred_element_type=jnp.float32) + bc, 0.0)
            wc3, bc3 = read(), read()            # projection padded to its column offset
            slab = slab + jnp.dot(c, wc3, preferred_element_type=jnp.float32) + bc3
        if max_d_scale > 0.0:
            log_max = math.log(max_d_scale + 1e-9)
            col = jax.lax.broadcasted_iota(jnp.int32, slab.shape, 1)
            scaled = jnp.tanh(slab) * log_max
            slab = jnp.where((col >= scal_lo) & (col < scal_hi), scaled, slab)
        return slab
    return head_fn


def run_network(kernel, x, packed, tile=TILE, lane=LANE):
    """Tile rows over the grid; the packed parameter buffer is a single
    resident full-block input.  One lane-dense (tile, 128) output per step."""
    N, in_dim = x.shape
    Np = ((N + tile - 1) // tile) * tile
    x_p = jnp.pad(x.astype(jnp.float32), ((0, Np - N), (0, 0)))
    out = pl.pallas_call(
        kernel,
        out_shape=jax.ShapeDtypeStruct((Np, lane), jnp.float32),
        grid_spec=pltpu.PrefetchScalarGridSpec(
            num_scalar_prefetch=0,
            grid=(Np // tile,),
            in_specs=[pl.BlockSpec((tile, in_dim), lambda i: (i, 0)),
                      pl.BlockSpec(packed.shape, lambda i: (0, 0))],
            out_specs=pl.BlockSpec((tile, lane), lambda i: (i, 0))),
        compiler_params=pltpu.CompilerParams(dimension_semantics=("parallel",)),
    )(x_p, packed)
    return out[:N]


# ----------------------------------------------------------------------------
# DeformModel forward
# ----------------------------------------------------------------------------
def deform_model_forward(params, cfg, refined_vertices, refined_vertex_features,
                         refined_faces, refined_faceid, refined_uvw,
                         coarse_original_pose, coarse_deformed_pose):
    N_gauss = refined_faceid.shape[0]
    N_verts = refined_vertices.shape[0]
    assert refined_uvw.shape == (N_gauss, 3)
    assert coarse_original_pose.shape[0] == cfg['control_points']
    assert coarse_deformed_pose.shape[0] == cfg['control_points']

    # --- vertex positional embedding (plain-JAX glue: tiny elementwise) ---
    freqs = 2.0 ** jnp.arange(cfg['multires'], dtype=jnp.float32)
    x = refined_vertices.astype(jnp.float32)
    pieces = [x]
    for i in range(cfg['multires']):
        pieces.append(jnp.sin(x * freqs[i]))
        pieces.append(jnp.cos(x * freqs[i]))
    vert_emb = jnp.concatenate(pieces, axis=-1)            # (N_verts, emb_dim)

    # --- pose embedding MLP (single-row matmuls; plain-JAX glue) ---
    def pose_embed(flat):
        h = jnp.maximum(flat @ params['pose_w1'] + params['pose_b1'], 0.0)
        return (h @ params['pose_w2'] + params['pose_b2'])[0]

    orig_emb = pose_embed(coarse_original_pose.reshape(1, -1).astype(jnp.float32))
    def_emb = pose_embed(coarse_deformed_pose.reshape(1, -1).astype(jnp.float32))
    combined_pose_emb = jnp.concatenate([orig_emb, def_emb])  # (combined_pose_dim,)

    # --- adaptive strength predictor (single-row; plain-JAX glue) ---
    asc = cfg['adaptive_strength']
    strength_scale = 1.0
    if asc['enabled']:
        if asc['aggregation'] == 'max':
            agg = refined_vertex_features.max(axis=0)
        else:
            agg = refined_vertex_features.mean(axis=0)
        h = jnp.maximum(agg[None, :].astype(jnp.float32) @ params['str_w1'] + params['str_b1'], 0.0)
        raw = (h @ params['str_w2'] + params['str_b2'])[0]   # (num_outputs,)
        scale01 = jax.nn.sigmoid(raw)
        if asc['num_outputs'] != 1:
            scale01 = scale01.mean()
        strength_scale = asc['min_scale'] + (1.0 - asc['min_scale']) * scale01

    # --- gather per-gaussian face vertex embeddings (plain-JAX glue) ---
    # TODO(synk): fuse this gather into the UVW kernel (scalar-prefetch faceid +
    # pl.Element / manual DMA) to avoid the (N_gauss, 3*emb_dim) HBM round trip.
    face_emb = vert_emb[refined_faces]                       # (F, 3, emb_dim)
    face_emb_flat = face_emb.reshape(refined_faces.shape[0], -1)
    gauss_vert_emb_flat = face_emb_flat[refined_faceid]      # (N_gauss, 3*emb_dim)

    # --- UvwDeformNetwork (Pallas kernel) ---
    uvw_plans_full = build_plans(cfg['uvw_deform_D'], [cfg['uvw_deform_D'] // 2])
    uvw_trunk_arrays, uvw_plans = fold_pose_and_collect(
        params['uvw_trunk'], uvw_plans_full, combined_pose_emb)
    uvw_w, uvw_b = params['uvw_head']
    uvw_head_w = jnp.zeros((cfg['uvw_deform_W'], LANE), jnp.float32).at[:, 0:3].set(uvw_w)
    uvw_head_b = jnp.zeros((1, LANE), jnp.float32).at[:, 0:3].set(uvw_b)
    uvw_arrays = uvw_trunk_arrays + [uvw_head_w, uvw_head_b]
    uvw_metas, uvw_rows = pack_layout([a.shape for a in uvw_arrays])
    uvw_packed = pack_arrays(uvw_arrays, uvw_metas, uvw_rows)

    uvw_x = jnp.concatenate([refined_uvw.astype(jnp.float32), gauss_vert_emb_flat], axis=-1)
    uvw_kernel = make_net_kernel(uvw_plans, uvw_metas, uvw_head_fn)
    d_uvw = run_network(uvw_kernel, uvw_x, uvw_packed)[:, 0:3]

    # --- MeshDeformNetwork (Pallas kernel) ---
    mesh_plans_full = build_plans(cfg['mesh_deform_D'], [cfg['mesh_deform_D'] // 2])
    mesh_trunk_arrays, mesh_plans = fold_pose_and_collect(
        params['mesh_trunk'], mesh_plans_full, combined_pose_emb)
    mesh_head_arrays, offs = build_mesh_head_arrays(params['mesh_heads'], cfg)
    mesh_arrays = mesh_trunk_arrays + mesh_head_arrays
    mesh_metas, mesh_rows = pack_layout([a.shape for a in mesh_arrays])
    mesh_packed = pack_arrays(mesh_arrays, mesh_metas, mesh_rows)

    mesh_head = make_mesh_head_fn(cfg['pred_color'], cfg['color_D'], cfg['max_d_scale'],
                                  scal_lo=3, scal_hi=6)
    mesh_kernel = make_net_kernel(mesh_plans, mesh_metas, mesh_head)
    mesh_slab = run_network(mesh_kernel, vert_emb, mesh_packed)   # (N_verts, 128) fused heads

    def take(name):
        if name not in offs:
            return None
        lo, n = offs[name]
        return mesh_slab[:, lo:lo + n]

    return_dict = {'d_uvw': d_uvw,
                   'd_xyz': take('d_xyz'),
                   'd_rotation': take('d_rotation'),
                   'd_scaling': take('d_scaling'),
                   'd_opacity': take('d_opacity'),
                   'd_color': take('d_color')}

    if asc['enabled']:
        for key in asc['outputs_to_scale']:
            if key in return_dict and return_dict[key] is not None:
                return_dict[key] = return_dict[key] * strength_scale

    return return_dict


# ----------------------------------------------------------------------------
# Main
# ----------------------------------------------------------------------------
if __name__ == "__main__":
    cfg = CFG
    key = jax.random.PRNGKey(0)
    kparam, kdata = jax.random.split(key)
    params = init_deform_model(kparam, cfg)

    N_verts, N_faces, N_gauss = 96, 64, 160
    ks = jax.random.split(kdata, 7)
    refined_vertices = jax.random.normal(ks[0], (N_verts, 3), jnp.float32)
    refined_vertex_features = jax.random.normal(ks[1], (N_verts, cfg['vertex_feature_dim']), jnp.float32)
    refined_faces = jax.random.randint(ks[2], (N_faces, 3), 0, N_verts)
    refined_faceid = jax.random.randint(ks[3], (N_gauss,), 0, N_faces)
    refined_uvw = jax.random.uniform(ks[4], (N_gauss, 3), jnp.float32)
    coarse_original_pose = jax.random.normal(ks[5], (cfg['control_points'], 3), jnp.float32)
    coarse_deformed_pose = jax.random.normal(ks[6], (cfg['control_points'], 3), jnp.float32)

    fwd = jax.jit(lambda p, *ins: deform_model_forward(p, cfg, *ins))
    out = fwd(params, refined_vertices, refined_vertex_features,
              refined_faces, refined_faceid, refined_uvw,
              coarse_original_pose, coarse_deformed_pose)
    for v in out.values():
        if v is not None:
            jax.block_until_ready(v)

    assert out['d_uvw'].shape == (N_gauss, 3)
    assert out['d_xyz'].shape == (N_verts, 3)
    assert out['d_rotation'].shape == (N_verts, 4)
    assert out['d_scaling'].shape == (N_verts, 3)
    assert out['d_opacity'].shape == (N_verts, 1)
    assert out['d_color'].shape == (N_verts, 3)
    print("KERNEL_OK")
</pallas_src>

<mosaic_0001>
module attributes {stable_mosaic.version = 11 : i64} {
  func.func @kernel(%arg0: i32, %arg1: memref<256x15xf32, #tpu.memory_space<vmem>>, %arg2: memref<480x128xf32, #tpu.memory_space<vmem>>, %arg3: memref<256x128xf32, #tpu.memory_space<vmem>>) attributes {dimension_semantics = [#tpu.dimension_semantics<parallel>], iteration_bounds = array<i64: 1>, scalar_prefetch = 0 : i64, scratch_operands = 0 : i64, tpu.core_type = #tpu.core_type<tc>, window_params = [{transform_indices = @transform_0, window_bounds = array<i64: 256, 15>}, {pipeline_mode = #tpu.pipeline_mode<synchronous>, transform_indices = @transform_1, window_bounds = array<i64: 480, 128>}, {transform_indices = @transform_2, window_bounds = array<i64: 256, 128>}]} {
    %c0 = arith.constant 0 : index
    %c0_0 = arith.constant 0 : index
    %0 = vector.load %arg1[%c0, %c0_0] : memref<256x15xf32, #tpu.memory_space<vmem>>, vector<256x15xf32>
    %c0_1 = arith.constant 0 : index
    %c0_2 = arith.constant 0 : index
    %1 = vector.load %arg2[%c0_1, %c0_2] : memref<480x128xf32, #tpu.memory_space<vmem>>, vector<15x64xf32>
    %cst = arith.constant dense<0.000000e+00> : vector<256x64xf32>
    %2 = tpu.matmul %0, %1, %cst {dimension_numbers = #tpu.dot_dimension_numbers<[1], [0], [0], [1], [0, 0, 1, 1], [], []>} : vector<256x15xf32>, vector<15x64xf32>, vector<256x64xf32> -> vector<256x64xf32>
    %c16 = arith.constant 16 : index
    %c0_3 = arith.constant 0 : index
    %3 = vector.load %arg2[%c16, %c0_3] : memref<480x128xf32, #tpu.memory_space<vmem>>, vector<1x64xf32>
    %4 = vector.broadcast %3 : vector<1x64xf32> to vector<256x64xf32>
    %5 = arith.addf %2, %4 : vector<256x64xf32>
    %cst_4 = arith.constant 0.000000e+00 : f32
    %6 = vector.broadcast %cst_4 : f32 to vector<256x64xf32>
    %7 = arith.maximumf %5, %6 : vector<256x64xf32>
    %c24 = arith.constant 24 : index
    %c0_5 = arith.constant 0 : index
    %8 = vector.load %arg2[%c24, %c0_5] : memref<480x128xf32, #tpu.memory_space<vmem>>, vector<64x64xf32>
    %cst_6 = arith.constant dense<0.000000e+00> : vector<256x64xf32>
    %9 = tpu.matmul %7, %8, %cst_6 {dimension_numbers = #tpu.dot_dimension_numbers<[1], [0], [0], [1], [0, 0, 1, 1], [], []>} : vector<256x64xf32>, vector<64x64xf32>, vector<256x64xf32> -> vector<256x64xf32>
    %c88 = arith.constant 88 : index
    %c0_7 = arith.constant 0 : index
    %10 = vector.load %arg2[%c88, %c0_7] : memref<480x128xf32, #tpu.memory_space<vmem>>, vector<1x64xf32>
    %11 = vector.broadcast %10 : vector<1x64xf32> to vector<256x64xf32>
    %12 = arith.addf %9, %11 : vector<256x64xf32>
    %cst_8 = arith.constant 0.000000e+00 : f32
    %13 = vector.broadcast %cst_8 : f32 to vector<256x64xf32>
    %14 = arith.maximumf %12, %13 : vector<256x64xf32>
    %c96 = arith.constant 96 : index
    %c0_9 = arith.constant 0 : index
    %15 = vector.load %arg2[%c96, %c0_9] : memref<480x128xf32, #tpu.memory_space<vmem>>, vector<15x64xf32>
    %cst_10 = arith.constant dense<0.000000e+00> : vector<256x64xf32>
    %16 = tpu.matmul %0, %15, %cst_10 {dimension_numbers = #tpu.dot_dimension_numbers<[1], [0], [0], [1], [0, 0, 1, 1], [], []>} : vector<256x15xf32>, vector<15x64xf32>, vector<256x64xf32> -> vector<256x64xf32>
    %c112 = arith.constant 112 : index
    %c0_11 = arith.constant 0 : index
    %17 = vector.load %arg2[%c112, %c0_11] : memref<480x128xf32, #tpu.memory_space<vmem>>, vector<64x64xf32>
    %cst_12 = arith.constant dense<0.000000e+00> : vector<256x64xf32>
    %18 = tpu.matmul %14, %17, %cst_12 {dimension_numbers = #tpu.dot_dimension_numbers<[1], [0], [0], [1], [0, 0, 1, 1], [], []>} : vector<256x64xf32>, vector<64x64xf32>, vector<256x64xf32> -> vector<256x64xf32>
    %19 = arith.addf %16, %18 : vector<256x64xf32>
    %c176 = arith.constant 176 : index
    %c0_13 = arith.constant 0 : index
    %20 = vector.load %arg2[%c176, %c0_13] : memref<480x128xf32, #tpu.memory_space<vmem>>, vector<1x64xf32>
    %21 = vector.broadcast %20 : vector<1x64xf32> to vector<256x64xf32>
    %22 = arith.addf %19, %21 : vector<256x64xf32>
    %cst_14 = arith.constant 0.000000e+00 : f32
    %23 = vector.broadcast %cst_14 : f32 to vector<256x64xf32>
    %24 = arith.maximumf %22, %23 : vector<256x64xf32>
    %c184 = arith.constant 184 : index
    %c0_15 = arith.constant 0 : index
    %25 = vector.load %arg2[%c184, %c0_15] : memref<480x128xf32, #tpu.memory_space<vmem>>, vector<64x64xf32>
    %cst_16 = arith.constant dense<0.000000e+00> : vector<256x64xf32>
    %26 = tpu.matmul %24, %25, %cst_16 {dimension_numbers = #tpu.dot_dimension_numbers<[1], [0], [0], [1], [0, 0, 1, 1], [], []>} : vector<256x64xf32>, vector<64x64xf32>, vector<256x64xf32> -> vector<256x64xf32>
    %c248 = arith.constant 248 : index
    %c0_17 = arith.constant 0 : index
    %27 = vector.load %arg2[%c248, %c0_17] : memref<480x128xf32, #tpu.memory_space<vmem>>, vector<1x64xf32>
    %28 = vector.broadcast %27 : vector<1x64xf32> to vector<256x64xf32>
    %29 = arith.addf %26, %28 : vector<256x64xf32>
    %cst_18 = arith.constant 0.000000e+00 : f32
    %30 = vector.broadcast %cst_18 : f32 to vector<256x64xf32>
    %31 = arith.maximumf %29, %30 : vector<256x64xf32>
    %c256 = arith.constant 256 : index
    %c0_19 = arith.constant 0 : index
    %32 = vector.load %arg2[%c256, %c0_19] : memref<480x128xf32, #tpu.memory_space<vmem>>, vector<64x128xf32>
    %c320 = arith.constant 320 : index
    %c0_20 = arith.constant 0 : index
    %33 = vector.load %arg2[%c320, %c0_20] : memref<480x128xf32, #tpu.memory_space<vmem>>, vector<1x128xf32>
    %cst_21 = arith.constant dense<0.000000e+00> : vector<256x128xf32>
    %34 = tpu.matmul %31, %32, %cst_21 {dimension_numbers = #tpu.dot_dimension_numbers<[1], [0], [0], [1], [0, 0, 1, 1], [], []>} : vector<256x64xf32>, vector<64x128xf32>, vector<256x128xf32> -> vector<256x128xf32>
    %35 = vector.broadcast %33 : vector<1x128xf32> to vector<256x128xf32>
    %36 = arith.addf %34, %35 : vector<256x128xf32>
    %c328 = arith.constant 328 : index
    %c0_22 = arith.constant 0 : index
    %37 = vector.load %arg2[%c328, %c0_22] : memref<480x128xf32, #tpu.memory_space<vmem>>, vector<64x32xf32>
    %c392 = arith.constant 392 : index
    %c0_23 = arith.constant 0 : index
    %38 = vector.load %arg2[%c392, %c0_23] : memref<480x128xf32, #tpu.memory_space<vmem>>, vector<1x32xf32>
    %cst_24 = arith.constant dense<0.000000e+00> : vector<256x32xf32>
    %39 = tpu.matmul %31, %37, %cst_24 {dimension_numbers = #tpu.dot_dimension_numbers<[1], [0], [0], [1], [0, 0, 1, 1], [], []>} : vector<256x64xf32>, vector<64x32xf32>, vector<256x32xf32> -> vector<256x32xf32>
    %40 = vector.broadcast %38 : vector<1x32xf32> to vector<256x32xf32>
    %41 = arith.addf %39, %40 : vector<256x32xf32>
    %cst_25 = arith.constant 0.000000e+00 : f32
    %42 = vector.broadcast %cst_25 : f32 to vector<256x32xf32>
    %43 = arith.maximumf %41, %42 : vector<256x32xf32>
    %c400 = arith.constant 400 : index
    %c0_26 = arith.constant 0 : index
    %44 = vector.load %arg2[%c400, %c0_26] : memref<480x128xf32, #tpu.memory_space<vmem>>, vector<32x32xf32>
    %c432 = arith.constant 432 : index
    %c0_27 = arith.constant 0 : index
    %45 = vector.load %arg2[%c432, %c0_27] : memref<480x128xf32, #tpu.memory_space<vmem>>, vector<1x32xf32>
    %cst_28 = arith.constant dense<0.000000e+00> : vector<256x32xf32>
    %46 = tpu.matmul %43, %44, %cst_28 {dimension_numbers = #tpu.dot_dimension_numbers<[1], [0], [0], [1], [0, 0, 1, 1], [], []>} : vector<256x32xf32>, vector<32x32xf32>, vector<256x32xf32> -> vector<256x32xf32>
    %47 = vector.broadcast %45 : vector<1x32xf32> to vector<256x32xf32>
    %48 = arith.addf %46, %47 : vector<256x32xf32>
    %cst_29 = arith.constant 0.000000e+00 : f32
    %49 = vector.broadcast %cst_29 : f32 to vector<256x32xf32>
    %50 = arith.maximumf %48, %49 : vector<256x32xf32>
    %c440 = arith.constant 440 : index
    %c0_30 = arith.constant 0 : index
    %51 = vector.load %arg2[%c440, %c0_30] : memref<480x128xf32, #tpu.memory_space<vmem>>, vector<32x128xf32>
    %c472 = arith.constant 472 : index
    %c0_31 = arith.constant 0 : index
    %52 = vector.load %arg2[%c472, %c0_31] : memref<480x128xf32, #tpu.memory_space<vmem>>, vector<1x128xf32>
    %cst_32 = arith.constant dense<0.000000e+00> : vector<256x128xf32>
    %53 = tpu.matmul %50, %51, %cst_32 {dimension_numbers = #tpu.dot_dimension_numbers<[1], [0], [0], [1], [0, 0, 1, 1], [], []>} : vector<256x32xf32>, vector<32x128xf32>, vector<256x128xf32> -> vector<256x128xf32>
    %54 = arith.addf %36, %53 : vector<256x128xf32>
    %55 = vector.broadcast %52 : vector<1x128xf32> to vector<256x128xf32>
    %56 = arith.addf %54, %55 : vector<256x128xf32>
    %57 = tpu.iota {dimensions = array<i32: 1>} : vector<256x128xi32>
    %58 = math.tanh %56 : vector<256x128xf32>
    %cst_33 = arith.constant 0.693147182 : f32
    %59 = vector.broadcast %cst_33 : f32 to vector<256x128xf32>
    %60 = arith.mulf %58, %59 : vector<256x128xf32>
    %c3_i32 = arith.constant 3 : i32
    %61 = vector.broadcast %c3_i32 : i32 to vector<256x128xi32>
    %62 = arith.cmpi sge, %57, %61 : vector<256x128xi32>
    %c6_i32 = arith.constant 6 : i32
    %63 = vector.broadcast %c6_i32 : i32 to vector<256x128xi32>
    %64 = arith.cmpi slt, %57, %63 : vector<256x128xi32>
    %65 = arith.andi %62, %64 : vector<256x128xi1>
    %66 = arith.select %65, %60, %56 : vector<256x128xi1>, vector<256x128xf32>
    %c0_34 = arith.constant 0 : index
    %c0_35 = arith.constant 0 : index
    %67 = vector.load %arg3[%c0_34, %c0_35] : memref<256x128xf32, #tpu.memory_space<vmem>>, vector<256x128xf32>
    tpu.vector_store %arg3[%c0_34, %c0_35], %66 {strides = array<i32>} : memref<256x128xf32, #tpu.memory_space<vmem>>, vector<256x128xf32>,
    return
  }
  func.func @transform_0(%arg0: i32) -> (i32, i32) {
    %c0_i32 = arith.constant 0 : i32
    %c0_i32_0 = arith.constant 0 : i32
    return %arg0, %c0_i32 : i32, i32
  }
  func.func @transform_1(%arg0: i32) -> (i32, i32) {
    %c0_i32 = arith.constant 0 : i32
    %c0_i32_0 = arith.constant 0 : i32
    %c0_i32_1 = arith.constant 0 : i32
    return %c0_i32, %c0_i32_0 : i32, i32
  }
  func.func @transform_2(%arg0: i32) -> (i32, i32) {
    %c0_i32 = arith.constant 0 : i32
    %c0_i32_0 = arith.constant 0 : i32
    return %arg0, %c0_i32 : i32, i32
  }
}

module attributes {stable_mosaic.version = 11 : i64} {
  func.func @kernel(%arg0: i32, %arg1: memref<256x48xf32, #tpu.memory_space<vmem>>, %arg2: memref<392x128xf32, #tpu.memory_space<vmem>>, %arg3: memref<256x128xf32, #tpu.memory_space<vmem>>) attributes {dimension_semantics = [#tpu.dimension_semantics<parallel>], iteration_bounds = array<i64: 1>, scalar_prefetch = 0 : i64, scratch_operands = 0 : i64, tpu.core_type = #tpu.core_type<tc>, window_params = [{transform_indices = @transform_0, window_bounds = array<i64: 256, 48>}, {pipeline_mode = #tpu.pipeline_mode<synchronous>, transform_indices = @transform_1, window_bounds = array<i64: 392, 128>}, {transform_indices = @transform_2, window_bounds = array<i64: 256, 128>}]} {
    %c0 = arith.constant 0 : index
    %c0_0 = arith.constant 0 : index
    %0 = vector.load %arg1[%c0, %c0_0] : memref<256x48xf32, #tpu.memory_space<vmem>>, vector<256x48xf32>
    %c0_1 = arith.constant 0 : index
    %c0_2 = arith.constant 0 : index
    %1 = vector.load %arg2[%c0_1, %c0_2] : memref<392x128xf32, #tpu.memory_space<vmem>>, vector<48x64xf32>
    %cst = arith.constant dense<0.000000e+00> : vector<256x64xf32>
    %2 = tpu.matmul %0, %1, %cst {dimension_numbers = #tpu.dot_dimension_numbers<[1], [0], [0], [1], [0, 0, 1, 1], [], []>} : vector<256x48xf32>, vector<48x64xf32>, vector<256x64xf32> -> vector<256x64xf32>
    %c48 = arith.constant 48 : index
    %c0_3 = arith.constant 0 : index
    %3 = vector.load %arg2[%c48, %c0_3] : memref<392x128xf32, #tpu.memory_space<vmem>>, vector<1x64xf32>
    %4 = vector.broadcast %3 : vector<1x64xf32> to vector<256x64xf32>
    %5 = arith.addf %2, %4 : vector<256x64xf32>
    %cst_4 = arith.constant 0.000000e+00 : f32
    %6 = vector.broadcast %cst_4 : f32 to vector<256x64xf32>
    %7 = arith.maximumf %5, %6 : vector<256x64xf32>
    %c56 = arith.constant 56 : index
    %c0_5 = arith.constant 0 : index
    %8 = vector.load %arg2[%c56, %c0_5] : memref<392x128xf32, #tpu.memory_space<vmem>>, vector<64x64xf32>
    %cst_6 = arith.constant dense<0.000000e+00> : vector<256x64xf32>
    %9 = tpu.matmul %7, %8, %cst_6 {dimension_numbers = #tpu.dot_dimension_numbers<[1], [0], [0], [1], [0, 0, 1, 1], [], []>} : vector<256x64xf32>, vector<64x64xf32>, vector<256x64xf32> -> vector<256x64xf32>
    %c120 = arith.constant 120 : index
    %c0_7 = arith.constant 0 : index
    %10 = vector.load %arg2[%c120, %c0_7] : memref<392x128xf32, #tpu.memory_space<vmem>>, vector<1x64xf32>
    %11 = vector.broadcast %10 : vector<1x64xf32> to vector<256x64xf32>
    %12 = arith.addf %9, %11 : vector<256x64xf32>
    %cst_8 = arith.constant 0.000000e+00 : f32
    %13 = vector.broadcast %cst_8 : f32 to vector<256x64xf32>
    %14 = arith.maximumf %12, %13 : vector<256x64xf32>
    %c128 = arith.constant 128 : index
    %c0_9 = arith.constant 0 : index
    %15 = vector.load %arg2[%c128, %c0_9] : memref<392x128xf32, #tpu.memory_space<vmem>>, vector<48x64xf32>
    %cst_10 = arith.constant dense<0.000000e+00> : vector<256x64xf32>
    %16 = tpu.matmul %0, %15, %cst_10 {dimension_numbers = #tpu.dot_dimension_numbers<[1], [0], [0], [1], [0, 0, 1, 1], [], []>} : vector<256x48xf32>, vector<48x64xf32>, vector<256x64xf32> -> vector<256x64xf32>
    %c176 = arith.constant 176 : index
    %c0_11 = arith.constant 0 : index
    %17 = vector.load %arg2[%c176, %c0_11] : memref<392x128xf32, #tpu.memory_space<vmem>>, vector<64x64xf32>
    %cst_12 = arith.constant dense<0.000000e+00> : vector<256x64xf32>
    %18 = tpu.matmul %14, %17, %cst_12 {dimension_numbers = #tpu.dot_dimension_numbers<[1], [0], [0], [1], [0, 0, 1, 1], [], []>} : vector<256x64xf32>, vector<64x64xf32>, vector<256x64xf32> -> vector<256x64xf32>
    %19 = arith.addf %16, %18 : vector<256x64xf32>
    %c240 = arith.constant 240 : index
    %c0_13 = arith.constant 0 : index
    %20 = vector.load %arg2[%c240, %c0_13] : memref<392x128xf32, #tpu.memory_space<vmem>>, vector<1x64xf32>
    %21 = vector.broadcast %20 : vector<1x64xf32> to vector<256x64xf32>
    %22 = arith.addf %19, %21 : vector<256x64xf32>
    %cst_14 = arith.constant 0.000000e+00 : f32
    %23 = vector.broadcast %cst_14 : f32 to vector<256x64xf32>
    %24 = arith.maximumf %22, %23 : vector<256x64xf32>
    %c248 = arith.constant 248 : index
    %c0_15 = arith.constant 0 : index
    %25 = vector.load %arg2[%c248, %c0_15] : memref<392x128xf32, #tpu.memory_space<vmem>>, vector<64x64xf32>
    %cst_16 = arith.constant dense<0.000000e+00> : vector<256x64xf32>
    %26 = tpu.matmul %24, %25, %cst_16 {dimension_numbers = #tpu.dot_dimension_numbers<[1], [0], [0], [1], [0, 0, 1, 1], [], []>} : vector<256x64xf32>, vector<64x64xf32>, vector<256x64xf32> -> vector<256x64xf32>
    %c312 = arith.constant 312 : index
    %c0_17 = arith.constant 0 : index
    %27 = vector.load %arg2[%c312, %c0_17] : memref<392x128xf32, #tpu.memory_space<vmem>>, vector<1x64xf32>
    %28 = vector.broadcast %27 : vector<1x64xf32> to vector<256x64xf32>
    %29 = arith.addf %26, %28 : vector<256x64xf32>
    %cst_18 = arith.constant 0.000000e+00 : f32
    %30 = vector.broadcast %cst_18 : f32 to vector<256x64xf32>
    %31 = arith.maximumf %29, %30 : vector<256x64xf32>
    %c320 = arith.constant 320 : index
    %c0_19 = arith.constant 0 : index
    %32 = vector.load %arg2[%c320, %c0_19] : memref<392x128xf32, #tpu.memory_space<vmem>>, vector<64x128xf32>
    %c384 = arith.constant 384 : index
    %c0_20 = arith.constant 0 : index
    %33 = vector.load %arg2[%c384, %c0_20] : memref<392x128xf32, #tpu.memory_space<vmem>>, vector<1x128xf32>
    %cst_21 = arith.constant dense<0.000000e+00> : vector<256x128xf32>
    %34 = tpu.matmul %31, %32, %cst_21 {dimension_numbers = #tpu.dot_dimension_numbers<[1], [0], [0], [1], [0, 0, 1, 1], [], []>} : vector<256x64xf32>, vector<64x128xf32>, vector<256x128xf32> -> vector<256x128xf32>
    %35 = vector.broadcast %33 : vector<1x128xf32> to vector<256x128xf32>
    %36 = arith.addf %34, %35 : vector<256x128xf32>
    %c0_22 = arith.constant 0 : index
    %c0_23 = arith.constant 0 : index
    %37 = vector.load %arg3[%c0_22, %c0_23] : memref<256x128xf32, #tpu.memory_space<vmem>>, vector<256x128xf32>
    tpu.vector_store %arg3[%c0_22, %c0_23], %36 {strides = array<i32>} : memref<256x128xf32, #tpu.memory_space<vmem>>, vector<256x128xf32>,
    return
  }
  func.func @transform_0(%arg0: i32) -> (i32, i32) {
    %c0_i32 = arith.constant 0 : i32
    %c0_i32_0 = arith.constant 0 : i32
    return %arg0, %c0_i32 : i32, i32
  }
  func.func @transform_1(%arg0: i32) -> (i32, i32) {
    %c0_i32 = arith.constant 0 : i32
    %c0_i32_0 = arith.constant 0 : i32
    %c0_i32_1 = arith.constant 0 : i32
    return %c0_i32, %c0_i32_0 : i32, i32
  }
  func.func @transform_2(%arg0: i32) -> (i32, i32) {
    %c0_i32 = arith.constant 0 : i32
    %c0_i32_0 = arith.constant 0 : i32
    return %arg0, %c0_i32 : i32, i32
  }
}

</mosaic_0001>

<bundles_post_ra>
// kernel: _lambda_.3
= control target key start
LH: loop header
LB: loop body
LE: loop exit
PB: predicated region body
PF: predicated region fallthrough
CT: control target
= control target key end

     0   :  { %vm147_vm0 = vcmask 1046528   ;;  %vm50_vm1 = vcmask 121856   ;;  %vm421_vm2 = vcmask 523264   ;;  %vm2382_vm3 = vcmask 261120   ;;  %s5895_s1 = inlined_call_operand.vmem [shape: f32[480,128], index: 1, kind: input, shape index: {}]   ;;  %s5896_s0 = inlined_call_operand.vmem [shape: f32[256,15], index: 0, kind: input, shape index: {}]   ;;  %s5897_s2 = inlined_call_operand.vmem [shape: f32[256,128], index: 2, kind: output, shape index: {}]  }
   0x1   :  { %v44_v0 = vld [vmem:[%s5895_s1 + $0x8] sm:$0x7f]  ;;  %v43_v1 = vld [vmem:[%s5895_s1] sm:$0xff]  ;;  %v4548_v4 = vld [vmem:[%s5896_s0 + $0x10] sm:$0xff] }
   0x2   :  { %v4533_v2 = vld [vmem:[%s5896_s0] sm:$0xff]  ;;  %3905 = vmatprep.subr.msk.mxu0 %vm147_vm0, %v44_v0  ;;  %v4542_v3 = vld [vmem:[%s5896_s0 + $0x8] sm:$0xff]  ;;  %4441 = vmatprep.subr.msk.mxu1 %vm147_vm0, %v44_v0  ;;  %v4556_v5 = vld [vmem:[%s5896_s0 + $0x18] sm:$0xff] }
   0x3   :  { %3909 = vmatprep.mubr.msk.f32.mxu0 %vm50_vm1, %v4533_v2  ;;  %3906 = vmatpush3.msk.msra.mxu0 %vm147_vm0, %v44_v0  ;;  %v4563_v6 = vld [vmem:[%s5896_s0 + $0x80] sm:$0xff]  ;;  %v4568_v7 = vld [vmem:[%s5896_s0 + $0x88] sm:$0xff]  ;;  %v4573_v8 = vld [vmem:[%s5896_s0 + $0x90] sm:$0xff] }
   0x4   :  { %3907 = vmatprep.subr.mxu0 %v43_v1  ;;  %4443 = vmatpush3.msk.msra.mxu1 %vm147_vm0, %v44_v0  ;;  %v4578_v9 = vld [vmem:[%s5896_s0 + $0x20] sm:$0xff]  ;;  %v4591_v10 = vld [vmem:[%s5896_s0 + $0x98] sm:$0xff]  ;;  %v4598_v11 = vld [vmem:[%s5896_s0 + $0x28] sm:$0xff] }
   0x5   :  { %3908 = vmatpush3.msra.mxu0 %v43_v1  ;;  %4442 = vmatprep.subr.mxu1 %v43_v1  ;;  %v4603_v12 = vld [vmem:[%s5896_s0 + $0xa0] sm:$0xff]  ;;  %v4608_v13 = vld [vmem:[%s5896_s0 + $0x30] sm:$0xff]  ;;  %v414_v15 = vld [vmem:[%s5895_s1 + $0x48] sm:$0xff] }
   0x6   :  { %3910 = vmatmul.mubr.msk.f32.vlgmr.msra.gmra.mxu0 %vm50_vm1, %v4542_v3  ;;  %4444 = vmatpush3.msra.mxu1 %v43_v1  ;;  %v415_v14 = vld [vmem:[%s5895_s1 + $0x50] sm:$0xff]  ;;  %v4625_v16 = vld [vmem:[%s5896_s0 + $0xa8] sm:$0xff]  ;;  %v4632_v17 = vld [vmem:[%s5896_s0 + $0x38] sm:$0xff] }
   0x7   :  { %3912 = vmatprep.mubr.msk.f32.mxu0 %vm50_vm1, %v4548_v4  ;;  %3933 = vmatprep.mubr.msk.f32.mxu1 %vm50_vm1, %v4563_v6  ;;  %v4637_v18 = vld [vmem:[%s5896_s0 + $0xb0] sm:$0xff]  ;;  %v4642_v19 = vld [vmem:[%s5896_s0 + $0x40] sm:$0xff]  ;;  %v4656_v21 = vld [vmem:[%s5896_s0 + $0xb8] sm:$0xff] }
   0x8   :  { %3934 = vmatmul.mubr.msk.f32.vlgmr.msra.gmra.mxu1 %vm50_vm1, %v4568_v7  ;;  %3957 = vmatprep.subr.mxu1 %v415_v14  ;;  %v413_v20 = vld [vmem:[%s5895_s1 + $0x40] sm:$0xff]  ;;  %v4663_v22 = vld [vmem:[%s5896_s0 + $0x48] sm:$0xff]  ;;  %v4673_v24 = vld [vmem:[%s5896_s0 + $0x50] sm:$0xff] }
   0x9   :  { %3936 = vmatprep.mubr.msk.f32.mxu1 %vm50_vm1, %v4573_v8  ;;  %3958 = vmatpush3.msra.mxu1 %v415_v14  ;;  %v4668_v23 = vld [vmem:[%s5896_s0 + $0xc0] sm:$0xff]  ;;  %v412_v25 = vld [vmem:[%s5895_s1 + $0x38] sm:$0xff]  ;;  %v4687_v26 = vld [vmem:[%s5896_s0 + $0xc8] sm:$0xff] }
   0xa   :  { %3913 = vmatmul.mubr.msk.f32.gmra.mxu0 %vm50_vm1, %v4556_v5  ;;  %3959 = vmatprep.subr.mxu1 %v414_v15  ;;  %v4694_v27 = vld [vmem:[%s5896_s0 + $0x58] sm:$0xff]  ;;  %v4699_v28 = vld [vmem:[%s5896_s0 + $0xd0] sm:$0xff]  ;;  %v4704_v29 = vld [vmem:[%s5896_s0 + $0x60] sm:$0xff] }
   0xb   :  { %3915 = vmatprep.mubr.msk.f32.mxu0 %vm50_vm1, %v4578_v9  ;;  %3960 = vmatpush3.msra.mxu1 %v414_v15  ;;  %v411_v30 = vld [vmem:[%s5895_s1 + $0x30] sm:$0xff]  ;;  %v4718_v31 = vld [vmem:[%s5896_s0 + $0xd8] sm:$0xff]  ;;  %v4725_v32 = vld [vmem:[%s5896_s0 + $0x68] sm:$0xff] }
   0xc   :  { %3937 = vmatmul.mubr.msk.f32.gmra.mxu1 %vm50_vm1, %v4591_v10  ;;  %3961 = vmatprep.subr.mxu1 %v413_v20  ;;  %v4730_v33 = vld [vmem:[%s5896_s0 + $0xe0] sm:$0xff]  ;;  %v4735_v34 = vld [vmem:[%s5896_s0 + $0x70] sm:$0xff]  ;;  %v410_v35 = vld [vmem:[%s5895_s1 + $0x28] sm:$0xff] }
   0xd   :  { %3939 = vmatprep.mubr.msk.f32.mxu1 %vm50_vm1, %v4603_v12  ;;  %3962 = vmatpush3.msra.mxu1 %v413_v20  ;;  %v4749_v36 = vld [vmem:[%s5896_s0 + $0xe8] sm:$0xff]  ;;  %v4756_v37 = vld [vmem:[%s5896_s0 + $0x78] sm:$0xff]  ;;  %v4761_v38 = vld [vmem:[%s5896_s0 + $0xf0] sm:$0xff] }
   0xe   :  { %3916 = vmatmul.mubr.msk.f32.gmra.mxu0 %vm50_vm1, %v4598_v11  ;;  %3963 = vmatprep.subr.mxu1 %v412_v25  ;;  %v409_v39 = vld [vmem:[%s5895_s1 + $0x20] sm:$0xff]  ;;  %v4775_v40 = vld [vmem:[%s5896_s0 + $0xf8] sm:$0xff]  ;;  %v776_v42 = vld [vmem:[%s5895_s1 + $0x68] sm:$0x7f] }
   0xf   :  { %3918 = vmatprep.mubr.msk.f32.mxu0 %vm50_vm1, %v4608_v13  ;;  %3964 = vmatpush3.msra.mxu1 %v412_v25  ;;  %v408_v41 = vld [vmem:[%s5895_s1 + $0x18] sm:$0xff]  ;;  %v784_v43 = vld [vmem:[%s5895_s1 + $0xa8] sm:$0xff]  ;;  %v783_v44 = vld [vmem:[%s5895_s1 + $0xa0] sm:$0xff] }
  0x10   :  { %3940 = vmatmul.mubr.msk.f32.gmra.mxu1 %vm50_vm1, %v4625_v16  ;;  %3965 = vmatprep.subr.mxu1 %v411_v30  ;;  %v782_v45 = vld [vmem:[%s5895_s1 + $0x98] sm:$0xff]  ;;  %v781_v46 = vld [vmem:[%s5895_s1 + $0x90] sm:$0xff]  ;;  %v780_v47 = vld [vmem:[%s5895_s1 + $0x88] sm:$0xff] }
  0x11   :  { %3942 = vmatprep.mubr.msk.f32.mxu1 %vm50_vm1, %v4637_v18  ;;  %3966 = vmatpush3.msra.mxu1 %v411_v30  ;;  %v779_v48 = vld [vmem:[%s5895_s1 + $0x80] sm:$0xff]  ;;  %v778_v49 = vld [vmem:[%s5895_s1 + $0x78] sm:$0xff]  ;;  %v4810_v50 = vld [vmem:[%s5895_s1 + $0x10] ss:$0 sm:$0xff] }
  0x12   :  { %3919 = vmatmul.mubr.msk.f32.gmra.mxu0 %vm50_vm1, %v4632_v17  ;;  %3967 = vmatprep.subr.mxu1 %v410_v35  ;;  %v775_v0 = vld [vmem:[%s5895_s1 + $0x60] sm:$0xff] }
  0x13   :  { %3921 = vmatprep.mubr.msk.f32.mxu0 %vm50_vm1, %v4642_v19  ;;  %3968 = vmatpush3.msra.mxu1 %v410_v35 }
  0x14   :  { %3943 = vmatmul.mubr.msk.f32.gmra.mxu1 %vm50_vm1, %v4656_v21  ;;  %3969 = vmatprep.subr.mxu1 %v409_v39 }
  0x15   :  { %3945 = vmatprep.mubr.msk.f32.mxu1 %vm50_vm1, %v4668_v23  ;;  %3970 = vmatpush3.msra.mxu1 %v409_v39 }
  0x16   :  { %3922 = vmatmul.mubr.msk.f32.gmra.mxu0 %vm50_vm1, %v4663_v22  ;;  %3971 = vmatprep.subr.mxu1 %v408_v41 }
  0x17   :  { %3924 = vmatprep.mubr.msk.f32.mxu0 %vm50_vm1, %v4673_v24  ;;  %3972 = vmatpush3.msra.mxu1 %v408_v41 }
  0x18   :  { %3946 = vmatmul.mubr.msk.f32.gmra.mxu1 %vm50_vm1, %v4687_v26  ;;  %4085 = vmatprep.subr.msk.mxu1 %vm147_vm0, %v776_v42 }
  0x19   :  { %3948 = vmatprep.mubr.msk.f32.mxu1 %vm50_vm1, %v4699_v28  ;;  %4021 = vmatprep.subr.mxu0 %v784_v43 }
  0x1a   :  { %3925 = vmatmul.mubr.msk.f32.gmra.mxu0 %vm50_vm1, %v4694_v27 }
  0x1b   :  { %3927 = vmatprep.mubr.msk.f32.mxu0 %vm50_vm1, %v4704_v29  ;;  %4022 = vmatpush3.msra.mxu0 %v784_v43 }
  0x1c   :  { %3949 = vmatmul.mubr.msk.f32.gmra.mxu1 %vm50_vm1, %v4718_v31  ;;  %4023 = vmatprep.subr.mxu0 %v783_v44 }
  0x1d   :  { %3951 = vmatprep.mubr.msk.f32.mxu1 %vm50_vm1, %v4730_v33  ;;  %4024 = vmatpush3.msra.mxu0 %v783_v44 }
  0x1e   :  { %3928 = vmatmul.mubr.msk.f32.gmra.mxu0 %vm50_vm1, %v4725_v32  ;;  %4025 = vmatprep.subr.mxu0 %v782_v45 }
  0x1f   :  { %3930 = vmatprep.mubr.msk.f32.mxu0 %vm50_vm1, %v4735_v34  ;;  %4026 = vmatpush3.msra.mxu0 %v782_v45 }
  0x20   :  { %3952 = vmatmul.mubr.msk.f32.gmra.mxu1 %vm50_vm1, %v4749_v36  ;;  %4027 = vmatprep.subr.mxu0 %v781_v46 }
  0x21   :  { %3954 = vmatprep.mubr.msk.f32.mxu1 %vm50_vm1, %v4761_v38  ;;  %4028 = vmatpush3.msra.mxu0 %v781_v46 }
  0x22   :  { %3931 = vmatmul.mubr.msk.f32.gmra.mxu0 %vm50_vm1, %v4756_v37  ;;  %4029 = vmatprep.subr.mxu0 %v780_v47 }
  0x23   :  { %4030 = vmatpush3.msra.mxu0 %v780_v47 }
  0x24   :  { %3955 = vmatmul.mubr.msk.f32.gmra.mxu1 %vm50_vm1, %v4775_v40  ;;  %4031 = vmatprep.subr.mxu0 %v779_v48 }
  0x25   :  { %4032 = vmatpush3.msra.mxu0 %v779_v48 }
  0x26   :  { %4033 = vmatprep.subr.mxu0 %v778_v49 }
  0x27   :  { %4034 = vmatpush3.msra.mxu0 %v778_v49 }
  0xc6   :  { %v3911_v51 = vpop.f32.mrf.mxu0 }
  0xc7   :  { %v223_v52 = vadd.f32 %v3911_v51, %v4810_v50 }
  0xc8   :  { %v217_v53 = vpop.f32.mrf.mxu0  ;;  %v4814_v55 = vpop.f32.mrf.mxu1 }
  0xc9   :  { %v218_v54 = vadd.f32 %v4810_v50, %v217_v53  ;;  %v377_v59 = vmax.f32 %v223_v52, 0.0 }
  0xca   :  { %v3914_v56 = vpop.f32.mrf.mxu0  ;;  %v297_v58 = vpop.f32.mrf.mxu1 }
  0xcb   :  { %v376_v57 = vmax.f32 %v218_v54, 0.0  ;;  %v233_v60 = vadd.f32 %v3914_v56, %v4810_v50 }
  0xcc   :  { %v227_v61 = vpop.f32.mrf.mxu0  ;;  %v4819_v63 = vpop.f32.mrf.mxu1 }
  0xcd   :  { %v228_v62 = vadd.f32 %v4810_v50, %v227_v61  ;;  %3973 = vmatprep.mubr.msk.f32.mxu1 %vm421_vm2, %v376_v57  ;;  %v379_v20 = vmax.f32 %v233_v60, 0.0 }
  0xce   :  { %v3917_v1 = vpop.f32.mrf.mxu0  ;;  %3974 = vmatmul.mubr.msk.f32.vlgmr.msra.gmra.mxu1 %vm421_vm2, %v377_v59  ;;  %v307_v15 = vpop.f32.mrf.mxu1 }
  0xcf   :  { %v378_v14 = vmax.f32 %v228_v62, 0.0  ;;  %4086 = vmatpush3.msk.msra.mxu1 %vm147_vm0, %v776_v42  ;;  %v243_v25 = vadd.f32 %v3917_v1, %v4810_v50 }
  0xd0   :  { %v237_v30 = vpop.f32.mrf.mxu0  ;;  %4087 = vmatprep.subr.mxu1 %v775_v0  ;;  %v4829_v39 = vpop.f32.mrf.mxu1 }
  0xd1   :  { %v238_v35 = vadd.f32 %v4810_v50, %v237_v30  ;;  %3976 = vmatprep.mubr.msk.f32.mxu1 %vm421_vm2, %v378_v14  ;;  %4088 = vmatpush3.msra.mxu1 %v775_v0  ;;  %v381_v44 = vmax.f32 %v243_v25, 0.0 }
  0xd2   :  { %v3920_v41 = vpop.f32.mrf.mxu0  ;;  %3977 = vmatmul.mubr.msk.f32.gmra.mxu1 %vm421_vm2, %v379_v20  ;;  %v317_v46 = vpop.f32.mrf.mxu1 }
  0xd3   :  { %v380_v43 = vmax.f32 %v238_v35, 0.0  ;;  %v253_v45 = vadd.f32 %v3920_v41, %v4810_v50 }
  0xd4   :  { %v247_v42 = vpop.f32.mrf.mxu0  ;;  %v3944_v54 = vpop.f32.mrf.mxu1 }
  0xd5   :  { %v248_v47 = vadd.f32 %v4810_v50, %v247_v42  ;;  %3979 = vmatprep.mubr.msk.f32.mxu1 %vm421_vm2, %v380_v43  ;;  %v383_v51 = vmax.f32 %v253_v45, 0.0  ;;  %v298_v42 = vadd.f32 %v4810_v50, %v297_v58 }
  0xd6   :  { %v3923_v48 = vpop.f32.mrf.mxu0  ;;  %3980 = vmatmul.mubr.msk.f32.gmra.mxu1 %vm421_vm2, %v381_v44  ;;  %v327_v0 = vpop.f32.mrf.mxu1 }
  0xd7   :  { %v382_v49 = vmax.f32 %v248_v47, 0.0  ;;  %v263_v52 = vadd.f32 %v3923_v48, %v4810_v50 }
  0xd8   :  { %v257_v53 = vpop.f32.mrf.mxu0  ;;  %v3947_v41 = vpop.f32.mrf.mxu1 }
  0xd9   :  { %v258_v56 = vadd.f32 %v4810_v50, %v257_v53  ;;  %3982 = vmatprep.mubr.msk.f32.mxu1 %vm421_vm2, %v382_v49  ;;  %v385_v60 = vmax.f32 %v263_v52, 0.0 }
  0xda   :  { %v3926_v57 = vpop.f32.mrf.mxu0  ;;  %3983 = vmatmul.mubr.msk.f32.gmra.mxu1 %vm421_vm2, %v383_v51  ;;  %v337_v51 = vpop.f32.mrf.mxu1 }
  0xdb   :  { %v384_v59 = vmax.f32 %v258_v56, 0.0  ;;  %v273_v61 = vadd.f32 %v3926_v57, %v4810_v50  ;;  %v392_v56 = vmax.f32 %v298_v42, 0.0  ;;  %v308_v57 = vadd.f32 %v4810_v50, %v307_v15 }
  0xdc   :  { %v267_v62 = vpop.f32.mrf.mxu0  ;;  %v3950_v58 = vpop.f32.mrf.mxu1 }
  0xdd   :  { %v268_v1 = vadd.f32 %v4810_v50, %v267_v62  ;;  %3985 = vmatprep.mubr.msk.f32.mxu1 %vm421_vm2, %v384_v59  ;;  %v387_v25 = vmax.f32 %v273_v61, 0.0  ;;  %v394_v61 = vmax.f32 %v308_v57, 0.0  ;;  %v318_v62 = vadd.f32 %v4810_v50, %v317_v46 }
  0xde   :  { %v3929_v14 = vpop.f32.mrf.mxu0  ;;  %3986 = vmatmul.mubr.msk.f32.gmra.mxu1 %vm421_vm2, %v385_v60  ;;  %v303_v60 = vadd.f32 %v4814_v55, %v4810_v50  ;;  %v328_v55 = vadd.f32 %v4810_v50, %v327_v0 }
  0xdf   :  { %v386_v20 = vmax.f32 %v268_v1, 0.0  ;;  %v283_v30 = vadd.f32 %v3929_v14, %v4810_v50  ;;  %v313_v14 = vadd.f32 %v4819_v63, %v4810_v50  ;;  %v396_v15 = vmax.f32 %v318_v62, 0.0 }
  0xe0   :  { %v277_v35 = vpop.f32.mrf.mxu0  ;;  %v393_v1 = vmax.f32 %v303_v60, 0.0  ;;  %v398_v46 = vmax.f32 %v328_v55, 0.0  ;;  %v338_v63 = vadd.f32 %v4810_v50, %v337_v51 }
  0xe1   :  { %v278_v43 = vadd.f32 %v4810_v50, %v277_v35  ;;  %3988 = vmatprep.mubr.msk.f32.mxu1 %vm421_vm2, %v386_v20  ;;  %v389_v47 = vmax.f32 %v283_v30, 0.0  ;;  %v347_v20 = vpop.f32.mrf.mxu1  ;;  %v323_v30 = vadd.f32 %v4829_v39, %v4810_v50 }
  0xe2   :  { %v3932_v44 = vpop.f32.mrf.mxu0  ;;  %3989 = vmatmul.mubr.msk.f32.gmra.mxu1 %vm421_vm2, %v387_v25  ;;  %v395_v25 = vmax.f32 %v313_v14, 0.0  ;;  %v400_v42 = vmax.f32 %v338_v63, 0.0  ;;  %v348_v0 = vadd.f32 %v4810_v50, %v347_v20 }
  0xe3   :  { %v388_v45 = vmax.f32 %v278_v43, 0.0  ;;  %v293_v48 = vadd.f32 %v3932_v44, %v4810_v50  ;;  %v3953_v35 = vpop.f32.mrf.mxu1  ;;  %v397_v43 = vmax.f32 %v323_v30, 0.0  ;;  %v333_v44 = vadd.f32 %v3944_v54, %v4810_v50 }
  0xe4   :  { %v287_v49 = vpop.f32.mrf.mxu0 }
  0xe5   :  { %v288_v52 = vadd.f32 %v4810_v50, %v287_v49  ;;  %3991 = vmatprep.mubr.msk.f32.mxu1 %vm421_vm2, %v388_v45  ;;  %v391_v59 = vmax.f32 %v293_v48, 0.0  ;;  %v357_v45 = vpop.f32.mrf.mxu1  ;;  %v399_v39 = vmax.f32 %v333_v44, 0.0  ;;  %v402_v49 = vmax.f32 %v348_v0, 0.0 }
  0xe6   :  { %3992 = vmatmul.mubr.msk.f32.gmra.mxu1 %vm421_vm2, %v389_v47  ;;  %v343_v47 = vadd.f32 %v3947_v41, %v4810_v50  ;;  %v358_v51 = vadd.f32 %v4810_v50, %v357_v45 }
  0xe7   :  { %v390_v53 = vmax.f32 %v288_v52, 0.0  ;;  %v3956_v48 = vpop.f32.mrf.mxu1  ;;  %v353_v52 = vadd.f32 %v3950_v58, %v4810_v50 }
  0xe8   :  { %v401_v54 = vmax.f32 %v343_v47, 0.0  ;;  %v373_v62 = vadd.f32 %v3956_v48, %v4810_v50 }
  0xe9   :  { %3994 = vmatprep.mubr.msk.f32.mxu1 %vm421_vm2, %v390_v53  ;;  %v367_v53 = vpop.f32.mrf.mxu1  ;;  %v403_v41 = vmax.f32 %v353_v52, 0.0 }
  0xea   :  { %3995 = vmatmul.mubr.msk.f32.gmra.mxu1 %vm421_vm2, %v391_v59  ;;  %v368_v57 = vadd.f32 %v4810_v50, %v367_v53  ;;  %v363_v59 = vadd.f32 %v3953_v35, %v4810_v50  ;;  %v407_v58 = vmax.f32 %v373_v62, 0.0  ;;  %v777_v50 = vld [vmem:[%s5895_s1 + $0x70] sm:$0xff] }
  0xeb   :  { %3997 = vmatprep.mubr.msk.f32.mxu1 %vm421_vm2, %v392_v56  ;;  %v404_v56 = vmax.f32 %v358_v51, 0.0  ;;  %4035 = vmatprep.subr.mxu0 %v777_v50 }
  0xec   :  { %v406_v60 = vmax.f32 %v368_v57, 0.0  ;;  %4036 = vmatpush3.msra.mxu0 %v777_v50 }
  0xee   :  { %3998 = vmatmul.mubr.msk.f32.gmra.mxu1 %vm421_vm2, %v393_v1 }
  0xef   :  { %4000 = vmatprep.mubr.msk.f32.mxu1 %vm421_vm2, %v394_v61  ;;  %v405_v61 = vmax.f32 %v363_v59, 0.0 }
  0xf2   :  { %4001 = vmatmul.mubr.msk.f32.gmra.mxu1 %vm421_vm2, %v395_v25 }
  0xf3   :  { %4003 = vmatprep.mubr.msk.f32.mxu1 %vm421_vm2, %v396_v15 }
  0xf6   :  { %4004 = vmatmul.mubr.msk.f32.gmra.mxu1 %vm421_vm2, %v397_v43 }
  0xf7   :  { %4006 = vmatprep.mubr.msk.f32.mxu1 %vm421_vm2, %v398_v46 }
  0xfa   :  { %4007 = vmatmul.mubr.msk.f32.gmra.mxu1 %vm421_vm2, %v399_v39 }
  0xfb   :  { %4009 = vmatprep.mubr.msk.f32.mxu1 %vm421_vm2, %v400_v42 }
  0xfe   :  { %4010 = vmatmul.mubr.msk.f32.gmra.mxu1 %vm421_vm2, %v401_v54 }
  0xff   :  { %4012 = vmatprep.mubr.msk.f32.mxu1 %vm421_vm2, %v402_v49 }
 0x102   :  { %4013 = vmatmul.mubr.msk.f32.gmra.mxu1 %vm421_vm2, %v403_v41 }
 0x103   :  { %4015 = vmatprep.mubr.msk.f32.mxu1 %vm421_vm2, %v404_v56 }
 0x106   :  { %4016 = vmatmul.mubr.msk.f32.gmra.mxu1 %vm421_vm2, %v405_v61 }
 0x107   :  { %4018 = vmatprep.mubr.msk.f32.mxu1 %vm421_vm2, %v406_v60 }
 0x10a   :  { %4019 = vmatmul.mubr.msk.f32.gmra.mxu1 %vm421_vm2, %v407_v58 }
 0x10b   :  { %4089 = vmatprep.mubr.msk.f32.mxu1 %vm50_vm1, %v4533_v2  ;;  %v1410_v2 = vld [vmem:[%s5895_s1 + $0xf0] sm:$0xff] }
 0x10c   :  { %4137 = vmatprep.subr.mxu0 %v1410_v2 }
 0x10e   :  { %4090 = vmatmul.mubr.msk.f32.vlgmr.msra.gmra.mxu1 %vm50_vm1, %v4542_v3  ;;  %v4962_v3 = vld [vmem:[%s5895_s1 + $0x58] ss:$0 sm:$0xff] }
 0x10f   :  { %4092 = vmatprep.mubr.msk.f32.mxu1 %vm50_vm1, %v4548_v4 }
 0x112   :  { %4093 = vmatmul.mubr.msk.f32.gmra.mxu1 %vm50_vm1, %v4556_v5 }
 0x113   :  { %4095 = vmatprep.mubr.msk.f32.mxu1 %vm50_vm1, %v4578_v9 }
 0x116   :  { %4096 = vmatmul.mubr.msk.f32.gmra.mxu1 %vm50_vm1, %v4598_v11 }
 0x117   :  { %4098 = vmatprep.mubr.msk.f32.mxu1 %vm50_vm1, %v4608_v13 }
 0x11a   :  { %4099 = vmatmul.mubr.msk.f32.gmra.mxu1 %vm50_vm1, %v4632_v17 }
 0x11b   :  { %4101 = vmatprep.mubr.msk.f32.mxu1 %vm50_vm1, %v4642_v19  ;;  %v1408_v19 = vld [vmem:[%s5895_s1 + $0xe0] sm:$0xff] }
 0x11e   :  { %4102 = vmatmul.mubr.msk.f32.gmra.mxu1 %vm50_vm1, %v4663_v22 }
 0x11f   :  { %4104 = vmatprep.mubr.msk.f32.mxu1 %vm50_vm1, %v4673_v24 }
 0x122   :  { %4105 = vmatmul.mubr.msk.f32.gmra.mxu1 %vm50_vm1, %v4694_v27 }
 0x123   :  { %4107 = vmatprep.mubr.msk.f32.mxu1 %vm50_vm1, %v4704_v29  ;;  %v1406_v29 = vld [vmem:[%s5895_s1 + $0xd0] sm:$0xff] }
 0x126   :  { %4108 = vmatmul.mubr.msk.f32.gmra.mxu1 %vm50_vm1, %v4725_v32 }
 0x127   :  { %4110 = vmatprep.mubr.msk.f32.mxu1 %vm50_vm1, %v4735_v34 }
 0x12a   :  { %4111 = vmatmul.mubr.msk.f32.gmra.mxu1 %vm50_vm1, %v4756_v37 }
 0x12b   :  { %4113 = vmatprep.mubr.msk.f32.mxu1 %vm50_vm1, %v4563_v6 }
 0x12e   :  { %4114 = vmatmul.mubr.msk.f32.gmra.mxu1 %vm50_vm1, %v4568_v7 }
 0x12f   :  { %4116 = vmatprep.mubr.msk.f32.mxu1 %vm50_vm1, %v4573_v8 }
 0x132   :  { %4117 = vmatmul.mubr.msk.f32.gmra.mxu1 %vm50_vm1, %v4591_v10 }
 0x133   :  { %4119 = vmatprep.mubr.msk.f32.mxu1 %vm50_vm1, %v4603_v12 }
 0x136   :  { %4120 = vmatmul.mubr.msk.f32.gmra.mxu1 %vm50_vm1, %v4625_v16  ;;  %v1409_v16 = vld [vmem:[%s5895_s1 + $0xe8] sm:$0xff] }
 0x137   :  { %4122 = vmatprep.mubr.msk.f32.mxu1 %vm50_vm1, %v4637_v18 }
 0x13a   :  { %4123 = vmatmul.mubr.msk.f32.gmra.mxu1 %vm50_vm1, %v4656_v21 }
 0x13b   :  { %4125 = vmatprep.mubr.msk.f32.mxu1 %vm50_vm1, %v4668_v23 }
 0x13e   :  { %4126 = vmatmul.mubr.msk.f32.gmra.mxu1 %vm50_vm1, %v4687_v26  ;;  %v1407_v26 = vld [vmem:[%s5895_s1 + $0xd8] sm:$0xff] }
 0x13f   :  { %4128 = vmatprep.mubr.msk.f32.mxu1 %vm50_vm1, %v4699_v28 }
 0x142   :  { %4129 = vmatmul.mubr.msk.f32.gmra.mxu1 %vm50_vm1, %v4718_v31 }
 0x143   :  { %4131 = vmatprep.mubr.msk.f32.mxu1 %vm50_vm1, %v4730_v33 }
 0x146   :  { %4132 = vmatmul.mubr.msk.f32.gmra.mxu1 %vm50_vm1, %v4749_v36  ;;  %v1405_v36 = vld [vmem:[%s5895_s1 + $0xc8] sm:$0xff] }
 0x147   :  { %4134 = vmatprep.mubr.msk.f32.mxu1 %vm50_vm1, %v4761_v38 }
 0x14a   :  { %4135 = vmatmul.mubr.msk.f32.gmra.mxu1 %vm50_vm1, %v4775_v40  ;;  %v1404_v40 = vld [vmem:[%s5895_s1 + $0xc0] sm:$0xff] }
 0x18e   :  { %v3975_v4 = vpop.f32.mrf.mxu1 }
 0x18f   :  { %v590_v5 = vadd.f32 %v3975_v4, %v4962_v3 }
 0x190   :  { %v584_v6 = vpop.f32.mrf.mxu1 }
 0x191   :  { %v585_v7 = vadd.f32 %v4962_v3, %v584_v6  ;;  %v744_v10 = vmax.f32 %v590_v5, 0.0 }
 0x192   :  { %v3978_v8 = vpop.f32.mrf.mxu1 }
 0x193   :  { %v743_v9 = vmax.f32 %v585_v7, 0.0  ;;  %v600_v11 = vadd.f32 %v3978_v8, %v4962_v3 }
 0x194   :  { %v594_v12 = vpop.f32.mrf.mxu1 }
 0x195   :  { %v595_v13 = vadd.f32 %v4962_v3, %v594_v12  ;;  %4037 = vmatprep.mubr.msk.f32.mxu0 %vm421_vm2, %v743_v9  ;;  %v746_v21 = vmax.f32 %v600_v11, 0.0 }
 0x196   :  { %v3981_v17 = vpop.f32.mrf.mxu1  ;;  %4038 = vmatmul.mubr.msk.f32.vlgmr.msra.gmra.mxu0 %vm421_vm2, %v744_v10 }
 0x197   :  { %v745_v18 = vmax.f32 %v595_v13, 0.0  ;;  %4138 = vmatpush3.msra.mxu0 %v1410_v2  ;;  %v610_v22 = vadd.f32 %v3981_v17, %v4962_v3 }
 0x198   :  { %v604_v23 = vpop.f32.mrf.mxu1  ;;  %4139 = vmatprep.subr.mxu0 %v1409_v16 }
 0x199   :  { %v605_v24 = vadd.f32 %v4962_v3, %v604_v23  ;;  %4040 = vmatprep.mubr.msk.f32.mxu0 %vm421_vm2, %v745_v18  ;;  %4140 = vmatpush3.msra.mxu0 %v1409_v16  ;;  %v748_v31 = vmax.f32 %v610_v22, 0.0 }
 0x19a   :  { %v3984_v27 = vpop.f32.mrf.mxu1  ;;  %4041 = vmatmul.mubr.msk.f32.gmra.mxu0 %vm421_vm2, %v746_v21  ;;  %4141 = vmatprep.subr.mxu0 %v1408_v19 }
 0x19b   :  { %v747_v28 = vmax.f32 %v605_v24, 0.0  ;;  %4142 = vmatpush3.msra.mxu0 %v1408_v19  ;;  %v620_v32 = vadd.f32 %v3984_v27, %v4962_v3 }
 0x19c   :  { %v614_v33 = vpop.f32.mrf.mxu1  ;;  %4143 = vmatprep.subr.mxu0 %v1407_v26 }
 0x19d   :  { %v615_v34 = vadd.f32 %v4962_v3, %v614_v33  ;;  %4043 = vmatprep.mubr.msk.f32.mxu0 %vm421_vm2, %v747_v28  ;;  %4144 = vmatpush3.msra.mxu0 %v1407_v26  ;;  %v750_v1 = vmax.f32 %v620_v32, 0.0 }
 0x19e   :  { %v3987_v37 = vpop.f32.mrf.mxu1  ;;  %4044 = vmatmul.mubr.msk.f32.gmra.mxu0 %vm421_vm2, %v748_v31  ;;  %4145 = vmatprep.subr.mxu0 %v1406_v29 }
 0x19f   :  { %v749_v38 = vmax.f32 %v615_v34, 0.0  ;;  %4146 = vmatpush3.msra.mxu0 %v1406_v29  ;;  %v630_v14 = vadd.f32 %v3987_v37, %v4962_v3 }
 0x1a0   :  { %v624_v20 = vpop.f32.mrf.mxu1  ;;  %4147 = vmatprep.subr.mxu0 %v1405_v36 }
 0x1a1   :  { %v625_v15 = vadd.f32 %v4962_v3, %v624_v20  ;;  %4046 = vmatprep.mubr.msk.f32.mxu0 %vm421_vm2, %v749_v38  ;;  %4148 = vmatpush3.msra.mxu0 %v1405_v36  ;;  %v752_v30 = vmax.f32 %v630_v14, 0.0 }
 0x1a2   :  { %v3990_v55 = vpop.f32.mrf.mxu1  ;;  %4047 = vmatmul.mubr.msk.f32.gmra.mxu0 %vm421_vm2, %v750_v1  ;;  %4149 = vmatprep.subr.mxu0 %v1404_v40 }
 0x1a3   :  { %v751_v25 = vmax.f32 %v625_v15, 0.0  ;;  %4150 = vmatpush3.msra.mxu0 %v1404_v40  ;;  %v640_v35 = vadd.f32 %v3990_v55, %v4962_v3 }
 0x1a4   :  { %v634_v46 = vpop.f32.mrf.mxu1 }
 0x1a5   :  { %v635_v63 = vadd.f32 %v4962_v3, %v634_v46  ;;  %4049 = vmatprep.mubr.msk.f32.mxu0 %vm421_vm2, %v751_v25  ;;  %v754_v45 = vmax.f32 %v640_v35, 0.0 }
 0x1a6   :  { %v3993_v43 = vpop.f32.mrf.mxu1  ;;  %4050 = vmatmul.mubr.msk.f32.gmra.mxu0 %vm421_vm2, %v752_v30 }
 0x1a7   :  { %v753_v44 = vmax.f32 %v635_v63, 0.0  ;;  %v650_v42 = vadd.f32 %v3993_v43, %v4962_v3  ;;  %v1403_v63 = vld [vmem:[%s5895_s1 + $0xb8] sm:$0xff] }
 0x1a8   :  { %v644_v0 = vpop.f32.mrf.mxu1  ;;  %4151 = vmatprep.subr.mxu0 %v1403_v63 }
 0x1a9   :  { %v645_v39 = vadd.f32 %v4962_v3, %v644_v0  ;;  %4052 = vmatprep.mubr.msk.f32.mxu0 %vm421_vm2, %v753_v44  ;;  %v756_v49 = vmax.f32 %v650_v42, 0.0  ;;  %4152 = vmatpush3.msra.mxu0 %v1403_v63  ;;  %v1775_v42 = vld [vmem:[%s5895_s1 + $0x130] sm:$0xff] }
 0x1aa   :  { %v3996_v47 = vpop.f32.mrf.mxu1  ;;  %4053 = vmatmul.mubr.msk.f32.gmra.mxu0 %vm421_vm2, %v754_v45  ;;  %v1776_v45 = vld [vmem:[%s5895_s1 + $0x138] sm:$0xff] }
 0x1ab   :  { %v755_v48 = vmax.f32 %v645_v39, 0.0  ;;  %v660_v51 = vadd.f32 %v3996_v47, %v4962_v3  ;;  %4201 = vmatprep.subr.mxu1 %v1776_v45  ;;  %v1774_v39 = vld [vmem:[%s5895_s1 + $0x128] sm:$0xff]  ;;  %v1773_v47 = vld [vmem:[%s5895_s1 + $0x120] sm:$0xff] }
 0x1ac   :  { %v654_v54 = vpop.f32.mrf.mxu1  ;;  %4202 = vmatpush3.msra.mxu1 %v1776_v45  ;;  %v2104_v45 = vld [vmem:[%s5895_s1 + $0x150] sm:$0xff] }
 0x1ad   :  { %v655_v52 = vadd.f32 %v4962_v3, %v654_v54  ;;  %4055 = vmatprep.mubr.msk.f32.mxu0 %vm421_vm2, %v755_v48  ;;  %v758_v57 = vmax.f32 %v660_v51, 0.0  ;;  %4203 = vmatprep.subr.mxu1 %v1775_v42 }
 0x1ae   :  { %v3999_v53 = vpop.f32.mrf.mxu1  ;;  %4056 = vmatmul.mubr.msk.f32.gmra.mxu0 %vm421_vm2, %v756_v49  ;;  %4204 = vmatpush3.msra.mxu1 %v1775_v42 }
 0x1af   :  { %v757_v56 = vmax.f32 %v655_v52, 0.0  ;;  %v670_v41 = vadd.f32 %v3999_v53, %v4962_v3  ;;  %4205 = vmatprep.subr.mxu1 %v1774_v39 }
 0x1b0   :  { %v664_v59 = vpop.f32.mrf.mxu1  ;;  %4206 = vmatpush3.msra.mxu1 %v1774_v39 }
 0x1b1   :  { %v665_v60 = vadd.f32 %v4962_v3, %v664_v59  ;;  %4058 = vmatprep.mubr.msk.f32.mxu0 %vm421_vm2, %v757_v56  ;;  %v760_v58 = vmax.f32 %v670_v41, 0.0  ;;  %4207 = vmatprep.subr.mxu1 %v1773_v47 }
 0x1b2   :  { %v4002_v61 = vpop.f32.mrf.mxu1  ;;  %4059 = vmatmul.mubr.msk.f32.gmra.mxu0 %vm421_vm2, %v758_v57  ;;  %4208 = vmatpush3.msra.mxu1 %v1773_v47 }
 0x1b3   :  { %v759_v62 = vmax.f32 %v665_v60, 0.0  ;;  %v680_v50 = vadd.f32 %v4002_v61, %v4962_v3 }
 0x1b4   :  { %v674_v2 = vpop.f32.mrf.mxu1 }
 0x1b5   :  { %v675_v4 = vadd.f32 %v4962_v3, %v674_v2  ;;  %4061 = vmatprep.mubr.msk.f32.mxu0 %vm421_vm2, %v759_v62  ;;  %v762_v7 = vmax.f32 %v680_v50, 0.0  ;;  %v5081_v2 = vld [vmem:[%s5895_s1 + $0xb0] ss:$0 sm:$0xff] }
 0x1b6   :  { %v4005_v5 = vpop.f32.mrf.mxu1  ;;  %4062 = vmatmul.mubr.msk.f32.gmra.mxu0 %vm421_vm2, %v760_v58 }
 0x1b7   :  { %v761_v6 = vmax.f32 %v675_v4, 0.0  ;;  %v690_v8 = vadd.f32 %v4005_v5, %v4962_v3 }
 0x1b8   :  { %v684_v9 = vpop.f32.mrf.mxu1 }
 0x1b9   :  { %v685_v10 = vadd.f32 %v4962_v3, %v684_v9  ;;  %4064 = vmatprep.mubr.msk.f32.mxu0 %vm421_vm2, %v761_v6  ;;  %v764_v13 = vmax.f32 %v690_v8, 0.0 }
 0x1ba   :  { %v4008_v11 = vpop.f32.mrf.mxu1  ;;  %4065 = vmatmul.mubr.msk.f32.gmra.mxu0 %vm421_vm2, %v762_v7 }
 0x1bb   :  { %v763_v12 = vmax.f32 %v685_v10, 0.0  ;;  %v700_v16 = vadd.f32 %v4008_v11, %v4962_v3 }
 0x1bc   :  { %v694_v17 = vpop.f32.mrf.mxu1 }
 0x1bd   :  { %v695_v18 = vadd.f32 %v4962_v3, %v694_v17  ;;  %4067 = vmatprep.mubr.msk.f32.mxu0 %vm421_vm2, %v763_v12  ;;  %v766_v22 = vmax.f32 %v700_v16, 0.0 }
 0x1be   :  { %v4011_v19 = vpop.f32.mrf.mxu1  ;;  %4068 = vmatmul.mubr.msk.f32.gmra.mxu0 %vm421_vm2, %v764_v13 }
 0x1bf   :  { %v765_v21 = vmax.f32 %v695_v18, 0.0  ;;  %v710_v23 = vadd.f32 %v4011_v19, %v4962_v3 }
 0x1c0   :  { %v704_v24 = vpop.f32.mrf.mxu1 }
 0x1c1   :  { %v705_v26 = vadd.f32 %v4962_v3, %v704_v24  ;;  %4070 = vmatprep.mubr.msk.f32.mxu0 %vm421_vm2, %v765_v21  ;;  %v768_v29 = vmax.f32 %v710_v23, 0.0  ;;  %v2109_v23 = vld [vmem:[%s5895_s1 + $0x178] sm:$0xff] }
 0x1c2   :  { %v4014_v27 = vpop.f32.mrf.mxu1  ;;  %4071 = vmatmul.mubr.msk.f32.gmra.mxu0 %vm421_vm2, %v766_v22 }
 0x1c3   :  { %v767_v28 = vmax.f32 %v705_v26, 0.0  ;;  %v720_v31 = vadd.f32 %v4014_v27, %v4962_v3 }
 0x1c4   :  { %v714_v32 = vpop.f32.mrf.mxu1 }
 0x1c5   :  { %v715_v33 = vadd.f32 %v4962_v3, %v714_v32  ;;  %4073 = vmatprep.mubr.msk.f32.mxu0 %vm421_vm2, %v767_v28  ;;  %v770_v37 = vmax.f32 %v720_v31, 0.0 }
 0x1c6   :  { %v4017_v34 = vpop.f32.mrf.mxu1  ;;  %4074 = vmatmul.mubr.msk.f32.gmra.mxu0 %vm421_vm2, %v768_v29  ;;  %v2108_v29 = vld [vmem:[%s5895_s1 + $0x170] sm:$0xff] }
 0x1c7   :  { %v769_v36 = vmax.f32 %v715_v33, 0.0  ;;  %v730_v38 = vadd.f32 %v4017_v34, %v4962_v3 }
 0x1c8   :  { %v724_v40 = vpop.f32.mrf.mxu1 }
 0x1c9   :  { %v725_v1 = vadd.f32 %v4962_v3, %v724_v40  ;;  %4076 = vmatprep.mubr.msk.f32.mxu0 %vm421_vm2, %v769_v36  ;;  %v772_v15 = vmax.f32 %v730_v38, 0.0 }
 0x1ca   :  { %v4020_v14 = vpop.f32.mrf.mxu1  ;;  %4077 = vmatmul.mubr.msk.f32.gmra.mxu0 %vm421_vm2, %v770_v37  ;;  %v2107_v37 = vld [vmem:[%s5895_s1 + $0x168] sm:$0xff] }
 0x1cb   :  { %v771_v20 = vmax.f32 %v725_v1, 0.0  ;;  %v740_v55 = vadd.f32 %v4020_v14, %v4962_v3 }
 0x1cc   :  { %v734_v25 = vpop.f32.mrf.mxu1 }
 0x1cd   :  { %v735_v30 = vadd.f32 %v4962_v3, %v734_v25  ;;  %4079 = vmatprep.mubr.msk.f32.mxu0 %vm421_vm2, %v771_v20  ;;  %v774_v46 = vmax.f32 %v740_v55, 0.0  ;;  %v2110_v3 = vld [vmem:[%s5895_s1 + $0x180] sm:$0xff] }
 0x1ce   :  { %4080 = vmatmul.mubr.msk.f32.gmra.mxu0 %vm421_vm2, %v772_v15  ;;  %v4091_v43 = vpop.f32.mrf.mxu1  ;;  %4265 = vmatprep.subr.mxu0 %v2110_v3  ;;  %v2106_v20 = vld [vmem:[%s5895_s1 + $0x160] sm:$0xff] }
 0x1cf   :  { %v773_v35 = vmax.f32 %v735_v30, 0.0 }
 0x1d0   :  { %v1175_v44 = vpop.f32.mrf.mxu1 }
 0x1d1   :  { %4082 = vmatprep.mubr.msk.f32.mxu0 %vm421_vm2, %v773_v35 }
 0x1d2   :  { %4083 = vmatmul.mubr.msk.f32.gmra.mxu0 %vm421_vm2, %v774_v46  ;;  %v4094_v0 = vpop.f32.mrf.mxu1  ;;  %v2105_v46 = vld [vmem:[%s5895_s1 + $0x158] sm:$0xff] }
 0x1d4   :  { %v1185_v48 = vpop.f32.mrf.mxu1 }
 0x1d6   :  { %v4097_v49 = vpop.f32.mrf.mxu1 }
 0x1d8   :  { %v1195_v51 = vpop.f32.mrf.mxu1 }
 0x1da   :  { %v4100_v54 = vpop.f32.mrf.mxu1 }
 0x1dc   :  { %v1205_v52 = vpop.f32.mrf.mxu1 }
 0x1de   :  { %v4103_v53 = vpop.f32.mrf.mxu1 }
 0x1e0   :  { %v5064_v56 = vpop.f32.mrf.mxu1 }
 0x1e2   :  { %v5066_v57 = vpop.f32.mrf.mxu1 }
 0x1e4   :  { %v5068_v41 = vpop.f32.mrf.mxu1 }
 0x1e6   :  { %v5070_v59 = vpop.f32.mrf.mxu1 }
 0x1e8   :  { %v5072_v60 = vpop.f32.mrf.mxu1 }
 0x1ea   :  { %v5074_v61 = vpop.f32.mrf.mxu1 }
 0x1ec   :  { %v5076_v62 = vpop.f32.mrf.mxu1 }
 0x1ee   :  { %v5083_v5 = vpop.f32.mrf.mxu1 }
 0x1f0   :  { %v5087_v12 = vpop.f32.mrf.mxu1 }
 0x1f2   :  { %v5096_v26 = vpop.f32.mrf.mxu1 }
 0x1f4   :  { %v5108_v40 = vpop.f32.mrf.mxu1 }
 0x256   :  { %v4039_v58 = vpop.f32.mrf.mxu0 }
 0x257   :  { %v1181_v50 = vadd.f32 %v4091_v43, %v4039_v58  ;;  %v5120_v43 = vpop.f32.mrf.mxu1 }
 0x258   :  { %v947_v4 = vpop.f32.mrf.mxu0 }
 0x259   :  { %v1176_v6 = vadd.f32 %v1175_v44, %v947_v4  ;;  %v1340_v7 = vadd.f32 %v5081_v2, %v1181_v50 }
 0x25a   :  { %v4042_v8 = vpop.f32.mrf.mxu0 }
 0x25b   :  { %v1339_v9 = vadd.f32 %v5081_v2, %v1176_v6  ;;  %v1191_v10 = vadd.f32 %v4094_v0, %v4042_v8  ;;  %v1372_v17 = vmax.f32 %v1340_v7, 0.0 }
 0x25c   :  { %v957_v11 = vpop.f32.mrf.mxu0 }
 0x25d   :  { %v1371_v13 = vmax.f32 %v1339_v9, 0.0  ;;  %v1186_v16 = vadd.f32 %v1185_v48, %v957_v11  ;;  %v1342_v18 = vadd.f32 %v5081_v2, %v1191_v10 }
 0x25e   :  { %v4045_v19 = vpop.f32.mrf.mxu0 }
 0x25f   :  { %v1341_v21 = vadd.f32 %v5081_v2, %v1186_v16  ;;  %v1201_v22 = vadd.f32 %v4097_v49, %v4045_v19  ;;  %4153 = vmatprep.mubr.msk.f32.mxu0 %vm421_vm2, %v1371_v13  ;;  %v1374_v31 = vmax.f32 %v1342_v18, 0.0  ;;  %v2103_v49 = vld [vmem:[%s5895_s1 + $0x148] sm:$0xff] }
 0x260   :  { %v967_v24 = vpop.f32.mrf.mxu0  ;;  %4154 = vmatmul.mubr.msk.f32.vlgmr.msra.gmra.mxu0 %vm421_vm2, %v1372_v17 }
 0x261   :  { %v1373_v27 = vmax.f32 %v1341_v21, 0.0  ;;  %v1196_v28 = vadd.f32 %v1195_v51, %v967_v24  ;;  %4266 = vmatpush3.msra.mxu0 %v2110_v3  ;;  %v1344_v32 = vadd.f32 %v5081_v2, %v1201_v22 }
 0x262   :  { %v4048_v33 = vpop.f32.mrf.mxu0  ;;  %4267 = vmatprep.subr.mxu0 %v2109_v23 }
 0x263   :  { %v1343_v34 = vadd.f32 %v5081_v2, %v1196_v28  ;;  %v1211_v36 = vadd.f32 %v4100_v54, %v4048_v33  ;;  %4156 = vmatprep.mubr.msk.f32.mxu0 %vm421_vm2, %v1373_v27  ;;  %4268 = vmatpush3.msra.mxu0 %v2109_v23  ;;  %v1376_v15 = vmax.f32 %v1344_v32, 0.0  ;;  %v1275_v54 = vpop.f32.mrf.mxu1 }
 0x264   :  { %v977_v38 = vpop.f32.mrf.mxu0  ;;  %4157 = vmatmul.mubr.msk.f32.gmra.mxu0 %vm421_vm2, %v1374_v31  ;;  %4269 = vmatprep.subr.mxu0 %v2108_v29 }
 0x265   :  { %v1375_v1 = vmax.f32 %v1343_v34, 0.0  ;;  %v1206_v14 = vadd.f32 %v1205_v52, %v977_v38  ;;  %4270 = vmatpush3.msra.mxu0 %v2108_v29  ;;  %v1346_v55 = vadd.f32 %v5081_v2, %v1211_v36  ;;  %v4124_v7 = vpop.f32.mrf.mxu1 }
 0x266   :  { %v4051_v25 = vpop.f32.mrf.mxu0  ;;  %4271 = vmatprep.subr.mxu0 %v2107_v37 }
 0x267   :  { %v1345_v30 = vadd.f32 %v5081_v2, %v1206_v14  ;;  %v1221_v35 = vadd.f32 %v4103_v53, %v4051_v25  ;;  %4159 = vmatprep.mubr.msk.f32.mxu0 %vm421_vm2, %v1375_v1  ;;  %4272 = vmatpush3.msra.mxu0 %v2107_v37  ;;  %v1378_v42 = vmax.f32 %v1346_v55, 0.0  ;;  %v1285_v17 = vpop.f32.mrf.mxu1 }
 0x268   :  { %v987_v63 = vpop.f32.mrf.mxu0  ;;  %4160 = vmatmul.mubr.msk.f32.gmra.mxu0 %vm421_vm2, %v1376_v15  ;;  %4273 = vmatprep.subr.mxu0 %v2106_v20 }
 0x269   :  { %v1377_v44 = vmax.f32 %v1345_v30, 0.0  ;;  %v1216_v3 = vadd.f32 %v5064_v56, %v987_v63  ;;  %4274 = vmatpush3.msra.mxu0 %v2106_v20  ;;  %v1348_v0 = vadd.f32 %v5081_v2, %v1221_v35  ;;  %v4127_v27 = vpop.f32.mrf.mxu1 }
 0x26a   :  { %v4054_v39 = vpop.f32.mrf.mxu0  ;;  %4275 = vmatprep.subr.mxu0 %v2105_v46 }
 0x26b   :  { %v1347_v47 = vadd.f32 %v5081_v2, %v1216_v3  ;;  %v1231_v48 = vadd.f32 %v5066_v57, %v4054_v39  ;;  %4162 = vmatprep.mubr.msk.f32.mxu0 %vm421_vm2, %v1377_v44  ;;  %4276 = vmatpush3.msra.mxu0 %v2105_v46  ;;  %v1380_v56 = vmax.f32 %v1348_v0, 0.0  ;;  %v1295_v36 = vpop.f32.mrf.mxu1 }
 0x26c   :  { %v997_v51 = vpop.f32.mrf.mxu0  ;;  %4163 = vmatmul.mubr.msk.f32.gmra.mxu0 %vm421_vm2, %v1378_v42  ;;  %4277 = vmatprep.subr.mxu0 %v2104_v45 }
 0x26d   :  { %v1379_v52 = vmax.f32 %v1347_v47, 0.0  ;;  %v1226_v53 = vadd.f32 %v5068_v41, %v997_v51  ;;  %4278 = vmatpush3.msra.mxu0 %v2104_v45  ;;  %v1350_v58 = vadd.f32 %v5081_v2, %v1231_v48  ;;  %v4130_v55 = vpop.f32.mrf.mxu1 }
 0x26e   :  { %v4057_v57 = vpop.f32.mrf.mxu0  ;;  %4279 = vmatprep.subr.mxu0 %v2103_v49 }
 0x26f   :  { %v1349_v50 = vadd.f32 %v5081_v2, %v1226_v53  ;;  %v1241_v4 = vadd.f32 %v5070_v59, %v4057_v57  ;;  %4165 = vmatprep.mubr.msk.f32.mxu0 %vm421_vm2, %v1379_v52  ;;  %4280 = vmatpush3.msra.mxu0 %v2103_v49  ;;  %v1382_v9 = vmax.f32 %v1350_v58, 0.0 }
 0x270   :  { %v1007_v6 = vpop.f32.mrf.mxu0  ;;  %4166 = vmatmul.mubr.msk.f32.gmra.mxu0 %vm421_vm2, %v1380_v56 }
 0x271   :  { %v1381_v8 = vmax.f32 %v1349_v50, 0.0  ;;  %v1236_v41 = vadd.f32 %v5072_v60, %v1007_v6  ;;  %v1352_v10 = vadd.f32 %v5081_v2, %v1241_v4 }
 0x272   :  { %v4060_v11 = vpop.f32.mrf.mxu0 }
 0x273   :  { %v1351_v13 = vadd.f32 %v5081_v2, %v1236_v41  ;;  %v1251_v16 = vadd.f32 %v5074_v61, %v4060_v11  ;;  %4168 = vmatprep.mubr.msk.f32.mxu0 %vm421_vm2, %v1381_v8  ;;  %v1384_v21 = vmax.f32 %v1352_v10, 0.0 }
 0x274   :  { %v1017_v59 = vpop.f32.mrf.mxu0  ;;  %4169 = vmatmul.mubr.msk.f32.gmra.mxu0 %vm421_vm2, %v1382_v9 }
 0x275   :  { %v1383_v18 = vmax.f32 %v1351_v13, 0.0  ;;  %v1246_v19 = vadd.f32 %v5076_v62, %v1017_v59  ;;  %v1354_v60 = vadd.f32 %v5081_v2, %v1251_v16 }
 0x276   :  { %v4063_v22 = vpop.f32.mrf.mxu0 }
 0x277   :  { %v1353_v23 = vadd.f32 %v5081_v2, %v1246_v19  ;;  %v1261_v24 = vadd.f32 %v5083_v5, %v4063_v22  ;;  %4171 = vmatprep.mubr.msk.f32.mxu0 %vm421_vm2, %v1383_v18  ;;  %v1386_v31 = vmax.f32 %v1354_v60, 0.0 }
 0x278   :  { %v1027_v61 = vpop.f32.mrf.mxu0  ;;  %4172 = vmatmul.mubr.msk.f32.gmra.mxu0 %vm421_vm2, %v1384_v21 }
 0x279   :  { %v1385_v28 = vmax.f32 %v1353_v23, 0.0  ;;  %v1256_v29 = vadd.f32 %v5087_v12, %v1027_v61  ;;  %v1356_v62 = vadd.f32 %v5081_v2, %v1261_v24 }
 0x27a   :  { %v4066_v32 = vpop.f32.mrf.mxu0 }
 0x27b   :  { %v1355_v33 = vadd.f32 %v5081_v2, %v1256_v29  ;;  %v1271_v34 = vadd.f32 %v5096_v26, %v4066_v32  ;;  %4174 = vmatprep.mubr.msk.f32.mxu0 %vm421_vm2, %v1385_v28  ;;  %v1388_v1 = vmax.f32 %v1356_v62, 0.0 }
 0x27c   :  { %v1037_v5 = vpop.f32.mrf.mxu0  ;;  %4175 = vmatmul.mubr.msk.f32.gmra.mxu0 %vm421_vm2, %v1386_v31 }
 0x27d   :  { %v1387_v37 = vmax.f32 %v1355_v33, 0.0  ;;  %v1266_v38 = vadd.f32 %v5108_v40, %v1037_v5  ;;  %v1358_v12 = vadd.f32 %v5081_v2, %v1271_v34  ;;  %v1772_v5 = vld [vmem:[%s5895_s1 + $0x118] sm:$0xff] }
 0x27e   :  { %v4069_v14 = vpop.f32.mrf.mxu0  ;;  %4209 = vmatprep.subr.mxu1 %v1772_v5 }
 0x27f   :  { %v1357_v20 = vadd.f32 %v5081_v2, %v1266_v38  ;;  %v1281_v15 = vadd.f32 %v5120_v43, %v4069_v14  ;;  %4177 = vmatprep.mubr.msk.f32.mxu0 %vm421_vm2, %v1387_v37  ;;  %v1390_v35 = vmax.f32 %v1358_v12, 0.0  ;;  %v1305_v43 = vpop.f32.mrf.mxu1  ;;  %4210 = vmatpush3.msra.mxu1 %v1772_v5  ;;  %v1769_v37 = vld [vmem:[%s5895_s1 + $0x100] sm:$0xff]  ;;  %v2376_v38 = vld [vmem:[%s5895_s1 + $0x1a8] sm:$0xff] }
 0x280   :  { %v1047_v26 = vpop.f32.mrf.mxu0  ;;  %4178 = vmatmul.mubr.msk.f32.gmra.mxu0 %vm421_vm2, %v1388_v1  ;;  %v5208_v1 = vld [vmem:[%s5895_s1 + $0xf8] ss:$0 sm:$0xff] }
 0x281   :  { %v1389_v25 = vmax.f32 %v1357_v20, 0.0  ;;  %v1276_v30 = vadd.f32 %v1275_v54, %v1047_v26  ;;  %v1360_v46 = vadd.f32 %v5081_v2, %v1281_v15  ;;  %v4133_v54 = vpop.f32.mrf.mxu1 }
 0x282   :  { %v4072_v40 = vpop.f32.mrf.mxu0 }
 0x283   :  { %v1359_v63 = vadd.f32 %v5081_v2, %v1276_v30  ;;  %v1291_v44 = vadd.f32 %v4124_v7, %v4072_v40  ;;  %4180 = vmatprep.mubr.msk.f32.mxu0 %vm421_vm2, %v1389_v25  ;;  %v1392_v0 = vmax.f32 %v1360_v46, 0.0  ;;  %v1315_v7 = vpop.f32.mrf.mxu1  ;;  %v2375_v40 = vld [vmem:[%s5895_s1 + $0x1a0] sm:$0xff] }
 0x284   :  { %v1057_v3 = vpop.f32.mrf.mxu0  ;;  %4181 = vmatmul.mubr.msk.f32.gmra.mxu0 %vm421_vm2, %v1390_v35 }
 0x285   :  { %v1391_v45 = vmax.f32 %v1359_v63, 0.0  ;;  %v1286_v42 = vadd.f32 %v1285_v17, %v1057_v3  ;;  %v1362_v39 = vadd.f32 %v5081_v2, %v1291_v44  ;;  %v4136_v17 = vpop.f32.mrf.mxu1 }
 0x286   :  { %v4075_v47 = vpop.f32.mrf.mxu0 }
 0x287   :  { %v1361_v48 = vadd.f32 %v5081_v2, %v1286_v42  ;;  %v1301_v49 = vadd.f32 %v4127_v27, %v4075_v47  ;;  %4183 = vmatprep.mubr.msk.f32.mxu0 %vm421_vm2, %v1391_v45  ;;  %v1394_v56 = vmax.f32 %v1362_v39, 0.0  ;;  %v1325_v61 = vpop.f32.mrf.mxu1 }
 0x288   :  { %v1067_v51 = vpop.f32.mrf.mxu0  ;;  %4184 = vmatmul.mubr.msk.f32.gmra.mxu0 %vm421_vm2, %v1392_v0  ;;  %v2374_v0 = vld [vmem:[%s5895_s1 + $0x198] sm:$0xff] }
 0x289   :  { %v1393_v52 = vmax.f32 %v1361_v48, 0.0  ;;  %v1296_v53 = vadd.f32 %v1295_v36, %v1067_v51  ;;  %v1364_v58 = vadd.f32 %v5081_v2, %v1301_v49  ;;  %v1770_v36 = vld [vmem:[%s5895_s1 + $0x108] sm:$0xff] }
 0x28a   :  { %v4078_v57 = vpop.f32.mrf.mxu0 }
 0x28b   :  { %v1363_v50 = vadd.f32 %v5081_v2, %v1296_v53  ;;  %v1311_v4 = vadd.f32 %v4130_v55, %v4078_v57  ;;  %4186 = vmatprep.mubr.msk.f32.mxu0 %vm421_vm2, %v1393_v52  ;;  %v1396_v9 = vmax.f32 %v1364_v58, 0.0  ;;  %v2373_v52 = vld [vmem:[%s5895_s1 + $0x190] sm:$0xff] }
 0x28c   :  { %v1077_v6 = vpop.f32.mrf.mxu0  ;;  %4187 = vmatmul.mubr.msk.f32.gmra.mxu0 %vm421_vm2, %v1394_v56 }
 0x28d   :  { %v1395_v8 = vmax.f32 %v1363_v50, 0.0  ;;  %v1306_v41 = vadd.f32 %v1305_v43, %v1077_v6  ;;  %v1366_v10 = vadd.f32 %v5081_v2, %v1311_v4 }
 0x28e   :  { %v4081_v11 = vpop.f32.mrf.mxu0 }
 0x28f   :  { %v1365_v13 = vadd.f32 %v5081_v2, %v1306_v41  ;;  %v1321_v16 = vadd.f32 %v4133_v54, %v4081_v11  ;;  %4189 = vmatprep.mubr.msk.f32.mxu0 %vm421_vm2, %v1395_v8  ;;  %v1398_v21 = vmax.f32 %v1366_v10, 0.0 }
 0x290   :  { %v1087_v59 = vpop.f32.mrf.mxu0  ;;  %4190 = vmatmul.mubr.msk.f32.gmra.mxu0 %vm421_vm2, %v1396_v9 }
 0x291   :  { %v1397_v18 = vmax.f32 %v1365_v13, 0.0  ;;  %v1316_v19 = vadd.f32 %v1315_v7, %v1087_v59  ;;  %v1368_v60 = vadd.f32 %v5081_v2, %v1321_v16 }
 0x292   :  { %v4084_v22 = vpop.f32.mrf.mxu0 }
 0x293   :  { %v1367_v23 = vadd.f32 %v5081_v2, %v1316_v19  ;;  %v1331_v24 = vadd.f32 %v4136_v17, %v4084_v22  ;;  %4192 = vmatprep.mubr.msk.f32.mxu0 %vm421_vm2, %v1397_v18  ;;  %v1400_v31 = vmax.f32 %v1368_v60, 0.0 }
 0x294   :  { %v1097_v27 = vpop.f32.mrf.mxu0  ;;  %4193 = vmatmul.mubr.msk.f32.gmra.mxu0 %vm421_vm2, %v1398_v21 }
 0x295   :  { %v1399_v28 = vmax.f32 %v1367_v23, 0.0  ;;  %v1326_v29 = vadd.f32 %v1325_v61, %v1097_v27  ;;  %v1370_v62 = vadd.f32 %v5081_v2, %v1331_v24 }
 0x297   :  { %v1369_v32 = vadd.f32 %v5081_v2, %v1326_v29  ;;  %4195 = vmatprep.mubr.msk.f32.mxu0 %vm421_vm2, %v1399_v28  ;;  %v1402_v34 = vmax.f32 %v1370_v62, 0.0  ;;  %v1771_v2 = vld [vmem:[%s5895_s1 + $0x110] sm:$0xff] }
 0x298   :  { %4196 = vmatmul.mubr.msk.f32.gmra.mxu0 %vm421_vm2, %v1400_v31  ;;  %4211 = vmatprep.subr.mxu1 %v1771_v2 }
 0x299   :  { %v1401_v33 = vmax.f32 %v1369_v32, 0.0  ;;  %4212 = vmatpush3.msra.mxu1 %v1771_v2 }
 0x29a   :  { %4213 = vmatprep.subr.mxu1 %v1770_v36 }
 0x29b   :  { %4198 = vmatprep.mubr.msk.f32.mxu0 %vm421_vm2, %v1401_v33  ;;  %4214 = vmatpush3.msra.mxu1 %v1770_v36 }
 0x29c   :  { %4199 = vmatmul.mubr.msk.f32.gmra.mxu0 %vm421_vm2, %v1402_v34  ;;  %4215 = vmatprep.subr.mxu1 %v1769_v37 }
 0x29d   :  { %4216 = vmatpush3.msra.mxu1 %v1769_v37 }
 0x29e   :  { %4329 = vmatprep.subr.mxu1 %v2376_v38 }
 0x320   :  { %v4155_v12 = vpop.f32.mrf.mxu0 }
 0x321   :  { %v1584_v14 = vadd.f32 %v4155_v12, %v5208_v1 }
 0x322   :  { %v1578_v20 = vpop.f32.mrf.mxu0 }
 0x323   :  { %v1579_v15 = vadd.f32 %v5208_v1, %v1578_v20  ;;  %v1738_v25 = vmax.f32 %v1584_v14, 0.0 }
 0x324   :  { %v4158_v26 = vpop.f32.mrf.mxu0 }
 0x325   :  { %v1737_v55 = vmax.f32 %v1579_v15, 0.0  ;;  %v1594_v30 = vadd.f32 %v4158_v26, %v5208_v1 }
 0x326   :  { %v1588_v35 = vpop.f32.mrf.mxu0 }
 0x327   :  { %v1589_v46 = vadd.f32 %v5208_v1, %v1588_v35  ;;  %4217 = vmatprep.mubr.msk.f32.mxu1 %vm421_vm2, %v1737_v55  ;;  %4281 = vmatprep.mubr.msk.f32.mxu0 %vm421_vm2, %v1737_v55  ;;  %v1740_v3 = vmax.f32 %v1594_v30, 0.0 }
 0x328   :  { %v4161_v63 = vpop.f32.mrf.mxu0  ;;  %4218 = vmatmul.mubr.msk.f32.vlgmr.msra.gmra.mxu1 %vm421_vm2, %v1738_v25  ;;  %4282 = vmatmul.mubr.msk.f32.vlgmr.msra.gmra.mxu0 %vm421_vm2, %v1738_v25 }
 0x329   :  { %v1739_v44 = vmax.f32 %v1589_v46, 0.0  ;;  %4330 = vmatpush3.msra.mxu1 %v2376_v38  ;;  %v1604_v43 = vadd.f32 %v4161_v63, %v5208_v1 }
 0x32a   :  { %v1598_v45 = vpop.f32.mrf.mxu0  ;;  %4331 = vmatprep.subr.mxu1 %v2375_v40 }
 0x32b   :  { %v1599_v42 = vadd.f32 %v5208_v1, %v1598_v45  ;;  %4220 = vmatprep.mubr.msk.f32.mxu1 %vm421_vm2, %v1739_v44  ;;  %4284 = vmatprep.mubr.msk.f32.mxu0 %vm421_vm2, %v1739_v44  ;;  %v1742_v48 = vmax.f32 %v1604_v43, 0.0 }
 0x32c   :  { %v4164_v39 = vpop.f32.mrf.mxu0  ;;  %4221 = vmatmul.mubr.msk.f32.gmra.mxu1 %vm421_vm2, %v1740_v3  ;;  %4285 = vmatmul.mubr.msk.f32.gmra.mxu0 %vm421_vm2, %v1740_v3 }
 0x32d   :  { %v1741_v47 = vmax.f32 %v1599_v42, 0.0  ;;  %4332 = vmatpush3.msra.mxu1 %v2375_v40  ;;  %v1614_v49 = vadd.f32 %v4164_v39, %v5208_v1 }
 0x32e   :  { %v1608_v51 = vpop.f32.mrf.mxu0  ;;  %4333 = vmatprep.subr.mxu1 %v2374_v0 }
 0x32f   :  { %v1609_v54 = vadd.f32 %v5208_v1, %v1608_v51  ;;  %4223 = vmatprep.mubr.msk.f32.mxu1 %vm421_vm2, %v1741_v47  ;;  %4287 = vmatprep.mubr.msk.f32.mxu0 %vm421_vm2, %v1741_v47  ;;  %v1744_v58 = vmax.f32 %v1614_v49, 0.0 }
 0x330   :  { %v4167_v53 = vpop.f32.mrf.mxu0  ;;  %4224 = vmatmul.mubr.msk.f32.gmra.mxu1 %vm421_vm2, %v1742_v48  ;;  %4288 = vmatmul.mubr.msk.f32.gmra.mxu0 %vm421_vm2, %v1742_v48 }
 0x331   :  { %v1743_v56 = vmax.f32 %v1609_v54, 0.0  ;;  %4334 = vmatpush3.msra.mxu1 %v2374_v0  ;;  %v1624_v57 = vadd.f32 %v4167_v53, %v5208_v1 }
 0x332   :  { %v1618_v50 = vpop.f32.mrf.mxu0  ;;  %4335 = vmatprep.subr.mxu1 %v2373_v52 }
 0x333   :  { %v1619_v4 = vadd.f32 %v5208_v1, %v1618_v50  ;;  %4226 = vmatprep.mubr.msk.f32.mxu1 %vm421_vm2, %v1743_v56  ;;  %4290 = vmatprep.mubr.msk.f32.mxu0 %vm421_vm2, %v1743_v56  ;;  %v1746_v8 = vmax.f32 %v1624_v57, 0.0 }
 0x334   :  { %v4170_v6 = vpop.f32.mrf.mxu0  ;;  %4227 = vmatmul.mubr.msk.f32.gmra.mxu1 %vm421_vm2, %v1744_v58  ;;  %4291 = vmatmul.mubr.msk.f32.gmra.mxu0 %vm421_vm2, %v1744_v58 }
 0x335   :  { %v1745_v7 = vmax.f32 %v1619_v4, 0.0  ;;  %4336 = vmatpush3.msra.mxu1 %v2373_v52  ;;  %v1634_v41 = vadd.f32 %v4170_v6, %v5208_v1 }
 0x336   :  { %v1628_v9 = vpop.f32.mrf.mxu0 }
 0x337   :  { %v1629_v10 = vadd.f32 %v5208_v1, %v1628_v9  ;;  %4229 = vmatprep.mubr.msk.f32.mxu1 %vm421_vm2, %v1745_v7  ;;  %4293 = vmatprep.mubr.msk.f32.mxu0 %vm421_vm2, %v1745_v7  ;;  %v1748_v16 = vmax.f32 %v1634_v41, 0.0 }
 0x338   :  { %v4173_v11 = vpop.f32.mrf.mxu0  ;;  %4230 = vmatmul.mubr.msk.f32.gmra.mxu1 %vm421_vm2, %v1746_v8  ;;  %4294 = vmatmul.mubr.msk.f32.gmra.mxu0 %vm421_vm2, %v1746_v8 }
 0x339   :  { %v1747_v13 = vmax.f32 %v1629_v10, 0.0  ;;  %v1644_v59 = vadd.f32 %v4173_v11, %v5208_v1  ;;  %v2738_v10 = vld [vmem:[%s5895_s1 + $0x1c8] sm:$0xff]  ;;  %v2737_v11 = vld [vmem:[%s5895_s1 + $0x1c0] sm:$0xff] }
 0x33a   :  { %v1638_v17 = vpop.f32.mrf.mxu0 }
 0x33b   :  { %v1639_v18 = vadd.f32 %v5208_v1, %v1638_v17  ;;  %4232 = vmatprep.mubr.msk.f32.mxu1 %vm421_vm2, %v1747_v13  ;;  %4296 = vmatprep.mubr.msk.f32.mxu0 %vm421_vm2, %v1747_v13  ;;  %v1750_v60 = vmax.f32 %v1644_v59, 0.0  ;;  %v2736_v13 = vld [vmem:[%s5895_s1 + $0x1b8] sm:$0xff] }
 0x33c   :  { %v4176_v19 = vpop.f32.mrf.mxu0  ;;  %4233 = vmatmul.mubr.msk.f32.gmra.mxu1 %vm421_vm2, %v1748_v16  ;;  %4297 = vmatmul.mubr.msk.f32.gmra.mxu0 %vm421_vm2, %v1748_v16  ;;  %v5330_v16 = vld [vmem:[%s5895_s1 + $0x188] ss:$0 sm:$0xff] }
 0x33d   :  { %v1749_v21 = vmax.f32 %v1639_v18, 0.0  ;;  %v1654_v22 = vadd.f32 %v4176_v19, %v5208_v1 }
 0x33e   :  { %v1648_v23 = vpop.f32.mrf.mxu0 }
 0x33f   :  { %v1649_v24 = vadd.f32 %v5208_v1, %v1648_v23  ;;  %4235 = vmatprep.mubr.msk.f32.mxu1 %vm421_vm2, %v1749_v21  ;;  %4299 = vmatprep.mubr.msk.f32.mxu0 %vm421_vm2, %v1749_v21  ;;  %v1752_v28 = vmax.f32 %v1654_v22, 0.0 }
 0x340   :  { %v4179_v61 = vpop.f32.mrf.mxu0  ;;  %4236 = vmatmul.mubr.msk.f32.gmra.mxu1 %vm421_vm2, %v1750_v60  ;;  %4300 = vmatmul.mubr.msk.f32.gmra.mxu0 %vm421_vm2, %v1750_v60 }
 0x341   :  { %v1751_v27 = vmax.f32 %v1649_v24, 0.0  ;;  %v1664_v29 = vadd.f32 %v4179_v61, %v5208_v1 }
 0x342   :  { %v1658_v31 = vpop.f32.mrf.mxu0 }
 0x343   :  { %v1659_v62 = vadd.f32 %v5208_v1, %v1658_v31  ;;  %4238 = vmatprep.mubr.msk.f32.mxu1 %vm421_vm2, %v1751_v27  ;;  %4302 = vmatprep.mubr.msk.f32.mxu0 %vm421_vm2, %v1751_v27  ;;  %v1754_v34 = vmax.f32 %v1664_v29, 0.0 }
 0x344   :  { %v4182_v32 = vpop.f32.mrf.mxu0  ;;  %4239 = vmatmul.mubr.msk.f32.gmra.mxu1 %vm421_vm2, %v1752_v28  ;;  %4303 = vmatmul.mubr.msk.f32.gmra.mxu0 %vm421_vm2, %v1752_v28 }
 0x345   :  { %v1753_v33 = vmax.f32 %v1659_v62, 0.0  ;;  %v1674_v5 = vadd.f32 %v4182_v32, %v5208_v1 }
 0x346   :  { %v1668_v2 = vpop.f32.mrf.mxu0 }
 0x347   :  { %v1669_v36 = vadd.f32 %v5208_v1, %v1668_v2  ;;  %4241 = vmatprep.mubr.msk.f32.mxu1 %vm421_vm2, %v1753_v33  ;;  %4305 = vmatprep.mubr.msk.f32.mxu0 %vm421_vm2, %v1753_v33  ;;  %v1756_v12 = vmax.f32 %v1674_v5, 0.0 }
 0x348   :  { %v4185_v37 = vpop.f32.mrf.mxu0  ;;  %4242 = vmatmul.mubr.msk.f32.gmra.mxu1 %vm421_vm2, %v1754_v34  ;;  %4306 = vmatmul.mubr.msk.f32.gmra.mxu0 %vm421_vm2, %v1754_v34 }
 0x349   :  { %v1755_v38 = vmax.f32 %v1669_v36, 0.0  ;;  %v1684_v14 = vadd.f32 %v4185_v37, %v5208_v1 }
 0x34a   :  { %v1678_v20 = vpop.f32.mrf.mxu0 }
 0x34b   :  { %v1679_v15 = vadd.f32 %v5208_v1, %v1678_v20  ;;  %4244 = vmatprep.mubr.msk.f32.mxu1 %vm421_vm2, %v1755_v38  ;;  %4308 = vmatprep.mubr.msk.f32.mxu0 %vm421_vm2, %v1755_v38  ;;  %v1758_v25 = vmax.f32 %v1684_v14, 0.0 }
 0x34c   :  { %v4188_v26 = vpop.f32.mrf.mxu0  ;;  %4245 = vmatmul.mubr.msk.f32.gmra.mxu1 %vm421_vm2, %v1756_v12  ;;  %4309 = vmatmul.mubr.msk.f32.gmra.mxu0 %vm421_vm2, %v1756_v12 }
 0x34d   :  { %v1757_v55 = vmax.f32 %v1679_v15, 0.0  ;;  %v1694_v30 = vadd.f32 %v4188_v26, %v5208_v1 }
 0x34e   :  { %v1688_v35 = vpop.f32.mrf.mxu0 }
 0x34f   :  { %v1689_v46 = vadd.f32 %v5208_v1, %v1688_v35  ;;  %4247 = vmatprep.mubr.msk.f32.mxu1 %vm421_vm2, %v1757_v55  ;;  %4311 = vmatprep.mubr.msk.f32.mxu0 %vm421_vm2, %v1757_v55  ;;  %v1760_v44 = vmax.f32 %v1694_v30, 0.0 }
 0x350   :  { %v4191_v40 = vpop.f32.mrf.mxu0  ;;  %4248 = vmatmul.mubr.msk.f32.gmra.mxu1 %vm421_vm2, %v1758_v25  ;;  %4312 = vmatmul.mubr.msk.f32.gmra.mxu0 %vm421_vm2, %v1758_v25 }
 0x351   :  { %v1759_v63 = vmax.f32 %v1689_v46, 0.0  ;;  %v1704_v3 = vadd.f32 %v4191_v40, %v5208_v1 }
 0x352   :  { %v1698_v43 = vpop.f32.mrf.mxu0 }
 0x353   :  { %v1699_v45 = vadd.f32 %v5208_v1, %v1698_v43  ;;  %4250 = vmatprep.mubr.msk.f32.mxu1 %vm421_vm2, %v1759_v63  ;;  %4314 = vmatprep.mubr.msk.f32.mxu0 %vm421_vm2, %v1759_v63  ;;  %v1762_v39 = vmax.f32 %v1704_v3, 0.0 }
 0x354   :  { %v4194_v42 = vpop.f32.mrf.mxu0  ;;  %4251 = vmatmul.mubr.msk.f32.gmra.mxu1 %vm421_vm2, %v1760_v44  ;;  %4315 = vmatmul.mubr.msk.f32.gmra.mxu0 %vm421_vm2, %v1760_v44 }
 0x355   :  { %v1761_v0 = vmax.f32 %v1699_v45, 0.0  ;;  %v1714_v47 = vadd.f32 %v4194_v42, %v5208_v1 }
 0x356   :  { %v1708_v48 = vpop.f32.mrf.mxu0 }
 0x357   :  { %v1709_v49 = vadd.f32 %v5208_v1, %v1708_v48  ;;  %4253 = vmatprep.mubr.msk.f32.mxu1 %vm421_vm2, %v1761_v0  ;;  %4317 = vmatprep.mubr.msk.f32.mxu0 %vm421_vm2, %v1761_v0  ;;  %v1764_v52 = vmax.f32 %v1714_v47, 0.0 }
 0x358   :  { %v4197_v51 = vpop.f32.mrf.mxu0  ;;  %4254 = vmatmul.mubr.msk.f32.gmra.mxu1 %vm421_vm2, %v1762_v39  ;;  %4318 = vmatmul.mubr.msk.f32.gmra.mxu0 %vm421_vm2, %v1762_v39 }
 0x359   :  { %v1763_v54 = vmax.f32 %v1709_v49, 0.0  ;;  %v1724_v53 = vadd.f32 %v4197_v51, %v5208_v1 }
 0x35a   :  { %v1718_v56 = vpop.f32.mrf.mxu0 }
 0x35b   :  { %v1719_v58 = vadd.f32 %v5208_v1, %v1718_v56  ;;  %4256 = vmatprep.mubr.msk.f32.mxu1 %vm421_vm2, %v1763_v54  ;;  %4320 = vmatprep.mubr.msk.f32.mxu0 %vm421_vm2, %v1763_v54  ;;  %v1766_v4 = vmax.f32 %v1724_v53, 0.0 }
 0x35c   :  { %v4200_v57 = vpop.f32.mrf.mxu0  ;;  %4257 = vmatmul.mubr.msk.f32.gmra.mxu1 %vm421_vm2, %v1764_v52  ;;  %4321 = vmatmul.mubr.msk.f32.gmra.mxu0 %vm421_vm2, %v1764_v52 }
 0x35d   :  { %v1765_v50 = vmax.f32 %v1719_v58, 0.0  ;;  %v1734_v6 = vadd.f32 %v4200_v57, %v5208_v1 }
 0x35e   :  { %v1728_v7 = vpop.f32.mrf.mxu0 }
 0x35f   :  { %v1729_v8 = vadd.f32 %v5208_v1, %v1728_v7  ;;  %4259 = vmatprep.mubr.msk.f32.mxu1 %vm421_vm2, %v1765_v50  ;;  %4323 = vmatprep.mubr.msk.f32.mxu0 %vm421_vm2, %v1765_v50  ;;  %v1768_v9 = vmax.f32 %v1734_v6, 0.0  ;;  %v2739_v1 = vld [vmem:[%s5895_s1 + $0x1d0] sm:$0xff] }
 0x360   :  { %4260 = vmatmul.mubr.msk.f32.gmra.mxu1 %vm421_vm2, %v1766_v4  ;;  %4324 = vmatmul.mubr.msk.f32.gmra.mxu0 %vm421_vm2, %v1766_v4 }
 0x361   :  { %v1767_v41 = vmax.f32 %v1729_v8, 0.0  ;;  %4385 = vmatprep.subr.mxu0 %v2739_v1 }
 0x362   :  { %4386 = vmatpush3.msra.mxu0 %v2739_v1 }
 0x363   :  { %4262 = vmatprep.mubr.msk.f32.mxu1 %vm421_vm2, %v1767_v41  ;;  %4326 = vmatprep.mubr.msk.f32.mxu0 %vm421_vm2, %v1767_v41 }
 0x364   :  { %4263 = vmatmul.mubr.msk.f32.gmra.mxu1 %vm421_vm2, %v1768_v9  ;;  %4327 = vmatmul.mubr.msk.f32.gmra.mxu0 %vm421_vm2, %v1768_v9 }
 0x365   :  { %4387 = vmatprep.subr.mxu0 %v2738_v10 }
 0x366   :  { %4388 = vmatpush3.msra.mxu0 %v2738_v10 }
 0x367   :  { %4389 = vmatprep.subr.mxu0 %v2737_v11 }
 0x368   :  { %4390 = vmatpush3.msra.mxu0 %v2737_v11 }
 0x369   :  { %4391 = vmatprep.subr.mxu0 %v2736_v13 }
 0x36a   :  { %4392 = vmatpush3.msra.mxu0 %v2736_v13 }
 0x3e8   :  { %v4283_v59 = vpop.f32.mrf.mxu0 }
 0x3e9   :  { %v2188_v17 = vadd.f32 %v4283_v59, %v5330_v16 }
 0x3ea   :  { %v2182_v18 = vpop.f32.mrf.mxu0 }
 0x3eb   :  { %v2183_v19 = vadd.f32 %v5330_v16, %v2182_v18  ;;  %v2342_v22 = vmax.f32 %v2188_v17, 0.0 }
 0x3ec   :  { %v4286_v21 = vpop.f32.mrf.mxu0 }
 0x3ed   :  { %v2341_v60 = vmax.f32 %v2183_v19, 0.0  ;;  %v2198_v23 = vadd.f32 %v4286_v21, %v5330_v16 }
 0x3ee   :  { %v2192_v24 = vpop.f32.mrf.mxu0 }
 0x3ef   :  { %v2193_v61 = vadd.f32 %v5330_v16, %v2192_v24  ;;  %4337 = vmatprep.mubr.msk.f32.mxu1 %vm2382_vm3, %v2341_v60  ;;  %v2344_v29 = vmax.f32 %v2198_v23, 0.0 }
 0x3f0   :  { %v4289_v27 = vpop.f32.mrf.mxu0  ;;  %4338 = vmatmul.mubr.msk.f32.vlgmr.msra.gmra.mxu1 %vm2382_vm3, %v2342_v22 }
 0x3f1   :  { %v2343_v28 = vmax.f32 %v2193_v61, 0.0  ;;  %v2208_v31 = vadd.f32 %v4289_v27, %v5330_v16 }
 0x3f2   :  { %v2202_v62 = vpop.f32.mrf.mxu0 }
 0x3f3   :  { %v2203_v32 = vadd.f32 %v5330_v16, %v2202_v62  ;;  %4340 = vmatprep.mubr.msk.f32.mxu1 %vm2382_vm3, %v2343_v28  ;;  %v2346_v5 = vmax.f32 %v2208_v31, 0.0 }
 0x3f4   :  { %v4292_v33 = vpop.f32.mrf.mxu0  ;;  %4341 = vmatmul.mubr.msk.f32.gmra.mxu1 %vm2382_vm3, %v2344_v29 }
 0x3f5   :  { %v2345_v34 = vmax.f32 %v2203_v32, 0.0  ;;  %v2218_v2 = vadd.f32 %v4292_v33, %v5330_v16 }
 0x3f6   :  { %v2212_v36 = vpop.f32.mrf.mxu0 }
 0x3f7   :  { %v2213_v37 = vadd.f32 %v5330_v16, %v2212_v36  ;;  %4343 = vmatprep.mubr.msk.f32.mxu1 %vm2382_vm3, %v2345_v34  ;;  %v2348_v14 = vmax.f32 %v2218_v2, 0.0 }
 0x3f8   :  { %v4295_v38 = vpop.f32.mrf.mxu0  ;;  %4344 = vmatmul.mubr.msk.f32.gmra.mxu1 %vm2382_vm3, %v2346_v5 }
 0x3f9   :  { %v2347_v12 = vmax.f32 %v2213_v37, 0.0  ;;  %v2228_v20 = vadd.f32 %v4295_v38, %v5330_v16 }
 0x3fa   :  { %v2222_v15 = vpop.f32.mrf.mxu0 }
 0x3fb   :  { %v2223_v26 = vadd.f32 %v5330_v16, %v2222_v15  ;;  %4346 = vmatprep.mubr.msk.f32.mxu1 %vm2382_vm3, %v2347_v12  ;;  %v2350_v30 = vmax.f32 %v2228_v20, 0.0 }
 0x3fc   :  { %v4298_v55 = vpop.f32.mrf.mxu0  ;;  %4347 = vmatmul.mubr.msk.f32.gmra.mxu1 %vm2382_vm3, %v2348_v14 }
 0x3fd   :  { %v2349_v25 = vmax.f32 %v2223_v26, 0.0  ;;  %v2238_v35 = vadd.f32 %v4298_v55, %v5330_v16 }
 0x3fe   :  { %v2232_v46 = vpop.f32.mrf.mxu0 }
 0x3ff   :  { %v2233_v40 = vadd.f32 %v5330_v16, %v2232_v46  ;;  %4349 = vmatprep.mubr.msk.f32.mxu1 %vm2382_vm3, %v2349_v25  ;;  %v2352_v3 = vmax.f32 %v2238_v35, 0.0 }
 0x400   :  { %v4301_v63 = vpop.f32.mrf.mxu0  ;;  %4350 = vmatmul.mubr.msk.f32.gmra.mxu1 %vm2382_vm3, %v2350_v30 }
 0x401   :  { %v2351_v44 = vmax.f32 %v2233_v40, 0.0  ;;  %v2248_v43 = vadd.f32 %v4301_v63, %v5330_v16  ;;  %v5396_v40 = vpop.f32.mrf.mxu1 }
 0x402   :  { %v2242_v45 = vpop.f32.mrf.mxu0 }
 0x403   :  { %v2243_v42 = vadd.f32 %v5330_v16, %v2242_v45  ;;  %4352 = vmatprep.mubr.msk.f32.mxu1 %vm2382_vm3, %v2351_v44  ;;  %v2354_v47 = vmax.f32 %v2248_v43, 0.0  ;;  %v5398_v63 = vpop.f32.mrf.mxu1 }
 0x404   :  { %v4304_v0 = vpop.f32.mrf.mxu0  ;;  %4353 = vmatmul.mubr.msk.f32.gmra.mxu1 %vm2382_vm3, %v2352_v3 }
 0x405   :  { %v2353_v39 = vmax.f32 %v2243_v42, 0.0  ;;  %v2258_v48 = vadd.f32 %v4304_v0, %v5330_v16  ;;  %v5400_v44 = vpop.f32.mrf.mxu1 }
 0x406   :  { %v2252_v49 = vpop.f32.mrf.mxu0 }
 0x407   :  { %v2253_v51 = vadd.f32 %v5330_v16, %v2252_v49  ;;  %4355 = vmatprep.mubr.msk.f32.mxu1 %vm2382_vm3, %v2353_v39  ;;  %v2356_v53 = vmax.f32 %v2258_v48, 0.0  ;;  %v5402_v3 = vpop.f32.mrf.mxu1 }
 0x408   :  { %v4307_v54 = vpop.f32.mrf.mxu0  ;;  %4356 = vmatmul.mubr.msk.f32.gmra.mxu1 %vm2382_vm3, %v2354_v47 }
 0x409   :  { %v2355_v52 = vmax.f32 %v2253_v51, 0.0  ;;  %v2268_v56 = vadd.f32 %v4307_v54, %v5330_v16  ;;  %v5404_v43 = vpop.f32.mrf.mxu1 }
 0x40a   :  { %v2262_v58 = vpop.f32.mrf.mxu0 }
 0x40b   :  { %v2263_v57 = vadd.f32 %v5330_v16, %v2262_v58  ;;  %4358 = vmatprep.mubr.msk.f32.mxu1 %vm2382_vm3, %v2355_v52  ;;  %v2358_v6 = vmax.f32 %v2268_v56, 0.0 }
 0x40c   :  { %v4310_v50 = vpop.f32.mrf.mxu0  ;;  %4359 = vmatmul.mubr.msk.f32.gmra.mxu1 %vm2382_vm3, %v2356_v53 }
 0x40d   :  { %v2357_v4 = vmax.f32 %v2263_v57, 0.0  ;;  %v2278_v7 = vadd.f32 %v4310_v50, %v5330_v16 }
 0x40e   :  { %v2272_v8 = vpop.f32.mrf.mxu0 }
 0x40f   :  { %v2273_v41 = vadd.f32 %v5330_v16, %v2272_v8  ;;  %4361 = vmatprep.mubr.msk.f32.mxu1 %vm2382_vm3, %v2357_v4  ;;  %v2360_v10 = vmax.f32 %v2278_v7, 0.0 }
 0x410   :  { %v4313_v9 = vpop.f32.mrf.mxu0  ;;  %4362 = vmatmul.mubr.msk.f32.gmra.mxu1 %vm2382_vm3, %v2358_v6 }
 0x411   :  { %v2359_v1 = vmax.f32 %v2273_v41, 0.0  ;;  %v2288_v11 = vadd.f32 %v4313_v9, %v5330_v16 }
 0x412   :  { %v2282_v13 = vpop.f32.mrf.mxu0 }
 0x413   :  { %v2283_v59 = vadd.f32 %v5330_v16, %v2282_v13  ;;  %4364 = vmatprep.mubr.msk.f32.mxu1 %vm2382_vm3, %v2359_v1  ;;  %v2362_v19 = vmax.f32 %v2288_v11, 0.0 }
 0x414   :  { %v4316_v17 = vpop.f32.mrf.mxu0  ;;  %4365 = vmatmul.mubr.msk.f32.gmra.mxu1 %vm2382_vm3, %v2360_v10 }
 0x415   :  { %v2361_v18 = vmax.f32 %v2283_v59, 0.0  ;;  %v2298_v21 = vadd.f32 %v4316_v17, %v5330_v16  ;;  %v5463_v17 = vld [vmem:[%s5895_s1 + $0x1b0] ss:$0 sm:$0xff] }
 0x416   :  { %v2292_v60 = vpop.f32.mrf.mxu0 }
 0x417   :  { %v2293_v22 = vadd.f32 %v5330_v16, %v2292_v60  ;;  %4367 = vmatprep.mubr.msk.f32.mxu1 %vm2382_vm3, %v2361_v18  ;;  %v2364_v61 = vmax.f32 %v2298_v21, 0.0 }
 0x418   :  { %v4319_v23 = vpop.f32.mrf.mxu0  ;;  %4368 = vmatmul.mubr.msk.f32.gmra.mxu1 %vm2382_vm3, %v2362_v19 }
 0x419   :  { %v2363_v24 = vmax.f32 %v2293_v22, 0.0  ;;  %v2308_v27 = vadd.f32 %v4319_v23, %v5330_v16 }
 0x41a   :  { %v2302_v28 = vpop.f32.mrf.mxu0 }
 0x41b   :  { %v2303_v29 = vadd.f32 %v5330_v16, %v2302_v28  ;;  %4370 = vmatprep.mubr.msk.f32.mxu1 %vm2382_vm3, %v2363_v24  ;;  %v2366_v32 = vmax.f32 %v2308_v27, 0.0 }
 0x41c   :  { %v4322_v31 = vpop.f32.mrf.mxu0  ;;  %4371 = vmatmul.mubr.msk.f32.gmra.mxu1 %vm2382_vm3, %v2364_v61 }
 0x41d   :  { %v2365_v62 = vmax.f32 %v2303_v29, 0.0  ;;  %v2318_v33 = vadd.f32 %v4322_v31, %v5330_v16 }
 0x41e   :  { %v2312_v34 = vpop.f32.mrf.mxu0 }
 0x41f   :  { %v2313_v5 = vadd.f32 %v5330_v16, %v2312_v34  ;;  %4373 = vmatprep.mubr.msk.f32.mxu1 %vm2382_vm3, %v2365_v62  ;;  %v2368_v37 = vmax.f32 %v2318_v33, 0.0 }
 0x420   :  { %v4325_v2 = vpop.f32.mrf.mxu0  ;;  %4374 = vmatmul.mubr.msk.f32.gmra.mxu1 %vm2382_vm3, %v2366_v32 }
 0x421   :  { %v2367_v36 = vmax.f32 %v2313_v5, 0.0  ;;  %v2328_v38 = vadd.f32 %v4325_v2, %v5330_v16 }
 0x422   :  { %v2322_v12 = vpop.f32.mrf.mxu0 }
 0x423   :  { %v2323_v14 = vadd.f32 %v5330_v16, %v2322_v12  ;;  %4376 = vmatprep.mubr.msk.f32.mxu1 %vm2382_vm3, %v2367_v36  ;;  %v2370_v26 = vmax.f32 %v2328_v38, 0.0 }
 0x424   :  { %v4328_v20 = vpop.f32.mrf.mxu0  ;;  %4377 = vmatmul.mubr.msk.f32.gmra.mxu1 %vm2382_vm3, %v2368_v37 }
 0x425   :  { %v2369_v15 = vmax.f32 %v2323_v14, 0.0  ;;  %v2338_v55 = vadd.f32 %v4328_v20, %v5330_v16 }
 0x426   :  { %v2332_v25 = vpop.f32.mrf.mxu0 }
 0x427   :  { %v2333_v30 = vadd.f32 %v5330_v16, %v2332_v25  ;;  %4379 = vmatprep.mubr.msk.f32.mxu1 %vm2382_vm3, %v2369_v15  ;;  %v2372_v46 = vmax.f32 %v2338_v55, 0.0  ;;  %v5406_v16 = vpop.f32.mrf.mxu1 }
 0x428   :  { %4380 = vmatmul.mubr.msk.f32.gmra.mxu1 %vm2382_vm3, %v2370_v26 }
 0x429   :  { %v2371_v35 = vmax.f32 %v2333_v30, 0.0  ;;  %v5408_v45 = vpop.f32.mrf.mxu1 }
 0x42b   :  { %4382 = vmatprep.mubr.msk.f32.mxu1 %vm2382_vm3, %v2371_v35  ;;  %v5410_v42 = vpop.f32.mrf.mxu1 }
 0x42c   :  { %4383 = vmatmul.mubr.msk.f32.gmra.mxu1 %vm2382_vm3, %v2372_v46 }
 0x42d   :  { %v5412_v0 = vpop.f32.mrf.mxu1 }
 0x42f   :  { %v5414_v39 = vpop.f32.mrf.mxu1 }
 0x431   :  { %v5416_v47 = vpop.f32.mrf.mxu1 }
 0x433   :  { %v5418_v48 = vpop.f32.mrf.mxu1 }
 0x435   :  { %v5420_v49 = vpop.f32.mrf.mxu1 }
 0x437   :  { %v5422_v51 = vpop.f32.mrf.mxu1 }
 0x439   :  { %v5424_v54 = vpop.f32.mrf.mxu1 }
 0x43b   :  { %v5426_v52 = vpop.f32.mrf.mxu1 }
 0x43d   :  { %v5428_v53 = vpop.f32.mrf.mxu1 }
 0x43f   :  { %v5430_v56 = vpop.f32.mrf.mxu1 }
 0x441   :  { %v5432_v58 = vpop.f32.mrf.mxu1 }
 0x443   :  { %v5434_v57 = vpop.f32.mrf.mxu1 }
 0x445   :  { %v5436_v50 = vpop.f32.mrf.mxu1 }
 0x447   :  { %v5438_v4 = vpop.f32.mrf.mxu1 }
 0x449   :  { %v5440_v6 = vpop.f32.mrf.mxu1 }
 0x44b   :  { %v5442_v7 = vpop.f32.mrf.mxu1 }
 0x44d   :  { %v5444_v8 = vpop.f32.mrf.mxu1 }
 0x44f   :  { %v5446_v41 = vpop.f32.mrf.mxu1 }
 0x451   :  { %v5448_v9 = vpop.f32.mrf.mxu1 }
 0x453   :  { %v5450_v1 = vpop.f32.mrf.mxu1 }
 0x455   :  { %v5452_v10 = vpop.f32.mrf.mxu1 }
 0x457   :  { %v5454_v11 = vpop.f32.mrf.mxu1 }
 0x459   :  { %v5456_v13 = vpop.f32.mrf.mxu1 }
 0x45b   :  { %v5458_v59 = vpop.f32.mrf.mxu1 }
 0x4b0   :  { %v4339_v18 = vpop.f32.mrf.mxu1 }
 0x4b1   :  { %v2551_v19 = vadd.f32 %v4339_v18, %v5463_v17 }
 0x4b2   :  { %v2545_v21 = vpop.f32.mrf.mxu1 }
 0x4b3   :  { %v2546_v60 = vadd.f32 %v5463_v17, %v2545_v21  ;;  %v2705_v24 = vmax.f32 %v2551_v19, 0.0 }
 0x4b4   :  { %v4342_v22 = vpop.f32.mrf.mxu1 }
 0x4b5   :  { %v2704_v23 = vmax.f32 %v2546_v60, 0.0  ;;  %v2561_v61 = vadd.f32 %v4342_v22, %v5463_v17 }
 0x4b6   :  { %v2555_v27 = vpop.f32.mrf.mxu1 }
 0x4b7   :  { %v2556_v28 = vadd.f32 %v5463_v17, %v2555_v27  ;;  %4393 = vmatprep.mubr.msk.f32.mxu0 %vm2382_vm3, %v2704_v23  ;;  %v2707_v62 = vmax.f32 %v2561_v61, 0.0 }
 0x4b8   :  { %v4345_v29 = vpop.f32.mrf.mxu1  ;;  %4394 = vmatmul.mubr.msk.f32.vlgmr.msra.gmra.mxu0 %vm2382_vm3, %v2705_v24 }
 0x4b9   :  { %v2706_v31 = vmax.f32 %v2556_v28, 0.0  ;;  %v2571_v32 = vadd.f32 %v4345_v29, %v5463_v17 }
 0x4ba   :  { %v2565_v33 = vpop.f32.mrf.mxu1 }
 0x4bb   :  { %v2566_v34 = vadd.f32 %v5463_v17, %v2565_v33  ;;  %4396 = vmatprep.mubr.msk.f32.mxu0 %vm2382_vm3, %v2706_v31  ;;  %v2709_v36 = vmax.f32 %v2571_v32, 0.0 }
 0x4bc   :  { %v4348_v5 = vpop.f32.mrf.mxu1  ;;  %4397 = vmatmul.mubr.msk.f32.gmra.mxu0 %vm2382_vm3, %v2707_v62 }
 0x4bd   :  { %v2708_v2 = vmax.f32 %v2566_v34, 0.0  ;;  %v2581_v37 = vadd.f32 %v4348_v5, %v5463_v17 }
 0x4be   :  { %v2575_v38 = vpop.f32.mrf.mxu1 }
 0x4bf   :  { %v2576_v12 = vadd.f32 %v5463_v17, %v2575_v38  ;;  %4399 = vmatprep.mubr.msk.f32.mxu0 %vm2382_vm3, %v2708_v2  ;;  %v2711_v15 = vmax.f32 %v2581_v37, 0.0 }
 0x4c0   :  { %v4351_v14 = vpop.f32.mrf.mxu1  ;;  %4400 = vmatmul.mubr.msk.f32.gmra.mxu0 %vm2382_vm3, %v2709_v36 }
 0x4c1   :  { %v2710_v20 = vmax.f32 %v2576_v12, 0.0  ;;  %v2591_v26 = vadd.f32 %v4351_v14, %v5463_v17 }
 0x4c2   :  { %v2585_v55 = vpop.f32.mrf.mxu1 }
 0x4c3   :  { %v2586_v25 = vadd.f32 %v5463_v17, %v2585_v55  ;;  %4402 = vmatprep.mubr.msk.f32.mxu0 %vm2382_vm3, %v2710_v20  ;;  %v2713_v46 = vmax.f32 %v2591_v26, 0.0 }
 0x4c4   :  { %v4354_v30 = vpop.f32.mrf.mxu1  ;;  %4403 = vmatmul.mubr.msk.f32.gmra.mxu0 %vm2382_vm3, %v2711_v15 }
 0x4c5   :  { %v2712_v35 = vmax.f32 %v2586_v25, 0.0  ;;  %v2601_v18 = vadd.f32 %v4354_v30, %v5463_v17 }
 0x4c6   :  { %v2595_v19 = vpop.f32.mrf.mxu1 }
 0x4c7   :  { %v2596_v21 = vadd.f32 %v5463_v17, %v2595_v19  ;;  %4405 = vmatprep.mubr.msk.f32.mxu0 %vm2382_vm3, %v2712_v35  ;;  %v2715_v23 = vmax.f32 %v2601_v18, 0.0 }
 0x4c8   :  { %v4357_v60 = vpop.f32.mrf.mxu1  ;;  %4406 = vmatmul.mubr.msk.f32.gmra.mxu0 %vm2382_vm3, %v2713_v46 }
 0x4c9   :  { %v2714_v22 = vmax.f32 %v2596_v21, 0.0  ;;  %v2611_v24 = vadd.f32 %v4357_v60, %v5463_v17 }
 0x4ca   :  { %v2605_v61 = vpop.f32.mrf.mxu1 }
 0x4cb   :  { %v2606_v27 = vadd.f32 %v5463_v17, %v2605_v61  ;;  %4408 = vmatprep.mubr.msk.f32.mxu0 %vm2382_vm3, %v2714_v22  ;;  %v2717_v31 = vmax.f32 %v2611_v24, 0.0 }
 0x4cc   :  { %v4360_v28 = vpop.f32.mrf.mxu1  ;;  %4409 = vmatmul.mubr.msk.f32.gmra.mxu0 %vm2382_vm3, %v2715_v23 }
 0x4cd   :  { %v2716_v29 = vmax.f32 %v2606_v27, 0.0  ;;  %v2621_v62 = vadd.f32 %v4360_v28, %v5463_v17 }
 0x4ce   :  { %v2615_v32 = vpop.f32.mrf.mxu1 }
 0x4cf   :  { %v2616_v33 = vadd.f32 %v5463_v17, %v2615_v32  ;;  %4411 = vmatprep.mubr.msk.f32.mxu0 %vm2382_vm3, %v2716_v29  ;;  %v2719_v2 = vmax.f32 %v2621_v62, 0.0 }
 0x4d0   :  { %v4363_v34 = vpop.f32.mrf.mxu1  ;;  %4412 = vmatmul.mubr.msk.f32.gmra.mxu0 %vm2382_vm3, %v2717_v31 }
 0x4d1   :  { %v2718_v5 = vmax.f32 %v2616_v33, 0.0  ;;  %v2631_v36 = vadd.f32 %v4363_v34, %v5463_v17 }
 0x4d2   :  { %v2625_v37 = vpop.f32.mrf.mxu1 }
 0x4d3   :  { %v2626_v38 = vadd.f32 %v5463_v17, %v2625_v37  ;;  %4414 = vmatprep.mubr.msk.f32.mxu0 %vm2382_vm3, %v2718_v5  ;;  %v2721_v20 = vmax.f32 %v2631_v36, 0.0 }
 0x4d4   :  { %v4366_v12 = vpop.f32.mrf.mxu1  ;;  %4415 = vmatmul.mubr.msk.f32.gmra.mxu0 %vm2382_vm3, %v2719_v2 }
 0x4d5   :  { %v2720_v14 = vmax.f32 %v2626_v38, 0.0  ;;  %v2641_v15 = vadd.f32 %v4366_v12, %v5463_v17 }
 0x4d6   :  { %v2635_v26 = vpop.f32.mrf.mxu1 }
 0x4d7   :  { %v2636_v55 = vadd.f32 %v5463_v17, %v2635_v26  ;;  %4417 = vmatprep.mubr.msk.f32.mxu0 %vm2382_vm3, %v2720_v14  ;;  %v2723_v35 = vmax.f32 %v2641_v15, 0.0 }
 0x4d8   :  { %v4369_v25 = vpop.f32.mrf.mxu1  ;;  %4418 = vmatmul.mubr.msk.f32.gmra.mxu0 %vm2382_vm3, %v2721_v20 }
 0x4d9   :  { %v2722_v30 = vmax.f32 %v2636_v55, 0.0  ;;  %v2651_v46 = vadd.f32 %v4369_v25, %v5463_v17 }
 0x4da   :  { %v2645_v18 = vpop.f32.mrf.mxu1 }
 0x4db   :  { %v2646_v19 = vadd.f32 %v5463_v17, %v2645_v18  ;;  %4420 = vmatprep.mubr.msk.f32.mxu0 %vm2382_vm3, %v2722_v30  ;;  %v2725_v22 = vmax.f32 %v2651_v46, 0.0 }
 0x4dc   :  { %v4372_v21 = vpop.f32.mrf.mxu1  ;;  %4421 = vmatmul.mubr.msk.f32.gmra.mxu0 %vm2382_vm3, %v2723_v35 }
 0x4dd   :  { %v2724_v60 = vmax.f32 %v2646_v19, 0.0  ;;  %v2661_v23 = vadd.f32 %v4372_v21, %v5463_v17 }
 0x4de   :  { %v2655_v24 = vpop.f32.mrf.mxu1 }
 0x4df   :  { %v2656_v61 = vadd.f32 %v5463_v17, %v2655_v24  ;;  %4423 = vmatprep.mubr.msk.f32.mxu0 %vm2382_vm3, %v2724_v60  ;;  %v2727_v29 = vmax.f32 %v2661_v23, 0.0  ;;  %v5532_v60 = vld [vmem:[%s5895_s1 + $0x140] ss:$0 sm:$0xff] }
 0x4e0   :  { %v4375_v27 = vpop.f32.mrf.mxu1  ;;  %4424 = vmatmul.mubr.msk.f32.gmra.mxu0 %vm2382_vm3, %v2725_v22  ;;  %v1950_v22 = vadd.f32 %v5396_v40, %v5532_v60  ;;  %v1945_v24 = vadd.f32 %v5532_v60, %v5398_v63  ;;  %v1955_v40 = vadd.f32 %v5532_v60, %v5402_v3  ;;  %v1970_v63 = vadd.f32 %v5404_v43, %v5532_v60 }
 0x4e1   :  { %v2726_v28 = vmax.f32 %v2656_v61, 0.0  ;;  %v2671_v31 = vadd.f32 %v4375_v27, %v5463_v17  ;;  %v1980_v43 = vadd.f32 %v5408_v45, %v5532_v60 }
 0x4e2   :  { %v2665_v62 = vpop.f32.mrf.mxu1 }
 0x4e3   :  { %v2666_v32 = vadd.f32 %v5463_v17, %v2665_v62  ;;  %4426 = vmatprep.mubr.msk.f32.mxu0 %vm2382_vm3, %v2726_v28  ;;  %v2729_v5 = vmax.f32 %v2671_v31, 0.0  ;;  %v1960_v28 = vadd.f32 %v5400_v44, %v5532_v60 }
 0x4e4   :  { %v4378_v33 = vpop.f32.mrf.mxu1  ;;  %4427 = vmatmul.mubr.msk.f32.gmra.mxu0 %vm2382_vm3, %v2727_v29 }
 0x4e5   :  { %v2728_v34 = vmax.f32 %v2666_v32, 0.0  ;;  %v2681_v2 = vadd.f32 %v4378_v33, %v5463_v17 }
 0x4e6   :  { %v2675_v36 = vpop.f32.mrf.mxu1 }
 0x4e7   :  { %v2676_v37 = vadd.f32 %v5463_v17, %v2675_v36  ;;  %4429 = vmatprep.mubr.msk.f32.mxu0 %vm2382_vm3, %v2728_v34  ;;  %v2731_v14 = vmax.f32 %v2681_v2, 0.0  ;;  %v3130_v34 = vlaneseq }
 0x4e8   :  { %v4381_v38 = vpop.f32.mrf.mxu1  ;;  %4430 = vmatmul.mubr.msk.f32.gmra.mxu0 %vm2382_vm3, %v2729_v5 }
 0x4e9   :  { %v2730_v12 = vmax.f32 %v2676_v37, 0.0  ;;  %v2691_v20 = vadd.f32 %v4381_v38, %v5463_v17  ;;  %v1965_v37 = vadd.f32 %v5532_v60, %v5406_v16  ;;  %v1975_v16 = vadd.f32 %v5532_v60, %v5410_v42 }
 0x4ea   :  { %v2685_v15 = vpop.f32.mrf.mxu1  ;;  %v1985_v42 = vadd.f32 %v5532_v60, %v5414_v39 }
 0x4eb   :  { %v2686_v26 = vadd.f32 %v5463_v17, %v2685_v15  ;;  %4432 = vmatprep.mubr.msk.f32.mxu0 %vm2382_vm3, %v2730_v12  ;;  %v2733_v30 = vmax.f32 %v2691_v20, 0.0  ;;  %v3131_v12 = vand.u32 127, %v3130_v34 }
 0x4ec   :  { %v4384_v55 = vpop.f32.mrf.mxu1  ;;  %4433 = vmatmul.mubr.msk.f32.gmra.mxu0 %vm2382_vm3, %v2731_v14 }
 0x4ed   :  { %v2732_v25 = vmax.f32 %v2686_v26, 0.0  ;;  %v2701_v35 = vadd.f32 %v4384_v55, %v5463_v17  ;;  %vm3196_vm4 = vcmp.ge.s32.totalorder %v3131_v12, 3  ;;  %vm3197_vm5 = vcmp.lt.s32.totalorder %v3131_v12, 6 }
 0x4ee   :  { %v2695_v46 = vpop.f32.mrf.mxu1  ;;  %vm5584_vm6 = vmand %vm3196_vm4, %vm3197_vm5 }
 0x4ef   :  { %v2696_v18 = vadd.f32 %v5463_v17, %v2695_v46  ;;  %4435 = vmatprep.mubr.msk.f32.mxu0 %vm2382_vm3, %v2732_v25  ;;  %v2735_v21 = vmax.f32 %v2701_v35, 0.0  ;;  %v5539_v17 = vld [vmem:[%s5895_s1 + $0x1d8] ss:$0 sm:$0xff] }
 0x4f0   :  { %4436 = vmatmul.mubr.msk.f32.gmra.mxu0 %vm2382_vm3, %v2733_v30  ;;  %v1990_v30 = vadd.f32 %v5412_v0, %v5532_v60 }
 0x4f1   :  { %v2734_v19 = vmax.f32 %v2696_v18, 0.0 }
 0x4f3   :  { %4438 = vmatprep.mubr.msk.f32.mxu0 %vm2382_vm3, %v2734_v19 }
 0x4f4   :  { %4439 = vmatmul.mubr.msk.f32.gmra.mxu0 %vm2382_vm3, %v2735_v21 }
 0x578   :  { %v4395_v23 = vpop.f32.mrf.mxu0 }
 0x579   :  { %v3063_v61 = vadd.f32 %v4395_v23, %v1950_v22 }
 0x57a   :  { %v2903_v27 = vpop.f32.mrf.mxu0 }
 0x57b   :  { %v3099_v29 = vadd.f32 %v5539_v17, %v3063_v61  ;;  %v3062_v31 = vadd.f32 %v2903_v27, %v1945_v24 }
 0x57c   :  { %v4398_v62 = vpop.f32.mrf.mxu0 }
 0x57d   :  { %4445 = vtanh.f32 %v3099_v29  ;;  %v3098_v32 = vadd.f32 %v5539_v17, %v3062_v31  ;;  %v3065_v33 = vadd.f32 %v4398_v62, %v1960_v28  ;;  %v2000_v28 = vadd.f32 %v5416_v47, %v5532_v60 }
 0x57e   :  { %v2913_v5 = vpop.f32.mrf.mxu0  ;;  %v1995_v31 = vadd.f32 %v5532_v60, %v5418_v48 }
 0x57f   :  { %4447 = vtanh.f32 %v3098_v32  ;;  %v5552_v2 = vadd.f32 %v5539_v17, %v3065_v33  ;;  %v3064_v44 = vadd.f32 %v2913_v5, %v1955_v40 }
 0x580   :  { %v4401_v36 = vpop.f32.mrf.mxu0 }
 0x581   :  { %4449 = vtanh.f32 %v5552_v2  ;;  %v5558_v3 = vadd.f32 %v5539_v17, %v3064_v44  ;;  %v3067_v38 = vadd.f32 %v4401_v36, %v1970_v63  ;;  %v2010_v63 = vadd.f32 %v5420_v49, %v5532_v60 }
 0x582   :  { %v2923_v14 = vpop.f32.mrf.mxu0 }
 0x583   :  { %4451 = vtanh.f32 %v5558_v3  ;;  %v5564_v20 = vadd.f32 %v5539_v17, %v3067_v38  ;;  %v3066_v15 = vadd.f32 %v2923_v14, %v1965_v37 }
 0x584   :  { %v4404_v26 = vpop.f32.mrf.mxu0 }
 0x585   :  { %4453 = vtanh.f32 %v5564_v20  ;;  %v5570_v55 = vadd.f32 %v5539_v17, %v3066_v15  ;;  %v3069_v25 = vadd.f32 %v4404_v26, %v1980_v43  ;;  %v2005_v26 = vadd.f32 %v5532_v60, %v5422_v51 }
 0x586   :  { %v2933_v45 = vpop.f32.mrf.mxu0 }
 0x587   :  { %4455 = vtanh.f32 %v5570_v55  ;;  %v5576_v35 = vadd.f32 %v5539_v17, %v3069_v25  ;;  %v3068_v46 = vadd.f32 %v2933_v45, %v1975_v16  ;;  %v2020_v16 = vadd.f32 %v5424_v54, %v5532_v60 }
 0x588   :  { %v4407_v18 = vpop.f32.mrf.mxu0  ;;  %v2015_v54 = vadd.f32 %v5532_v60, %v5426_v52 }
 0x589   :  { %4457 = vtanh.f32 %v5576_v35  ;;  %v5582_v19 = vadd.f32 %v5539_v17, %v3068_v46  ;;  %v3071_v21 = vadd.f32 %v4407_v18, %v1990_v30 }
 0x58a   :  { %v4446_v0 = vpop.eup %4445  ;;  %v2943_v23 = vpop.f32.mrf.mxu0 }
 0x58b   :  { %v3165_v24 = vmul.f32 0.6931472, %v4446_v0  ;;  %4459 = vtanh.f32 %v5582_v19  ;;  %v5590_v61 = vadd.f32 %v5539_v17, %v3071_v21  ;;  %v3070_v27 = vadd.f32 %v2943_v23, %v1985_v42 }
 0x58c   :  { %v4448_v39 = vpop.eup %4447  ;;  %v4410_v62 = vpop.f32.mrf.mxu0 }
 0x58d   :  { %v3200_v40 = vsel %vm5584_vm6, %v3165_v24, %v3099_v29  ;;  %v3164_v33 = vmul.f32 0.6931472, %v4448_v39  ;;  %4461 = vtanh.f32 %v5590_v61  ;;  %v5600_v34 = vadd.f32 %v5539_v17, %v3070_v27 }
 0x58e   :  { %v4450_v5 = vpop.eup %4449  ;;  %3232 = vst [vmem:[%s5897_s2 + $0x8] sm:$0xff] %v3200_v40  ;;  %v3073_v47 = vadd.f32 %v4410_v62, %v2000_v28  ;;  %v2953_v48 = vpop.f32.mrf.mxu0  ;;  %v2025_v62 = vadd.f32 %v5532_v60, %v5430_v56  ;;  %v2040_v56 = vadd.f32 %v5432_v58, %v5532_v60 }
 0x58f   :  { %v3199_v44 = vsel %vm5584_vm6, %v3164_v33, %v3098_v32  ;;  %v3167_v29 = vmul.f32 0.6931472, %v4450_v5  ;;  %4463 = vtanh.f32 %v5600_v34  ;;  %v3072_v36 = vadd.f32 %v2953_v48, %v1995_v31 }
 0x590   :  { %v4452_v37 = vpop.eup %4451  ;;  %3231 = vst [vmem:[%s5897_s2] sm:$0xff] %v3199_v44  ;;  %v5614_v49 = vadd.f32 %v5539_v17, %v3073_v47  ;;  %v4413_v38 = vpop.f32.mrf.mxu0  ;;  %v2030_v31 = vadd.f32 %v5428_v53, %v5532_v60 }
 0x591   :  { %v3202_v12 = vsel %vm5584_vm6, %v3167_v29, %v5552_v2  ;;  %v3166_v14 = vmul.f32 0.6931472, %v4452_v37  ;;  %v5620_v32 = vadd.f32 %v5539_v17, %v3072_v36  ;;  %v3075_v43 = vadd.f32 %v4413_v38, %v2010_v63 }
 0x592   :  { %v4454_v15 = vpop.eup %4453  ;;  %3234 = vst [vmem:[%s5897_s2 + $0x18] sm:$0xff] %v3202_v12  ;;  %4465 = vtanh.f32 %v5614_v49  ;;  %v2963_v25 = vpop.f32.mrf.mxu0  ;;  %v2035_v36 = vadd.f32 %v5532_v60, %v5434_v57  ;;  %v2050_v57 = vadd.f32 %v5436_v50, %v5532_v60 }
 0x593   :  { %v3201_v2 = vsel %vm5584_vm6, %v3166_v14, %v5558_v3  ;;  %v3169_v30 = vmul.f32 0.6931472, %v4454_v15  ;;  %4467 = vtanh.f32 %v5620_v32  ;;  %v5635_v45 = vadd.f32 %v5539_v17, %v3075_v43 }
 0x594   :  { %v4456_v51 = vpop.eup %4455  ;;  %3233 = vst [vmem:[%s5897_s2 + $0x10] sm:$0xff] %v3201_v2  ;;  %v3074_v46 = vadd.f32 %v2963_v25, %v2005_v26  ;;  %v4416_v18 = vpop.f32.mrf.mxu0 }
 0x595   :  { %v3204_v3 = vsel %vm5584_vm6, %v3169_v30, %v5564_v20  ;;  %v3168_v42 = vmul.f32 0.6931472, %v4456_v51  ;;  %4469 = vtanh.f32 %v5635_v45  ;;  %v3077_v21 = vadd.f32 %v4416_v18, %v2020_v16 }
 0x596   :  { %v4458_v0 = vpop.eup %4457  ;;  %3236 = vst [vmem:[%s5897_s2 + $0x28] sm:$0xff] %v3204_v3  ;;  %v5650_v52 = vadd.f32 %v5539_v17, %v3074_v46  ;;  %v2973_v23 = vpop.f32.mrf.mxu0  ;;  %v2045_v46 = vadd.f32 %v5532_v60, %v5438_v4  ;;  %v2060_v18 = vadd.f32 %v5440_v6, %v5532_v60 }
 0x597   :  { %v3203_v24 = vsel %vm5584_vm6, %v3168_v42, %v5570_v55  ;;  %v3171_v27 = vmul.f32 0.6931472, %v4458_v0  ;;  %v5656_v20 = vadd.f32 %v5539_v17, %v3077_v21  ;;  %v3076_v39 = vadd.f32 %v2973_v23, %v2015_v54 }
 0x598   :  { %v4460_v28 = vpop.eup %4459  ;;  %3235 = vst [vmem:[%s5897_s2 + $0x20] sm:$0xff] %v3203_v24  ;;  %4471 = vtanh.f32 %v5650_v52  ;;  %v4419_v40 = vpop.f32.mrf.mxu0  ;;  %v2055_v24 = vadd.f32 %v5532_v60, %v5442_v7 }
 0x599   :  { %v3206_v55 = vsel %vm5584_vm6, %v3171_v27, %v5576_v35  ;;  %v3170_v33 = vmul.f32 0.6931472, %v4460_v28  ;;  %4473 = vtanh.f32 %v5656_v20  ;;  %v5671_v5 = vadd.f32 %v5539_v17, %v3076_v39 }
 0x59a   :  { %v4462_v53 = vpop.eup %4461  ;;  %3238 = vst [vmem:[%s5897_s2 + $0x38] sm:$0xff] %v3206_v55  ;;  %v3079_v63 = vadd.f32 %v4419_v40, %v2030_v31  ;;  %v2983_v47 = vpop.f32.mrf.mxu0 }
 0x59b   :  { %v3205_v35 = vsel %vm5584_vm6, %v3170_v33, %v5582_v19  ;;  %v3173_v48 = vmul.f32 0.6931472, %v4462_v53  ;;  %4475 = vtanh.f32 %v5671_v5  ;;  %v3078_v44 = vadd.f32 %v2983_v47, %v2025_v62 }
 0x59c   :  { %v4464_v29 = vpop.eup %4463  ;;  %3237 = vst [vmem:[%s5897_s2 + $0x30] sm:$0xff] %v3205_v35  ;;  %v5688_v58 = vadd.f32 %v5539_v17, %v3079_v63  ;;  %v4422_v37 = vpop.f32.mrf.mxu0  ;;  %v2065_v53 = vadd.f32 %v5532_v60, %v5446_v41 }
 0x59d   :  { %v3208_v19 = vsel %vm5584_vm6, %v3173_v48, %v5590_v61  ;;  %v3172_v38 = vmul.f32 0.6931472, %v4464_v29  ;;  %v5694_v12 = vadd.f32 %v5539_v17, %v3078_v44  ;;  %v3081_v14 = vadd.f32 %v4422_v37, %v2040_v56 }
 0x59e   :  { %3240 = vst [vmem:[%s5897_s2 + $0x48] sm:$0xff] %v3208_v19  ;;  %4477 = vtanh.f32 %v5688_v58  ;;  %v2993_v43 = vpop.f32.mrf.mxu0  ;;  %v2080_v44 = vadd.f32 %v5448_v9, %v5532_v60 }
 0x59f   :  { %v4466_v15 = vpop.eup %4465  ;;  %v3207_v61 = vsel %vm5584_vm6, %v3172_v38, %v5600_v34  ;;  %4479 = vtanh.f32 %v5694_v12  ;;  %v5707_v26 = vadd.f32 %v5539_v17, %v3081_v14  ;;  %v3080_v16 = vadd.f32 %v2993_v43, %v2035_v36 }
 0x5a0   :  { %v4468_v25 = vpop.eup %4467  ;;  %3239 = vst [vmem:[%s5897_s2 + $0x40] sm:$0xff] %v3207_v61  ;;  %v3175_v50 = vmul.f32 0.6931472, %v4466_v15  ;;  %v4425_v2 = vpop.f32.mrf.mxu0  ;;  %v2090_v15 = vadd.f32 %v5452_v10, %v5532_v60 }
 0x5a1   :  { %v3174_v30 = vmul.f32 0.6931472, %v4468_v25  ;;  %4481 = vtanh.f32 %v5707_v26  ;;  %v5714_v51 = vadd.f32 %v5539_v17, %v3080_v16  ;;  %v3083_v34 = vadd.f32 %v4425_v2, %v2050_v57 }
 0x5a2   :  { %v4470_v54 = vpop.eup %4469  ;;  %v3210_v3 = vsel %vm5584_vm6, %v3175_v50, %v5614_v49  ;;  %v3003_v42 = vpop.f32.mrf.mxu0 }
 0x5a3   :  { %3242 = vst [vmem:[%s5897_s2 + $0x58] sm:$0xff] %v3210_v3  ;;  %v3209_v21 = vsel %vm5584_vm6, %v3174_v30, %v5620_v32  ;;  %v3177_v0 = vmul.f32 0.6931472, %v4470_v54  ;;  %4483 = vtanh.f32 %v5714_v51  ;;  %v5731_v4 = vadd.f32 %v5539_v17, %v3083_v34 }
 0x5a4   :  { %3241 = vst [vmem:[%s5897_s2 + $0x50] sm:$0xff] %v3209_v21  ;;  %v3082_v6 = vadd.f32 %v3003_v42, %v2045_v46  ;;  %v4428_v49 = vpop.f32.mrf.mxu0 }
 0x5a5   :  { %v4472_v23 = vpop.eup %4471  ;;  %v3212_v32 = vsel %vm5584_vm6, %v3177_v0, %v5635_v45  ;;  %4485 = vtanh.f32 %v5731_v4  ;;  %v3085_v27 = vadd.f32 %v4428_v49, %v2060_v18  ;;  %v2070_v45 = vadd.f32 %v5444_v8, %v5532_v60 }
 0x5a6   :  { %v4474_v39 = vpop.eup %4473  ;;  %3244 = vst [vmem:[%s5897_s2 + $0x68] sm:$0xff] %v3212_v32  ;;  %v3176_v28 = vmul.f32 0.6931472, %v4472_v23  ;;  %v5746_v31 = vadd.f32 %v5539_v17, %v3082_v6  ;;  %v3013_v62 = vpop.f32.mrf.mxu0  ;;  %v2100_v18 = vadd.f32 %v5456_v13, %v5532_v60  ;;  %v2095_v6 = vadd.f32 %v5532_v60, %v5458_v59 }
 0x5a7   :  { %v3179_v40 = vmul.f32 0.6931472, %v4474_v39  ;;  %v5749_v7 = vadd.f32 %v5539_v17, %v3085_v27  ;;  %v3084_v55 = vadd.f32 %v3013_v62, %v2055_v24 }
 0x5a8   :  { %v4476_v33 = vpop.eup %4475  ;;  %v3211_v56 = vsel %vm5584_vm6, %v3176_v28, %v5650_v52  ;;  %4487 = vtanh.f32 %v5746_v31  ;;  %v4431_v63 = vpop.f32.mrf.mxu0 }
 0x5a9   :  { %3243 = vst [vmem:[%s5897_s2 + $0x60] sm:$0xff] %v3211_v56  ;;  %v3214_v47 = vsel %vm5584_vm6, %v3179_v40, %v5656_v20  ;;  %v3178_v35 = vmul.f32 0.6931472, %v4476_v33  ;;  %4489 = vtanh.f32 %v5749_v7  ;;  %v5767_v8 = vadd.f32 %v5539_v17, %v3084_v55 }
 0x5aa   :  { %3246 = vst [vmem:[%s5897_s2 + $0x78] sm:$0xff] %v3214_v47  ;;  %v3087_v41 = vadd.f32 %v4431_v63, %v2070_v45  ;;  %v3023_v52 = vpop.f32.mrf.mxu0 }
 0x5ab   :  { %v4478_v48 = vpop.eup %4477  ;;  %v3213_v20 = vsel %vm5584_vm6, %v3178_v35, %v5671_v5  ;;  %4491 = vtanh.f32 %v5767_v8  ;;  %v3086_v29 = vadd.f32 %v3023_v52, %v2065_v53  ;;  %v2075_v5 = vadd.f32 %v5532_v60, %v5450_v1 }
 0x5ac   :  { %v4480_v36 = vpop.eup %4479  ;;  %3245 = vst [vmem:[%s5897_s2 + $0x70] sm:$0xff] %v3213_v20  ;;  %v3181_v37 = vmul.f32 0.6931472, %v4478_v48  ;;  %v5782_v19 = vadd.f32 %v5539_v17, %v3087_v41  ;;  %v4434_v38 = vpop.f32.mrf.mxu0 }
 0x5ad   :  { %v3180_v14 = vmul.f32 0.6931472, %v4480_v36  ;;  %v5785_v9 = vadd.f32 %v5539_v17, %v3086_v29  ;;  %v3089_v57 = vadd.f32 %v4434_v38, %v2080_v44 }
 0x5ae   :  { %v4482_v43 = vpop.eup %4481  ;;  %v3216_v61 = vsel %vm5584_vm6, %v3181_v37, %v5688_v58  ;;  %4493 = vtanh.f32 %v5782_v19  ;;  %v3033_v16 = vpop.f32.mrf.mxu0  ;;  %v2085_v58 = vadd.f32 %v5532_v60, %v5454_v11 }
 0x5af   :  { %3248 = vst [vmem:[%s5897_s2 + $0x88] sm:$0xff] %v3216_v61  ;;  %v3215_v25 = vsel %vm5584_vm6, %v3180_v14, %v5694_v12  ;;  %v3183_v50 = vmul.f32 0.6931472, %v4482_v43  ;;  %4495 = vtanh.f32 %v5785_v9  ;;  %v3125_v1 = vadd.f32 %v5539_v17, %v3089_v57 }
 0x5b0   :  { %v4484_v10 = vpop.eup %4483  ;;  %3247 = vst [vmem:[%s5897_s2 + $0x80] sm:$0xff] %v3215_v25  ;;  %v3088_v2 = vadd.f32 %v3033_v16, %v2075_v5  ;;  %v4437_v30 = vpop.f32.mrf.mxu0 }
 0x5b1   :  { %v3218_v34 = vsel %vm5584_vm6, %v3183_v50, %v5707_v26  ;;  %v3182_v12 = vmul.f32 0.6931472, %v4484_v10  ;;  %4497 = vtanh.f32 %v3125_v1  ;;  %v3091_v54 = vadd.f32 %v4437_v30, %v2090_v15 }
 0x5b2   :  { %v4486_v46 = vpop.eup %4485  ;;  %3250 = vst [vmem:[%s5897_s2 + $0x98] sm:$0xff] %v3218_v34  ;;  %v3124_v11 = vadd.f32 %v5539_v17, %v3088_v2  ;;  %v3043_v3 = vpop.f32.mrf.mxu0 }
 0x5b3   :  { %v3217_v42 = vsel %vm5584_vm6, %v3182_v12, %v5714_v51  ;;  %v3185_v21 = vmul.f32 0.6931472, %v4486_v46  ;;  %v3127_v26 = vadd.f32 %v5539_v17, %v3091_v54  ;;  %v3090_v0 = vadd.f32 %v3043_v3, %v2085_v58 }
 0x5b4   :  { %3249 = vst [vmem:[%s5897_s2 + $0x90] sm:$0xff] %v3217_v42  ;;  %4499 = vtanh.f32 %v3124_v11  ;;  %v4440_v13 = vpop.f32.mrf.mxu0 }
 0x5b5   :  { %v4488_v49 = vpop.eup %4487  ;;  %v3220_v23 = vsel %vm5584_vm6, %v3185_v21, %v5731_v4  ;;  %4501 = vtanh.f32 %v3127_v26  ;;  %v3126_v51 = vadd.f32 %v5539_v17, %v3090_v0  ;;  %v3093_v24 = vadd.f32 %v4440_v13, %v2100_v18 }
 0x5b6   :  { %v4490_v32 = vpop.eup %4489  ;;  %3252 = vst [vmem:[%s5897_s2 + $0xa8] sm:$0xff] %v3220_v23  ;;  %v3184_v59 = vmul.f32 0.6931472, %v4488_v49  ;;  %v3053_v60 = vpop.f32.mrf.mxu0 }
 0x5b7   :  { %v3187_v27 = vmul.f32 0.6931472, %v4490_v32  ;;  %4503 = vtanh.f32 %v3126_v51  ;;  %v3129_v39 = vadd.f32 %v5539_v17, %v3093_v24  ;;  %v3092_v28 = vadd.f32 %v3053_v60, %v2095_v6 }
 0x5b8   :  { %v4492_v62 = vpop.eup %4491  ;;  %v3219_v4 = vsel %vm5584_vm6, %v3184_v59, %v5746_v31 }
 0x5b9   :  { %3251 = vst [vmem:[%s5897_s2 + $0xa0] sm:$0xff] %v3219_v4  ;;  %v3222_v40 = vsel %vm5584_vm6, %v3187_v27, %v5749_v7  ;;  %v3186_v55 = vmul.f32 0.6931472, %v4492_v62  ;;  %4505 = vtanh.f32 %v3129_v39  ;;  %v3128_v33 = vadd.f32 %v5539_v17, %v3092_v28 }
 0x5ba   :  { %3254 = vst [vmem:[%s5897_s2 + $0xb8] sm:$0xff] %v3222_v40 }
 0x5bb   :  { %v4494_v45 = vpop.eup %4493  ;;  %v3221_v31 = vsel %vm5584_vm6, %v3186_v55, %v5767_v8  ;;  %4507 = vtanh.f32 %v3128_v33 }
 0x5bc   :  { %v4496_v53 = vpop.eup %4495  ;;  %3253 = vst [vmem:[%s5897_s2 + $0xb0] sm:$0xff] %v3221_v31  ;;  %v3189_v7 = vmul.f32 0.6931472, %v4494_v45 }
 0x5bd   :  { %v3188_v56 = vmul.f32 0.6931472, %v4496_v53 }
 0x5be   :  { %v4498_v63 = vpop.eup %4497  ;;  %v3224_v17 = vsel %vm5584_vm6, %v3189_v7, %v5782_v19 }
 0x5bf   :  { %3256 = vst [vmem:[%s5897_s2 + $0xc8] sm:$0xff] %v3224_v17  ;;  %v3223_v47 = vsel %vm5584_vm6, %v3188_v56, %v5785_v9  ;;  %v3191_v35 = vmul.f32 0.6931472, %v4498_v63 }
 0x5c0   :  { %3255 = vst [vmem:[%s5897_s2 + $0xc0] sm:$0xff] %v3223_v47 }
 0x5c1   :  { %v4500_v8 = vpop.eup %4499  ;;  %v3226_v41 = vsel %vm5584_vm6, %v3191_v35, %v3125_v1 }
 0x5c2   :  { %v4502_v52 = vpop.eup %4501  ;;  %3258 = vst [vmem:[%s5897_s2 + $0xd8] sm:$0xff] %v3226_v41  ;;  %v3190_v48 = vmul.f32 0.6931472, %v4500_v8 }
 0x5c3   :  { %v3193_v44 = vmul.f32 0.6931472, %v4502_v52 }
 0x5c4   :  { %v4504_v20 = vpop.eup %4503  ;;  %v3225_v29 = vsel %vm5584_vm6, %v3190_v48, %v3124_v11 }
 0x5c5   :  { %3257 = vst [vmem:[%s5897_s2 + $0xd0] sm:$0xff] %v3225_v29  ;;  %v3228_v36 = vsel %vm5584_vm6, %v3193_v44, %v3127_v26  ;;  %v3192_v37 = vmul.f32 0.6931472, %v4504_v20 }
 0x5c6   :  { %v4506_v19 = vpop.eup %4505  ;;  %3260 = vst [vmem:[%s5897_s2 + $0xe8] sm:$0xff] %v3228_v36 }
 0x5c7   :  { %v3227_v38 = vsel %vm5584_vm6, %v3192_v37, %v3126_v51  ;;  %v3195_v14 = vmul.f32 0.6931472, %v4506_v19 }
 0x5c8   :  { %v4508_v9 = vpop.eup %4507  ;;  %3259 = vst [vmem:[%s5897_s2 + $0xe0] sm:$0xff] %v3227_v38 }
 0x5c9   :  { %v3230_v57 = vsel %vm5584_vm6, %v3195_v14, %v3129_v39  ;;  %v3194_v43 = vmul.f32 0.6931472, %v4508_v9 }
 0x5ca   :  { %3262 = vst [vmem:[%s5897_s2 + $0xf8] sm:$0xff] %v3230_v57 }
 0x5cb   :  { %v3229_v5 = vsel %vm5584_vm6, %v3194_v43, %v3128_v33 }
 0x5cc   :  { %3261 = vst [vmem:[%s5897_s2 + $0xf0] sm:$0xff] %v3229_v5 }

// kernel: _lambda_.2
= control target key start
LH: loop header
LB: loop body
LE: loop exit
PB: predicated region body
PF: predicated region fallthrough
CT: control target
= control target key end

     0   :  { %vm54_vm0 = vcmask 392192   ;;  %vm421_vm1 = vcmask 523264   ;;  %s3817_s1 = inlined_call_operand.vmem [shape: f32[392,128], index: 1, kind: input, shape index: {}]   ;;  %s3818_s0 = inlined_call_operand.vmem [shape: f32[256,48], index: 0, kind: input, shape index: {}]   ;;  %s3819_s2 = inlined_call_operand.vmem [shape: f32[256,128], index: 2, kind: output, shape index: {}]  }
   0x1   :  { %v48_v0 = vld [vmem:[%s3817_s1 + $0x28] sm:$0xff]  ;;  %v47_v1 = vld [vmem:[%s3817_s1 + $0x20] sm:$0xff]  ;;  %v46_v2 = vld [vmem:[%s3817_s1 + $0x18] sm:$0xff] }
   0x2   :  { %2573 = vmatprep.subr.mxu0 %v48_v0  ;;  %v2976_v3 = vld [vmem:[%s3818_s0] sm:$0xff]  ;;  %v45_v4 = vld [vmem:[%s3817_s1 + $0x10] sm:$0xff]  ;;  %v44_v5 = vld [vmem:[%s3817_s1 + $0x8] sm:$0xff] }
   0x3   :  { %2574 = vmatpush3.msra.mxu0 %v48_v0  ;;  %2585 = vmatprep.mubr.msk.f32.mxu0 %vm54_vm0, %v2976_v3  ;;  %v43_v6 = vld [vmem:[%s3817_s1] sm:$0xff]  ;;  %v2992_v7 = vld [vmem:[%s3818_s0 + $0x8] sm:$0xff]  ;;  %v2997_v8 = vld [vmem:[%s3818_s0 + $0x10] sm:$0xff] }
   0x4   :  { %2575 = vmatprep.subr.mxu0 %v47_v1  ;;  %v415_v9 = vld [vmem:[%s3817_s1 + $0x70] sm:$0xff]  ;;  %v414_v10 = vld [vmem:[%s3817_s1 + $0x68] sm:$0xff]  ;;  %v3012_v11 = vld [vmem:[%s3818_s0 + $0x18] sm:$0xff] }
   0x5   :  { %2576 = vmatpush3.msra.mxu0 %v47_v1  ;;  %2633 = vmatprep.subr.mxu1 %v415_v9  ;;  %v413_v12 = vld [vmem:[%s3817_s1 + $0x60] sm:$0xff]  ;;  %v412_v14 = vld [vmem:[%s3817_s1 + $0x58] sm:$0xff]  ;;  %v3032_v15 = vld [vmem:[%s3818_s0 + $0x28] sm:$0xff] }
   0x6   :  { %2577 = vmatprep.subr.mxu0 %v46_v2  ;;  %2634 = vmatpush3.msra.mxu1 %v415_v9  ;;  %v3020_v13 = vld [vmem:[%s3818_s0 + $0x20] sm:$0xff]  ;;  %v3037_v16 = vld [vmem:[%s3818_s0 + $0x30] sm:$0xff]  ;;  %v3046_v17 = vld [vmem:[%s3818_s0 + $0x38] sm:$0xff] }
   0x7   :  { %2578 = vmatpush3.msra.mxu0 %v46_v2  ;;  %2635 = vmatprep.subr.mxu1 %v414_v10  ;;  %v3051_v18 = vld [vmem:[%s3818_s0 + $0x40] sm:$0xff]  ;;  %v3060_v19 = vld [vmem:[%s3818_s0 + $0x48] sm:$0xff]  ;;  %v3065_v20 = vld [vmem:[%s3818_s0 + $0x50] sm:$0xff] }
   0x8   :  { %2579 = vmatprep.subr.mxu0 %v45_v4  ;;  %2636 = vmatpush3.msra.mxu1 %v414_v10  ;;  %v3074_v21 = vld [vmem:[%s3818_s0 + $0x58] sm:$0xff]  ;;  %v3079_v22 = vld [vmem:[%s3818_s0 + $0x60] sm:$0xff]  ;;  %v3088_v23 = vld [vmem:[%s3818_s0 + $0x68] sm:$0xff] }
   0x9   :  { %2580 = vmatpush3.msra.mxu0 %v45_v4  ;;  %2637 = vmatprep.subr.mxu1 %v413_v12  ;;  %v3093_v24 = vld [vmem:[%s3818_s0 + $0x70] sm:$0xff]  ;;  %v3102_v25 = vld [vmem:[%s3818_s0 + $0x78] sm:$0xff]  ;;  %v3107_v26 = vld [vmem:[%s3818_s0 + $0x80] sm:$0xff] }
   0xa   :  { %2581 = vmatprep.subr.mxu0 %v44_v5  ;;  %2638 = vmatpush3.msra.mxu1 %v413_v12  ;;  %v3116_v27 = vld [vmem:[%s3818_s0 + $0x88] sm:$0xff]  ;;  %v3121_v28 = vld [vmem:[%s3818_s0 + $0x90] sm:$0xff]  ;;  %v3130_v29 = vld [vmem:[%s3818_s0 + $0x98] sm:$0xff] }
   0xb   :  { %2582 = vmatpush3.msra.mxu0 %v44_v5  ;;  %2639 = vmatprep.subr.mxu1 %v412_v14  ;;  %v3135_v30 = vld [vmem:[%s3818_s0 + $0xa0] sm:$0xff]  ;;  %v3144_v31 = vld [vmem:[%s3818_s0 + $0xa8] sm:$0xff]  ;;  %v3149_v32 = vld [vmem:[%s3818_s0 + $0xb0] sm:$0xff] }
   0xc   :  { %2583 = vmatprep.subr.mxu0 %v43_v6  ;;  %2640 = vmatpush3.msra.mxu1 %v412_v14  ;;  %v3158_v33 = vld [vmem:[%s3818_s0 + $0xb8] sm:$0xff]  ;;  %v3163_v34 = vld [vmem:[%s3818_s0 + $0xc0] sm:$0xff]  ;;  %v3172_v35 = vld [vmem:[%s3818_s0 + $0xc8] sm:$0xff] }
   0xd   :  { %2584 = vmatpush3.msra.mxu0 %v43_v6  ;;  %v3177_v36 = vld [vmem:[%s3818_s0 + $0xd0] sm:$0xff]  ;;  %v3186_v37 = vld [vmem:[%s3818_s0 + $0xd8] sm:$0xff]  ;;  %v3191_v38 = vld [vmem:[%s3818_s0 + $0xe0] sm:$0xff] }
   0xe   :  { %2586 = vmatmul.mubr.msk.f32.vlgmr.msra.gmra.mxu0 %vm54_vm0, %v2992_v7  ;;  %v3200_v39 = vld [vmem:[%s3818_s0 + $0xe8] sm:$0xff]  ;;  %v3205_v40 = vld [vmem:[%s3818_s0 + $0xf0] sm:$0xff]  ;;  %v3214_v41 = vld [vmem:[%s3818_s0 + $0xf8] sm:$0xff] }
   0xf   :  { %2588 = vmatprep.mubr.msk.f32.mxu0 %vm54_vm0, %v2997_v8  ;;  %v411_v42 = vld [vmem:[%s3817_s1 + $0x50] sm:$0xff]  ;;  %v410_v43 = vld [vmem:[%s3817_s1 + $0x48] sm:$0xff]  ;;  %v409_v44 = vld [vmem:[%s3817_s1 + $0x40] sm:$0xff] }
  0x10   :  { %2641 = vmatprep.subr.mxu1 %v411_v42  ;;  %v408_v45 = vld [vmem:[%s3817_s1 + $0x38] sm:$0xff]  ;;  %v788_v46 = vld [vmem:[%s3817_s1 + $0xe8] sm:$0xff]  ;;  %v787_v48 = vld [vmem:[%s3817_s1 + $0xe0] sm:$0xff] }
  0x11   :  { %2642 = vmatpush3.msra.mxu1 %v411_v42  ;;  %v780_v47 = vld [vmem:[%s3817_s1 + $0xa8] sm:$0xff]  ;;  %2697 = vmatprep.subr.mxu0 %v788_v46  ;;  %v786_v49 = vld [vmem:[%s3817_s1 + $0xd8] sm:$0xff]  ;;  %v785_v50 = vld [vmem:[%s3817_s1 + $0xd0] sm:$0xff] }
  0x12   :  { %2589 = vmatmul.mubr.msk.f32.gmra.mxu0 %vm54_vm0, %v3012_v11  ;;  %2643 = vmatprep.subr.mxu1 %v410_v43  ;;  %v784_v51 = vld [vmem:[%s3817_s1 + $0xc8] sm:$0xff]  ;;  %v783_v52 = vld [vmem:[%s3817_s1 + $0xc0] sm:$0xff]  ;;  %v782_v53 = vld [vmem:[%s3817_s1 + $0xb8] sm:$0xff] }
  0x13   :  { %2591 = vmatprep.mubr.msk.f32.mxu0 %vm54_vm0, %v3020_v13  ;;  %2644 = vmatpush3.msra.mxu1 %v410_v43  ;;  %v781_v54 = vld [vmem:[%s3817_s1 + $0xb0] sm:$0xff]  ;;  %v779_v2 = vld [vmem:[%s3817_s1 + $0xa0] sm:$0xff]  ;;  %v778_v6 = vld [vmem:[%s3817_s1 + $0x98] sm:$0xff] }
  0x14   :  { %2645 = vmatprep.subr.mxu1 %v409_v44  ;;  %2698 = vmatpush3.msra.mxu0 %v788_v46  ;;  %v3260_v55 = vld [vmem:[%s3817_s1 + $0x30] ss:$0 sm:$0xff] }
  0x15   :  { %2646 = vmatpush3.msra.mxu1 %v409_v44  ;;  %2699 = vmatprep.subr.mxu0 %v787_v48  ;;  %v777_v42 = vld [vmem:[%s3817_s1 + $0x90] sm:$0xff] }
  0x16   :  { %2592 = vmatmul.mubr.msk.f32.gmra.mxu0 %vm54_vm0, %v3032_v15  ;;  %2647 = vmatprep.subr.mxu1 %v408_v45 }
  0x17   :  { %2594 = vmatprep.mubr.msk.f32.mxu0 %vm54_vm0, %v3037_v16  ;;  %2648 = vmatpush3.msra.mxu1 %v408_v45  ;;  %v776_v45 = vld [vmem:[%s3817_s1 + $0x88] sm:$0xff] }
  0x18   :  { %2761 = vmatprep.subr.mxu1 %v780_v47  ;;  %2700 = vmatpush3.msra.mxu0 %v787_v48 }
  0x19   :  { %2701 = vmatprep.subr.mxu0 %v786_v49 }
  0x1a   :  { %2595 = vmatmul.mubr.msk.f32.gmra.mxu0 %vm54_vm0, %v3046_v17 }
  0x1b   :  { %2597 = vmatprep.mubr.msk.f32.mxu0 %vm54_vm0, %v3051_v18  ;;  %2702 = vmatpush3.msra.mxu0 %v786_v49 }
  0x1c   :  { %2703 = vmatprep.subr.mxu0 %v785_v50 }
  0x1d   :  { %2704 = vmatpush3.msra.mxu0 %v785_v50  ;;  %v775_v50 = vld [vmem:[%s3817_s1 + $0x80] sm:$0xff] }
  0x1e   :  { %2598 = vmatmul.mubr.msk.f32.gmra.mxu0 %vm54_vm0, %v3060_v19  ;;  %2705 = vmatprep.subr.mxu0 %v784_v51 }
  0x1f   :  { %2600 = vmatprep.mubr.msk.f32.mxu0 %vm54_vm0, %v3065_v20  ;;  %2706 = vmatpush3.msra.mxu0 %v784_v51 }
  0x20   :  { %2707 = vmatprep.subr.mxu0 %v783_v52 }
  0x21   :  { %2708 = vmatpush3.msra.mxu0 %v783_v52 }
  0x22   :  { %2601 = vmatmul.mubr.msk.f32.gmra.mxu0 %vm54_vm0, %v3074_v21  ;;  %2709 = vmatprep.subr.mxu0 %v782_v53 }
  0x23   :  { %2603 = vmatprep.mubr.msk.f32.mxu0 %vm54_vm0, %v3079_v22  ;;  %2710 = vmatpush3.msra.mxu0 %v782_v53 }
  0x24   :  { %2711 = vmatprep.subr.mxu0 %v781_v54 }
  0x25   :  { %2712 = vmatpush3.msra.mxu0 %v781_v54 }
  0x26   :  { %2604 = vmatmul.mubr.msk.f32.gmra.mxu0 %vm54_vm0, %v3088_v23 }
  0x27   :  { %2606 = vmatprep.mubr.msk.f32.mxu0 %vm54_vm0, %v3093_v24 }
  0x2a   :  { %2607 = vmatmul.mubr.msk.f32.gmra.mxu0 %vm54_vm0, %v3102_v25 }
  0x2b   :  { %2609 = vmatprep.mubr.msk.f32.mxu0 %vm54_vm0, %v3107_v26 }
  0x2e   :  { %2610 = vmatmul.mubr.msk.f32.gmra.mxu0 %vm54_vm0, %v3116_v27 }
  0x2f   :  { %2612 = vmatprep.mubr.msk.f32.mxu0 %vm54_vm0, %v3121_v28 }
  0x32   :  { %2613 = vmatmul.mubr.msk.f32.gmra.mxu0 %vm54_vm0, %v3130_v29 }
  0x33   :  { %2615 = vmatprep.mubr.msk.f32.mxu0 %vm54_vm0, %v3135_v30 }
  0x36   :  { %2616 = vmatmul.mubr.msk.f32.gmra.mxu0 %vm54_vm0, %v3144_v31 }
  0x37   :  { %2618 = vmatprep.mubr.msk.f32.mxu0 %vm54_vm0, %v3149_v32 }
  0x3a   :  { %2619 = vmatmul.mubr.msk.f32.gmra.mxu0 %vm54_vm0, %v3158_v33 }
  0x3b   :  { %2621 = vmatprep.mubr.msk.f32.mxu0 %vm54_vm0, %v3163_v34 }
  0x3e   :  { %2622 = vmatmul.mubr.msk.f32.gmra.mxu0 %vm54_vm0, %v3172_v35 }
  0x3f   :  { %2624 = vmatprep.mubr.msk.f32.mxu0 %vm54_vm0, %v3177_v36 }
  0x42   :  { %2625 = vmatmul.mubr.msk.f32.gmra.mxu0 %vm54_vm0, %v3186_v37 }
  0x43   :  { %2627 = vmatprep.mubr.msk.f32.mxu0 %vm54_vm0, %v3191_v38 }
  0x46   :  { %2628 = vmatmul.mubr.msk.f32.gmra.mxu0 %vm54_vm0, %v3200_v39 }
  0x47   :  { %2630 = vmatprep.mubr.msk.f32.mxu0 %vm54_vm0, %v3205_v40 }
  0x4a   :  { %2631 = vmatmul.mubr.msk.f32.gmra.mxu0 %vm54_vm0, %v3214_v41 }
  0xce   :  { %v2587_v56 = vpop.f32.mrf.mxu0 }
  0xcf   :  { %v223_v57 = vadd.f32 %v2587_v56, %v3260_v55 }
  0xd0   :  { %v217_v58 = vpop.f32.mrf.mxu0 }
  0xd1   :  { %v218_v59 = vadd.f32 %v3260_v55, %v217_v58  ;;  %v377_v62 = vmax.f32 %v223_v57, 0.0 }
  0xd2   :  { %v2590_v60 = vpop.f32.mrf.mxu0 }
  0xd3   :  { %v376_v61 = vmax.f32 %v218_v59, 0.0  ;;  %v233_v63 = vadd.f32 %v2590_v60, %v3260_v55 }
  0xd4   :  { %v227_v0 = vpop.f32.mrf.mxu0 }
  0xd5   :  { %v228_v1 = vadd.f32 %v3260_v55, %v227_v0  ;;  %2649 = vmatprep.mubr.msk.f32.mxu1 %vm421_vm1, %v376_v61  ;;  %v379_v9 = vmax.f32 %v233_v63, 0.0 }
  0xd6   :  { %v2593_v4 = vpop.f32.mrf.mxu0  ;;  %2650 = vmatmul.mubr.msk.f32.vlgmr.msra.gmra.mxu1 %vm421_vm1, %v377_v62 }
  0xd7   :  { %v378_v5 = vmax.f32 %v228_v1, 0.0  ;;  %2762 = vmatpush3.msra.mxu1 %v780_v47  ;;  %v243_v10 = vadd.f32 %v2593_v4, %v3260_v55 }
  0xd8   :  { %v237_v12 = vpop.f32.mrf.mxu0  ;;  %2763 = vmatprep.subr.mxu1 %v779_v2 }
  0xd9   :  { %v238_v14 = vadd.f32 %v3260_v55, %v237_v12  ;;  %2652 = vmatprep.mubr.msk.f32.mxu1 %vm421_vm1, %v378_v5  ;;  %2764 = vmatpush3.msra.mxu1 %v779_v2  ;;  %v381_v46 = vmax.f32 %v243_v10, 0.0 }
  0xda   :  { %v2596_v43 = vpop.f32.mrf.mxu0  ;;  %2653 = vmatmul.mubr.msk.f32.gmra.mxu1 %vm421_vm1, %v379_v9  ;;  %2765 = vmatprep.subr.mxu1 %v778_v6 }
  0xdb   :  { %v380_v44 = vmax.f32 %v238_v14, 0.0  ;;  %2766 = vmatpush3.msra.mxu1 %v778_v6  ;;  %v253_v47 = vadd.f32 %v2596_v43, %v3260_v55 }
  0xdc   :  { %v247_v48 = vpop.f32.mrf.mxu0  ;;  %2767 = vmatprep.subr.mxu1 %v777_v42 }
  0xdd   :  { %v248_v49 = vadd.f32 %v3260_v55, %v247_v48  ;;  %2655 = vmatprep.mubr.msk.f32.mxu1 %vm421_vm1, %v380_v44  ;;  %2768 = vmatpush3.msra.mxu1 %v777_v42  ;;  %v383_v53 = vmax.f32 %v253_v47, 0.0 }
  0xde   :  { %v2599_v51 = vpop.f32.mrf.mxu0  ;;  %2656 = vmatmul.mubr.msk.f32.gmra.mxu1 %vm421_vm1, %v381_v46  ;;  %2769 = vmatprep.subr.mxu1 %v776_v45 }
  0xdf   :  { %v382_v52 = vmax.f32 %v248_v49, 0.0  ;;  %2770 = vmatpush3.msra.mxu1 %v776_v45  ;;  %v263_v54 = vadd.f32 %v2599_v51, %v3260_v55 }
  0xe0   :  { %v257_v56 = vpop.f32.mrf.mxu0  ;;  %2771 = vmatprep.subr.mxu1 %v775_v50 }
  0xe1   :  { %v258_v57 = vadd.f32 %v3260_v55, %v257_v56  ;;  %2658 = vmatprep.mubr.msk.f32.mxu1 %vm421_vm1, %v382_v52  ;;  %2772 = vmatpush3.msra.mxu1 %v775_v50  ;;  %v385_v60 = vmax.f32 %v263_v54, 0.0 }
  0xe2   :  { %v2602_v58 = vpop.f32.mrf.mxu0  ;;  %2659 = vmatmul.mubr.msk.f32.gmra.mxu1 %vm421_vm1, %v383_v53 }
  0xe3   :  { %v384_v59 = vmax.f32 %v258_v57, 0.0  ;;  %v273_v61 = vadd.f32 %v2602_v58, %v3260_v55 }
  0xe4   :  { %v267_v62 = vpop.f32.mrf.mxu0 }
  0xe5   :  { %v268_v63 = vadd.f32 %v3260_v55, %v267_v62  ;;  %2661 = vmatprep.mubr.msk.f32.mxu1 %vm421_vm1, %v384_v59  ;;  %v387_v2 = vmax.f32 %v273_v61, 0.0 }
  0xe6   :  { %v2605_v0 = vpop.f32.mrf.mxu0  ;;  %2662 = vmatmul.mubr.msk.f32.gmra.mxu1 %vm421_vm1, %v385_v60 }
  0xe7   :  { %v386_v1 = vmax.f32 %v268_v63, 0.0  ;;  %v283_v4 = vadd.f32 %v2605_v0, %v3260_v55 }
  0xe8   :  { %v277_v5 = vpop.f32.mrf.mxu0 }
  0xe9   :  { %v278_v6 = vadd.f32 %v3260_v55, %v277_v5  ;;  %2664 = vmatprep.mubr.msk.f32.mxu1 %vm421_vm1, %v386_v1  ;;  %v389_v12 = vmax.f32 %v283_v4, 0.0 }
  0xea   :  { %v2608_v9 = vpop.f32.mrf.mxu0  ;;  %2665 = vmatmul.mubr.msk.f32.gmra.mxu1 %vm421_vm1, %v387_v2 }
  0xeb   :  { %v388_v10 = vmax.f32 %v278_v6, 0.0  ;;  %v293_v14 = vadd.f32 %v2608_v9, %v3260_v55 }
  0xec   :  { %v287_v42 = vpop.f32.mrf.mxu0 }
  0xed   :  { %v288_v43 = vadd.f32 %v3260_v55, %v287_v42  ;;  %2667 = vmatprep.mubr.msk.f32.mxu1 %vm421_vm1, %v388_v10  ;;  %v391_v46 = vmax.f32 %v293_v14, 0.0 }
  0xee   :  { %v2611_v44 = vpop.f32.mrf.mxu0  ;;  %2668 = vmatmul.mubr.msk.f32.gmra.mxu1 %vm421_vm1, %v389_v12 }
  0xef   :  { %v390_v45 = vmax.f32 %v288_v43, 0.0  ;;  %v303_v47 = vadd.f32 %v2611_v44, %v3260_v55 }
  0xf0   :  { %v297_v48 = vpop.f32.mrf.mxu0 }
  0xf1   :  { %v298_v49 = vadd.f32 %v3260_v55, %v297_v48  ;;  %2670 = vmatprep.mubr.msk.f32.mxu1 %vm421_vm1, %v390_v45  ;;  %v393_v52 = vmax.f32 %v303_v47, 0.0 }
  0xf2   :  { %v2614_v50 = vpop.f32.mrf.mxu0  ;;  %2671 = vmatmul.mubr.msk.f32.gmra.mxu1 %vm421_vm1, %v391_v46 }
  0xf3   :  { %v392_v51 = vmax.f32 %v298_v49, 0.0  ;;  %v313_v53 = vadd.f32 %v2614_v50, %v3260_v55 }
  0xf4   :  { %v307_v54 = vpop.f32.mrf.mxu0 }
  0xf5   :  { %v308_v56 = vadd.f32 %v3260_v55, %v307_v54  ;;  %2673 = vmatprep.mubr.msk.f32.mxu1 %vm421_vm1, %v392_v51  ;;  %v395_v59 = vmax.f32 %v313_v53, 0.0 }
  0xf6   :  { %v2617_v57 = vpop.f32.mrf.mxu0  ;;  %2674 = vmatmul.mubr.msk.f32.gmra.mxu1 %vm421_vm1, %v393_v52 }
  0xf7   :  { %v394_v58 = vmax.f32 %v308_v56, 0.0  ;;  %v323_v60 = vadd.f32 %v2617_v57, %v3260_v55 }
  0xf8   :  { %v317_v61 = vpop.f32.mrf.mxu0 }
  0xf9   :  { %v318_v62 = vadd.f32 %v3260_v55, %v317_v61  ;;  %2676 = vmatprep.mubr.msk.f32.mxu1 %vm421_vm1, %v394_v58  ;;  %v397_v1 = vmax.f32 %v323_v60, 0.0 }
  0xfa   :  { %v2620_v63 = vpop.f32.mrf.mxu0  ;;  %2677 = vmatmul.mubr.msk.f32.gmra.mxu1 %vm421_vm1, %v395_v59 }
  0xfb   :  { %v396_v0 = vmax.f32 %v318_v62, 0.0  ;;  %v333_v2 = vadd.f32 %v2620_v63, %v3260_v55 }
  0xfc   :  { %v327_v4 = vpop.f32.mrf.mxu0 }
  0xfd   :  { %v328_v5 = vadd.f32 %v3260_v55, %v327_v4  ;;  %2679 = vmatprep.mubr.msk.f32.mxu1 %vm421_vm1, %v396_v0  ;;  %v399_v10 = vmax.f32 %v333_v2, 0.0 }
  0xfe   :  { %v2623_v6 = vpop.f32.mrf.mxu0  ;;  %2680 = vmatmul.mubr.msk.f32.gmra.mxu1 %vm421_vm1, %v397_v1 }
  0xff   :  { %v398_v9 = vmax.f32 %v328_v5, 0.0  ;;  %v343_v12 = vadd.f32 %v2623_v6, %v3260_v55 }
 0x100   :  { %v337_v14 = vpop.f32.mrf.mxu0 }
 0x101   :  { %v338_v42 = vadd.f32 %v3260_v55, %v337_v14  ;;  %2682 = vmatprep.mubr.msk.f32.mxu1 %vm421_vm1, %v398_v9  ;;  %v401_v45 = vmax.f32 %v343_v12, 0.0 }
 0x102   :  { %v2626_v43 = vpop.f32.mrf.mxu0  ;;  %2683 = vmatmul.mubr.msk.f32.gmra.mxu1 %vm421_vm1, %v399_v10 }
 0x103   :  { %v400_v44 = vmax.f32 %v338_v42, 0.0  ;;  %v353_v46 = vadd.f32 %v2626_v43, %v3260_v55 }
 0x104   :  { %v347_v47 = vpop.f32.mrf.mxu0 }
 0x105   :  { %v348_v48 = vadd.f32 %v3260_v55, %v347_v47  ;;  %2685 = vmatprep.mubr.msk.f32.mxu1 %vm421_vm1, %v400_v44  ;;  %v403_v51 = vmax.f32 %v353_v46, 0.0 }
 0x106   :  { %v2629_v49 = vpop.f32.mrf.mxu0  ;;  %2686 = vmatmul.mubr.msk.f32.gmra.mxu1 %vm421_vm1, %v401_v45 }
 0x107   :  { %v402_v50 = vmax.f32 %v348_v48, 0.0  ;;  %v363_v52 = vadd.f32 %v2629_v49, %v3260_v55 }
 0x108   :  { %v357_v53 = vpop.f32.mrf.mxu0 }
 0x109   :  { %v358_v54 = vadd.f32 %v3260_v55, %v357_v53  ;;  %2688 = vmatprep.mubr.msk.f32.mxu1 %vm421_vm1, %v402_v50  ;;  %v405_v58 = vmax.f32 %v363_v52, 0.0 }
 0x10a   :  { %v2632_v56 = vpop.f32.mrf.mxu0  ;;  %2689 = vmatmul.mubr.msk.f32.gmra.mxu1 %vm421_vm1, %v403_v51 }
 0x10b   :  { %v404_v57 = vmax.f32 %v358_v54, 0.0  ;;  %v373_v59 = vadd.f32 %v2632_v56, %v3260_v55 }
 0x10c   :  { %v367_v60 = vpop.f32.mrf.mxu0 }
 0x10d   :  { %v368_v61 = vadd.f32 %v3260_v55, %v367_v60  ;;  %2691 = vmatprep.mubr.msk.f32.mxu1 %vm421_vm1, %v404_v57  ;;  %v407_v63 = vmax.f32 %v373_v59, 0.0 }
 0x10e   :  { %2692 = vmatmul.mubr.msk.f32.gmra.mxu1 %vm421_vm1, %v405_v58 }
 0x10f   :  { %v406_v62 = vmax.f32 %v368_v61, 0.0 }
 0x111   :  { %2694 = vmatprep.mubr.msk.f32.mxu1 %vm421_vm1, %v406_v62 }
 0x112   :  { %2695 = vmatmul.mubr.msk.f32.gmra.mxu1 %vm421_vm1, %v407_v63 }
 0x113   :  { %2773 = vmatprep.mubr.msk.f32.mxu1 %vm54_vm0, %v2976_v3  ;;  %v1411_v3 = vld [vmem:[%s3817_s1 + $0x130] sm:$0xff] }
 0x114   :  { %2821 = vmatprep.subr.mxu0 %v1411_v3 }
 0x116   :  { %2774 = vmatmul.mubr.msk.f32.vlgmr.msra.gmra.mxu1 %vm54_vm0, %v2992_v7  ;;  %v3411_v7 = vld [vmem:[%s3817_s1 + $0x78] ss:$0 sm:$0xff] }
 0x117   :  { %2776 = vmatprep.mubr.msk.f32.mxu1 %vm54_vm0, %v2997_v8 }
 0x11a   :  { %2777 = vmatmul.mubr.msk.f32.gmra.mxu1 %vm54_vm0, %v3012_v11 }
 0x11b   :  { %2779 = vmatprep.mubr.msk.f32.mxu1 %vm54_vm0, %v3020_v13 }
 0x11e   :  { %2780 = vmatmul.mubr.msk.f32.gmra.mxu1 %vm54_vm0, %v3032_v15 }
 0x11f   :  { %2782 = vmatprep.mubr.msk.f32.mxu1 %vm54_vm0, %v3037_v16 }
 0x122   :  { %2783 = vmatmul.mubr.msk.f32.gmra.mxu1 %vm54_vm0, %v3046_v17 }
 0x123   :  { %2785 = vmatprep.mubr.msk.f32.mxu1 %vm54_vm0, %v3051_v18 }
 0x126   :  { %2786 = vmatmul.mubr.msk.f32.gmra.mxu1 %vm54_vm0, %v3060_v19 }
 0x127   :  { %2788 = vmatprep.mubr.msk.f32.mxu1 %vm54_vm0, %v3065_v20 }
 0x12a   :  { %2789 = vmatmul.mubr.msk.f32.gmra.mxu1 %vm54_vm0, %v3074_v21 }
 0x12b   :  { %2791 = vmatprep.mubr.msk.f32.mxu1 %vm54_vm0, %v3079_v22  ;;  %v1410_v22 = vld [vmem:[%s3817_s1 + $0x128] sm:$0xff] }
 0x12e   :  { %2792 = vmatmul.mubr.msk.f32.gmra.mxu1 %vm54_vm0, %v3088_v23 }
 0x12f   :  { %2794 = vmatprep.mubr.msk.f32.mxu1 %vm54_vm0, %v3093_v24 }
 0x132   :  { %2795 = vmatmul.mubr.msk.f32.gmra.mxu1 %vm54_vm0, %v3102_v25  ;;  %v1409_v25 = vld [vmem:[%s3817_s1 + $0x120] sm:$0xff] }
 0x133   :  { %2797 = vmatprep.mubr.msk.f32.mxu1 %vm54_vm0, %v3107_v26 }
 0x136   :  { %2798 = vmatmul.mubr.msk.f32.gmra.mxu1 %vm54_vm0, %v3116_v27 }
 0x137   :  { %2800 = vmatprep.mubr.msk.f32.mxu1 %vm54_vm0, %v3121_v28 }
 0x13a   :  { %2801 = vmatmul.mubr.msk.f32.gmra.mxu1 %vm54_vm0, %v3130_v29 }
 0x13b   :  { %2803 = vmatprep.mubr.msk.f32.mxu1 %vm54_vm0, %v3135_v30  ;;  %v1408_v30 = vld [vmem:[%s3817_s1 + $0x118] sm:$0xff] }
 0x13e   :  { %2804 = vmatmul.mubr.msk.f32.gmra.mxu1 %vm54_vm0, %v3144_v31 }
 0x13f   :  { %2806 = vmatprep.mubr.msk.f32.mxu1 %vm54_vm0, %v3149_v32 }
 0x142   :  { %2807 = vmatmul.mubr.msk.f32.gmra.mxu1 %vm54_vm0, %v3158_v33  ;;  %v1407_v33 = vld [vmem:[%s3817_s1 + $0x110] sm:$0xff] }
 0x143   :  { %2809 = vmatprep.mubr.msk.f32.mxu1 %vm54_vm0, %v3163_v34 }
 0x146   :  { %2810 = vmatmul.mubr.msk.f32.gmra.mxu1 %vm54_vm0, %v3172_v35 }
 0x147   :  { %2812 = vmatprep.mubr.msk.f32.mxu1 %vm54_vm0, %v3177_v36 }
 0x14a   :  { %2813 = vmatmul.mubr.msk.f32.gmra.mxu1 %vm54_vm0, %v3186_v37 }
 0x14b   :  { %2815 = vmatprep.mubr.msk.f32.mxu1 %vm54_vm0, %v3191_v38  ;;  %v1406_v38 = vld [vmem:[%s3817_s1 + $0x108] sm:$0xff] }
 0x14e   :  { %2816 = vmatmul.mubr.msk.f32.gmra.mxu1 %vm54_vm0, %v3200_v39 }
 0x14f   :  { %2818 = vmatprep.mubr.msk.f32.mxu1 %vm54_vm0, %v3205_v40 }
 0x152   :  { %2819 = vmatmul.mubr.msk.f32.gmra.mxu1 %vm54_vm0, %v3214_v41  ;;  %v1405_v41 = vld [vmem:[%s3817_s1 + $0x100] sm:$0xff] }
 0x196   :  { %v2651_v8 = vpop.f32.mrf.mxu1 }
 0x197   :  { %v590_v11 = vadd.f32 %v2651_v8, %v3411_v7 }
 0x198   :  { %v584_v13 = vpop.f32.mrf.mxu1 }
 0x199   :  { %v585_v15 = vadd.f32 %v3411_v7, %v584_v13  ;;  %v744_v18 = vmax.f32 %v590_v11, 0.0 }
 0x19a   :  { %v2654_v16 = vpop.f32.mrf.mxu1 }
 0x19b   :  { %v743_v17 = vmax.f32 %v585_v15, 0.0  ;;  %v600_v19 = vadd.f32 %v2654_v16, %v3411_v7 }
 0x19c   :  { %v594_v20 = vpop.f32.mrf.mxu1 }
 0x19d   :  { %v595_v21 = vadd.f32 %v3411_v7, %v594_v20  ;;  %2713 = vmatprep.mubr.msk.f32.mxu0 %vm421_vm1, %v743_v17  ;;  %v746_v26 = vmax.f32 %v600_v19, 0.0 }
 0x19e   :  { %v2657_v23 = vpop.f32.mrf.mxu1  ;;  %2714 = vmatmul.mubr.msk.f32.vlgmr.msra.gmra.mxu0 %vm421_vm1, %v744_v18 }
 0x19f   :  { %v745_v24 = vmax.f32 %v595_v21, 0.0  ;;  %2822 = vmatpush3.msra.mxu0 %v1411_v3  ;;  %v610_v27 = vadd.f32 %v2657_v23, %v3411_v7 }
 0x1a0   :  { %v604_v28 = vpop.f32.mrf.mxu1  ;;  %2823 = vmatprep.subr.mxu0 %v1410_v22 }
 0x1a1   :  { %v605_v29 = vadd.f32 %v3411_v7, %v604_v28  ;;  %2716 = vmatprep.mubr.msk.f32.mxu0 %vm421_vm1, %v745_v24  ;;  %2824 = vmatpush3.msra.mxu0 %v1410_v22  ;;  %v748_v34 = vmax.f32 %v610_v27, 0.0 }
 0x1a2   :  { %v2660_v31 = vpop.f32.mrf.mxu1  ;;  %2717 = vmatmul.mubr.msk.f32.gmra.mxu0 %vm421_vm1, %v746_v26  ;;  %2825 = vmatprep.subr.mxu0 %v1409_v25 }
 0x1a3   :  { %v747_v32 = vmax.f32 %v605_v29, 0.0  ;;  %2826 = vmatpush3.msra.mxu0 %v1409_v25  ;;  %v620_v35 = vadd.f32 %v2660_v31, %v3411_v7 }
 0x1a4   :  { %v614_v36 = vpop.f32.mrf.mxu1  ;;  %2827 = vmatprep.subr.mxu0 %v1408_v30 }
 0x1a5   :  { %v615_v37 = vadd.f32 %v3411_v7, %v614_v36  ;;  %2719 = vmatprep.mubr.msk.f32.mxu0 %vm421_vm1, %v747_v32  ;;  %2828 = vmatpush3.msra.mxu0 %v1408_v30  ;;  %v750_v55 = vmax.f32 %v620_v35, 0.0 }
 0x1a6   :  { %v2663_v39 = vpop.f32.mrf.mxu1  ;;  %2720 = vmatmul.mubr.msk.f32.gmra.mxu0 %vm421_vm1, %v748_v34  ;;  %2829 = vmatprep.subr.mxu0 %v1407_v33 }
 0x1a7   :  { %v749_v40 = vmax.f32 %v615_v37, 0.0  ;;  %2830 = vmatpush3.msra.mxu0 %v1407_v33  ;;  %v630_v0 = vadd.f32 %v2663_v39, %v3411_v7 }
 0x1a8   :  { %v624_v1 = vpop.f32.mrf.mxu1  ;;  %2831 = vmatprep.subr.mxu0 %v1406_v38 }
 0x1a9   :  { %v625_v2 = vadd.f32 %v3411_v7, %v624_v1  ;;  %2722 = vmatprep.mubr.msk.f32.mxu0 %vm421_vm1, %v749_v40  ;;  %2832 = vmatpush3.msra.mxu0 %v1406_v38  ;;  %v752_v6 = vmax.f32 %v630_v0, 0.0 }
 0x1aa   :  { %v2666_v4 = vpop.f32.mrf.mxu1  ;;  %2723 = vmatmul.mubr.msk.f32.gmra.mxu0 %vm421_vm1, %v750_v55  ;;  %2833 = vmatprep.subr.mxu0 %v1405_v41 }
 0x1ab   :  { %v751_v5 = vmax.f32 %v625_v2, 0.0  ;;  %2834 = vmatpush3.msra.mxu0 %v1405_v41  ;;  %v640_v9 = vadd.f32 %v2666_v4, %v3411_v7 }
 0x1ac   :  { %v634_v10 = vpop.f32.mrf.mxu1 }
 0x1ad   :  { %v635_v12 = vadd.f32 %v3411_v7, %v634_v10  ;;  %2725 = vmatprep.mubr.msk.f32.mxu0 %vm421_vm1, %v751_v5  ;;  %v754_v43 = vmax.f32 %v640_v9, 0.0 }
 0x1ae   :  { %v2669_v14 = vpop.f32.mrf.mxu1  ;;  %2726 = vmatmul.mubr.msk.f32.gmra.mxu0 %vm421_vm1, %v752_v6 }
 0x1af   :  { %v753_v42 = vmax.f32 %v635_v12, 0.0  ;;  %v650_v44 = vadd.f32 %v2669_v14, %v3411_v7  ;;  %v1404_v12 = vld [vmem:[%s3817_s1 + $0xf8] sm:$0xff] }
 0x1b0   :  { %v644_v45 = vpop.f32.mrf.mxu1  ;;  %2835 = vmatprep.subr.mxu0 %v1404_v12 }
 0x1b1   :  { %v645_v46 = vadd.f32 %v3411_v7, %v644_v45  ;;  %2728 = vmatprep.mubr.msk.f32.mxu0 %vm421_vm1, %v753_v42  ;;  %v756_v49 = vmax.f32 %v650_v44, 0.0  ;;  %2836 = vmatpush3.msra.mxu0 %v1404_v12  ;;  %v1775_v44 = vld [vmem:[%s3817_s1 + $0x168] sm:$0xff] }
 0x1b2   :  { %v2672_v47 = vpop.f32.mrf.mxu1  ;;  %2729 = vmatmul.mubr.msk.f32.gmra.mxu0 %vm421_vm1, %v754_v43  ;;  %v1776_v43 = vld [vmem:[%s3817_s1 + $0x170] sm:$0xff] }
 0x1b3   :  { %v755_v48 = vmax.f32 %v645_v46, 0.0  ;;  %v660_v50 = vadd.f32 %v2672_v47, %v3411_v7  ;;  %v1774_v46 = vld [vmem:[%s3817_s1 + $0x160] sm:$0xff]  ;;  %v1773_v47 = vld [vmem:[%s3817_s1 + $0x158] sm:$0xff] }
 0x1b4   :  { %v654_v51 = vpop.f32.mrf.mxu1 }
 0x1b5   :  { %v655_v52 = vadd.f32 %v3411_v7, %v654_v51  ;;  %2731 = vmatprep.mubr.msk.f32.mxu0 %vm421_vm1, %v755_v48  ;;  %v758_v56 = vmax.f32 %v660_v50, 0.0  ;;  %v1771_v50 = vld [vmem:[%s3817_s1 + $0x148] sm:$0xff] }
 0x1b6   :  { %v2675_v53 = vpop.f32.mrf.mxu1  ;;  %2732 = vmatmul.mubr.msk.f32.gmra.mxu0 %vm421_vm1, %v756_v49  ;;  %v1772_v49 = vld [vmem:[%s3817_s1 + $0x150] sm:$0xff] }
 0x1b7   :  { %v757_v54 = vmax.f32 %v655_v52, 0.0  ;;  %v670_v57 = vadd.f32 %v2675_v53, %v3411_v7  ;;  %v1770_v52 = vld [vmem:[%s3817_s1 + $0x140] sm:$0xff] }
 0x1b8   :  { %v664_v58 = vpop.f32.mrf.mxu1 }
 0x1b9   :  { %v665_v59 = vadd.f32 %v3411_v7, %v664_v58  ;;  %2734 = vmatprep.mubr.msk.f32.mxu0 %vm421_vm1, %v757_v54  ;;  %v760_v62 = vmax.f32 %v670_v57, 0.0 }
 0x1ba   :  { %v2678_v60 = vpop.f32.mrf.mxu1  ;;  %2735 = vmatmul.mubr.msk.f32.gmra.mxu0 %vm421_vm1, %v758_v56 }
 0x1bb   :  { %v759_v61 = vmax.f32 %v665_v59, 0.0  ;;  %v680_v63 = vadd.f32 %v2678_v60, %v3411_v7 }
 0x1bc   :  { %v674_v3 = vpop.f32.mrf.mxu1 }
 0x1bd   :  { %v675_v8 = vadd.f32 %v3411_v7, %v674_v3  ;;  %2737 = vmatprep.mubr.msk.f32.mxu0 %vm421_vm1, %v759_v61  ;;  %v762_v15 = vmax.f32 %v680_v63, 0.0 }
 0x1be   :  { %v2681_v11 = vpop.f32.mrf.mxu1  ;;  %2738 = vmatmul.mubr.msk.f32.gmra.mxu0 %vm421_vm1, %v760_v62 }
 0x1bf   :  { %v761_v13 = vmax.f32 %v675_v8, 0.0  ;;  %v690_v16 = vadd.f32 %v2681_v11, %v3411_v7 }
 0x1c0   :  { %v684_v17 = vpop.f32.mrf.mxu1 }
 0x1c1   :  { %v685_v18 = vadd.f32 %v3411_v7, %v684_v17  ;;  %2740 = vmatprep.mubr.msk.f32.mxu0 %vm421_vm1, %v761_v13  ;;  %v764_v21 = vmax.f32 %v690_v16, 0.0  ;;  %v3533_v13 = vld [vmem:[%s3817_s1 + $0xf0] ss:$0 sm:$0xff] }
 0x1c2   :  { %v2684_v19 = vpop.f32.mrf.mxu1  ;;  %2741 = vmatmul.mubr.msk.f32.gmra.mxu0 %vm421_vm1, %v762_v15 }
 0x1c3   :  { %v763_v20 = vmax.f32 %v685_v18, 0.0  ;;  %v700_v22 = vadd.f32 %v2684_v19, %v3411_v7 }
 0x1c4   :  { %v694_v23 = vpop.f32.mrf.mxu1 }
 0x1c5   :  { %v695_v24 = vadd.f32 %v3411_v7, %v694_v23  ;;  %2743 = vmatprep.mubr.msk.f32.mxu0 %vm421_vm1, %v763_v20  ;;  %v766_v27 = vmax.f32 %v700_v22, 0.0 }
 0x1c6   :  { %v2687_v25 = vpop.f32.mrf.mxu1  ;;  %2744 = vmatmul.mubr.msk.f32.gmra.mxu0 %vm421_vm1, %v764_v21 }
 0x1c7   :  { %v765_v26 = vmax.f32 %v695_v24, 0.0  ;;  %v710_v28 = vadd.f32 %v2687_v25, %v3411_v7 }
 0x1c8   :  { %v704_v29 = vpop.f32.mrf.mxu1 }
 0x1c9   :  { %v705_v30 = vadd.f32 %v3411_v7, %v704_v29  ;;  %2746 = vmatprep.mubr.msk.f32.mxu0 %vm421_vm1, %v765_v26  ;;  %v768_v33 = vmax.f32 %v710_v28, 0.0 }
 0x1ca   :  { %v2690_v31 = vpop.f32.mrf.mxu1  ;;  %2747 = vmatmul.mubr.msk.f32.gmra.mxu0 %vm421_vm1, %v766_v27 }
 0x1cb   :  { %v767_v32 = vmax.f32 %v705_v30, 0.0  ;;  %v720_v34 = vadd.f32 %v2690_v31, %v3411_v7 }
 0x1cc   :  { %v714_v35 = vpop.f32.mrf.mxu1 }
 0x1cd   :  { %v715_v36 = vadd.f32 %v3411_v7, %v714_v35  ;;  %2749 = vmatprep.mubr.msk.f32.mxu0 %vm421_vm1, %v767_v32  ;;  %v770_v39 = vmax.f32 %v720_v34, 0.0 }
 0x1ce   :  { %v2693_v37 = vpop.f32.mrf.mxu1  ;;  %2750 = vmatmul.mubr.msk.f32.gmra.mxu0 %vm421_vm1, %v768_v33 }
 0x1cf   :  { %v769_v38 = vmax.f32 %v715_v36, 0.0  ;;  %v730_v40 = vadd.f32 %v2693_v37, %v3411_v7 }
 0x1d0   :  { %v724_v41 = vpop.f32.mrf.mxu1 }
 0x1d1   :  { %v725_v55 = vadd.f32 %v3411_v7, %v724_v41  ;;  %2752 = vmatprep.mubr.msk.f32.mxu0 %vm421_vm1, %v769_v38  ;;  %v772_v2 = vmax.f32 %v730_v40, 0.0 }
 0x1d2   :  { %v2696_v0 = vpop.f32.mrf.mxu1  ;;  %2753 = vmatmul.mubr.msk.f32.gmra.mxu0 %vm421_vm1, %v770_v39 }
 0x1d3   :  { %v771_v1 = vmax.f32 %v725_v55, 0.0  ;;  %v740_v4 = vadd.f32 %v2696_v0, %v3411_v7 }
 0x1d4   :  { %v734_v5 = vpop.f32.mrf.mxu1 }
 0x1d5   :  { %v735_v6 = vadd.f32 %v3411_v7, %v734_v5  ;;  %2755 = vmatprep.mubr.msk.f32.mxu0 %vm421_vm1, %v771_v1  ;;  %v774_v10 = vmax.f32 %v740_v4, 0.0  ;;  %v1777_v7 = vld [vmem:[%s3817_s1 + $0x178] sm:$0xff] }
 0x1d6   :  { %2756 = vmatmul.mubr.msk.f32.gmra.mxu0 %vm421_vm1, %v772_v2  ;;  %v2775_v14 = vpop.f32.mrf.mxu1  ;;  %2885 = vmatprep.subr.mxu1 %v1777_v7 }
 0x1d7   :  { %v773_v9 = vmax.f32 %v735_v6, 0.0  ;;  %2886 = vmatpush3.msra.mxu1 %v1777_v7 }
 0x1d8   :  { %v1176_v42 = vpop.f32.mrf.mxu1  ;;  %2887 = vmatprep.subr.mxu1 %v1776_v43 }
 0x1d9   :  { %2758 = vmatprep.mubr.msk.f32.mxu0 %vm421_vm1, %v773_v9  ;;  %2888 = vmatpush3.msra.mxu1 %v1776_v43 }
 0x1da   :  { %2759 = vmatmul.mubr.msk.f32.gmra.mxu0 %vm421_vm1, %v774_v10  ;;  %v2778_v45 = vpop.f32.mrf.mxu1  ;;  %2889 = vmatprep.subr.mxu1 %v1775_v44 }
 0x1db   :  { %2890 = vmatpush3.msra.mxu1 %v1775_v44 }
 0x1dc   :  { %2891 = vmatprep.subr.mxu1 %v1774_v46  ;;  %v1186_v48 = vpop.f32.mrf.mxu1 }
 0x1dd   :  { %2892 = vmatpush3.msra.mxu1 %v1774_v46 }
 0x1de   :  { %2893 = vmatprep.subr.mxu1 %v1773_v47  ;;  %v2781_v51 = vpop.f32.mrf.mxu1 }
 0x1df   :  { %2894 = vmatpush3.msra.mxu1 %v1773_v47 }
 0x1e0   :  { %2895 = vmatprep.subr.mxu1 %v1772_v49  ;;  %v1196_v53 = vpop.f32.mrf.mxu1 }
 0x1e1   :  { %2896 = vmatpush3.msra.mxu1 %v1772_v49 }
 0x1e2   :  { %2897 = vmatprep.subr.mxu1 %v1771_v50  ;;  %v2784_v54 = vpop.f32.mrf.mxu1 }
 0x1e3   :  { %2898 = vmatpush3.msra.mxu1 %v1771_v50 }
 0x1e4   :  { %2899 = vmatprep.subr.mxu1 %v1770_v52  ;;  %v1206_v56 = vpop.f32.mrf.mxu1 }
 0x1e5   :  { %2900 = vmatpush3.msra.mxu1 %v1770_v52 }
 0x1e6   :  { %v2787_v57 = vpop.f32.mrf.mxu1 }
 0x1e8   :  { %v1216_v58 = vpop.f32.mrf.mxu1 }
 0x1ea   :  { %v2790_v59 = vpop.f32.mrf.mxu1 }
 0x1ec   :  { %v1226_v60 = vpop.f32.mrf.mxu1 }
 0x1ee   :  { %v3522_v61 = vpop.f32.mrf.mxu1 }
 0x1f0   :  { %v3524_v62 = vpop.f32.mrf.mxu1 }
 0x1f2   :  { %v3526_v63 = vpop.f32.mrf.mxu1 }
 0x1f4   :  { %v3528_v3 = vpop.f32.mrf.mxu1 }
 0x1f6   :  { %v3535_v16 = vpop.f32.mrf.mxu1 }
 0x1f8   :  { %v3539_v23 = vpop.f32.mrf.mxu1 }
 0x1fa   :  { %v3545_v32 = vpop.f32.mrf.mxu1 }
 0x1fc   :  { %v3551_v41 = vpop.f32.mrf.mxu1 }
 0x1fe   :  { %v2805_v10 = vpop.f32.mrf.mxu1 }
 0x200   :  { %v1276_v47 = vpop.f32.mrf.mxu1 }
 0x25e   :  { %v2715_v8 = vpop.f32.mrf.mxu0 }
 0x25f   :  { %v1182_v11 = vadd.f32 %v2775_v14, %v2715_v8 }
 0x260   :  { %v951_v15 = vpop.f32.mrf.mxu0 }
 0x261   :  { %v1177_v17 = vadd.f32 %v1176_v42, %v951_v15  ;;  %v1341_v18 = vadd.f32 %v3533_v13, %v1182_v11 }
 0x262   :  { %v2718_v19 = vpop.f32.mrf.mxu0 }
 0x263   :  { %v1340_v20 = vadd.f32 %v3533_v13, %v1177_v17  ;;  %v1192_v21 = vadd.f32 %v2778_v45, %v2718_v19  ;;  %v1373_v26 = vmax.f32 %v1341_v18, 0.0 }
 0x264   :  { %v961_v22 = vpop.f32.mrf.mxu0 }
 0x265   :  { %v1372_v24 = vmax.f32 %v1340_v20, 0.0  ;;  %v1187_v25 = vadd.f32 %v1186_v48, %v961_v22  ;;  %v1343_v27 = vadd.f32 %v3533_v13, %v1192_v21 }
 0x266   :  { %v2721_v28 = vpop.f32.mrf.mxu0 }
 0x267   :  { %v1342_v29 = vadd.f32 %v3533_v13, %v1187_v25  ;;  %v1202_v30 = vadd.f32 %v2781_v51, %v2721_v28  ;;  %2837 = vmatprep.mubr.msk.f32.mxu0 %vm421_vm1, %v1372_v24  ;;  %v1375_v35 = vmax.f32 %v1343_v27, 0.0 }
 0x268   :  { %v971_v31 = vpop.f32.mrf.mxu0  ;;  %2838 = vmatmul.mubr.msk.f32.vlgmr.msra.gmra.mxu0 %vm421_vm1, %v1373_v26 }
 0x269   :  { %v1374_v33 = vmax.f32 %v1342_v29, 0.0  ;;  %v1197_v34 = vadd.f32 %v1196_v53, %v971_v31  ;;  %v1345_v36 = vadd.f32 %v3533_v13, %v1202_v30 }
 0x26a   :  { %v2724_v37 = vpop.f32.mrf.mxu0 }
 0x26b   :  { %v1344_v38 = vadd.f32 %v3533_v13, %v1197_v34  ;;  %v1212_v39 = vadd.f32 %v2784_v54, %v2724_v37  ;;  %2840 = vmatprep.mubr.msk.f32.mxu0 %vm421_vm1, %v1374_v33  ;;  %v1377_v1 = vmax.f32 %v1345_v36, 0.0 }
 0x26c   :  { %v981_v40 = vpop.f32.mrf.mxu0  ;;  %2841 = vmatmul.mubr.msk.f32.gmra.mxu0 %vm421_vm1, %v1375_v35 }
 0x26d   :  { %v1376_v55 = vmax.f32 %v1344_v38, 0.0  ;;  %v1207_v0 = vadd.f32 %v1206_v56, %v981_v40  ;;  %v1347_v2 = vadd.f32 %v3533_v13, %v1212_v39 }
 0x26e   :  { %v2727_v4 = vpop.f32.mrf.mxu0 }
 0x26f   :  { %v1346_v5 = vadd.f32 %v3533_v13, %v1207_v0  ;;  %v1222_v6 = vadd.f32 %v2787_v57, %v2727_v4  ;;  %2843 = vmatprep.mubr.msk.f32.mxu0 %vm421_vm1, %v1376_v55  ;;  %v1379_v42 = vmax.f32 %v1347_v2, 0.0  ;;  %v2808_v57 = vpop.f32.mrf.mxu1 }
 0x270   :  { %v991_v9 = vpop.f32.mrf.mxu0  ;;  %2844 = vmatmul.mubr.msk.f32.gmra.mxu0 %vm421_vm1, %v1377_v1 }
 0x271   :  { %v1378_v12 = vmax.f32 %v1346_v5, 0.0  ;;  %v1217_v14 = vadd.f32 %v1216_v58, %v991_v9  ;;  %v1349_v7 = vadd.f32 %v3533_v13, %v1222_v6  ;;  %v1286_v18 = vpop.f32.mrf.mxu1 }
 0x272   :  { %v2730_v43 = vpop.f32.mrf.mxu0 }
 0x273   :  { %v1348_v44 = vadd.f32 %v3533_v13, %v1217_v14  ;;  %v1232_v45 = vadd.f32 %v2790_v59, %v2730_v43  ;;  %2846 = vmatprep.mubr.msk.f32.mxu0 %vm421_vm1, %v1378_v12  ;;  %v1381_v50 = vmax.f32 %v1349_v7, 0.0  ;;  %v2811_v26 = vpop.f32.mrf.mxu1 }
 0x274   :  { %v1001_v46 = vpop.f32.mrf.mxu0  ;;  %2847 = vmatmul.mubr.msk.f32.gmra.mxu0 %vm421_vm1, %v1379_v42 }
 0x275   :  { %v1380_v48 = vmax.f32 %v1348_v44, 0.0  ;;  %v1227_v49 = vadd.f32 %v1226_v60, %v1001_v46  ;;  %v1351_v51 = vadd.f32 %v3533_v13, %v1232_v45  ;;  %v1296_v34 = vpop.f32.mrf.mxu1 }
 0x276   :  { %v2733_v52 = vpop.f32.mrf.mxu0 }
 0x277   :  { %v1350_v53 = vadd.f32 %v3533_v13, %v1227_v49  ;;  %v1242_v54 = vadd.f32 %v3522_v61, %v2733_v52  ;;  %2849 = vmatprep.mubr.msk.f32.mxu0 %vm421_vm1, %v1380_v48  ;;  %v1383_v8 = vmax.f32 %v1351_v51, 0.0 }
 0x278   :  { %v1011_v56 = vpop.f32.mrf.mxu0  ;;  %2850 = vmatmul.mubr.msk.f32.gmra.mxu0 %vm421_vm1, %v1381_v50 }
 0x279   :  { %v1382_v58 = vmax.f32 %v1350_v53, 0.0  ;;  %v1237_v59 = vadd.f32 %v3524_v62, %v1011_v56  ;;  %v1353_v60 = vadd.f32 %v3533_v13, %v1242_v54 }
 0x27a   :  { %v2736_v11 = vpop.f32.mrf.mxu0 }
 0x27b   :  { %v1352_v15 = vadd.f32 %v3533_v13, %v1237_v59  ;;  %v1252_v17 = vadd.f32 %v3526_v63, %v2736_v11  ;;  %2852 = vmatprep.mubr.msk.f32.mxu0 %vm421_vm1, %v1382_v58  ;;  %v1385_v21 = vmax.f32 %v1353_v60, 0.0 }
 0x27c   :  { %v1021_v61 = vpop.f32.mrf.mxu0  ;;  %2853 = vmatmul.mubr.msk.f32.gmra.mxu0 %vm421_vm1, %v1383_v8 }
 0x27d   :  { %v1384_v19 = vmax.f32 %v1352_v15, 0.0  ;;  %v1247_v20 = vadd.f32 %v3528_v3, %v1021_v61  ;;  %v1355_v62 = vadd.f32 %v3533_v13, %v1252_v17 }
 0x27e   :  { %v2739_v22 = vpop.f32.mrf.mxu0 }
 0x27f   :  { %v1354_v24 = vadd.f32 %v3533_v13, %v1247_v20  ;;  %v1262_v25 = vadd.f32 %v3535_v16, %v2739_v22  ;;  %2855 = vmatprep.mubr.msk.f32.mxu0 %vm421_vm1, %v1384_v19  ;;  %v1387_v29 = vmax.f32 %v1355_v62, 0.0 }
 0x280   :  { %v1031_v63 = vpop.f32.mrf.mxu0  ;;  %2856 = vmatmul.mubr.msk.f32.gmra.mxu0 %vm421_vm1, %v1385_v21 }
 0x281   :  { %v1386_v27 = vmax.f32 %v1354_v24, 0.0  ;;  %v1257_v28 = vadd.f32 %v3539_v23, %v1031_v63  ;;  %v1357_v3 = vadd.f32 %v3533_v13, %v1262_v25 }
 0x282   :  { %v2742_v30 = vpop.f32.mrf.mxu0 }
 0x283   :  { %v1356_v31 = vadd.f32 %v3533_v13, %v1257_v28  ;;  %v1272_v33 = vadd.f32 %v3545_v32, %v2742_v30  ;;  %2858 = vmatprep.mubr.msk.f32.mxu0 %vm421_vm1, %v1386_v27  ;;  %v1389_v37 = vmax.f32 %v1357_v3, 0.0  ;;  %v2814_v32 = vpop.f32.mrf.mxu1 }
 0x284   :  { %v1041_v16 = vpop.f32.mrf.mxu0  ;;  %2859 = vmatmul.mubr.msk.f32.gmra.mxu0 %vm421_vm1, %v1387_v29 }
 0x285   :  { %v1388_v35 = vmax.f32 %v1356_v31, 0.0  ;;  %v1267_v36 = vadd.f32 %v3551_v41, %v1041_v16  ;;  %v1359_v23 = vadd.f32 %v3533_v13, %v1272_v33  ;;  %v3618_v16 = vld [vmem:[%s3817_s1 + $0x138] ss:$0 sm:$0xff] }
 0x286   :  { %v2745_v38 = vpop.f32.mrf.mxu0 }
 0x287   :  { %v1358_v39 = vadd.f32 %v3533_v13, %v1267_v36  ;;  %v1282_v40 = vadd.f32 %v2805_v10, %v2745_v38  ;;  %2861 = vmatprep.mubr.msk.f32.mxu0 %vm421_vm1, %v1388_v35  ;;  %v1391_v2 = vmax.f32 %v1359_v23, 0.0  ;;  %v1306_v10 = vpop.f32.mrf.mxu1 }
 0x288   :  { %v1051_v55 = vpop.f32.mrf.mxu0  ;;  %2862 = vmatmul.mubr.msk.f32.gmra.mxu0 %vm421_vm1, %v1389_v37 }
 0x289   :  { %v1390_v0 = vmax.f32 %v1358_v39, 0.0  ;;  %v1277_v1 = vadd.f32 %v1276_v47, %v1051_v55  ;;  %v1361_v4 = vadd.f32 %v3533_v13, %v1282_v40  ;;  %v2817_v47 = vpop.f32.mrf.mxu1 }
 0x28a   :  { %v2748_v5 = vpop.f32.mrf.mxu0 }
 0x28b   :  { %v1360_v41 = vadd.f32 %v3533_v13, %v1277_v1  ;;  %v1292_v6 = vadd.f32 %v2808_v57, %v2748_v5  ;;  %2864 = vmatprep.mubr.msk.f32.mxu0 %vm421_vm1, %v1390_v0  ;;  %v1393_v42 = vmax.f32 %v1361_v4, 0.0  ;;  %v1316_v57 = vpop.f32.mrf.mxu1 }
 0x28c   :  { %v1061_v9 = vpop.f32.mrf.mxu0  ;;  %2865 = vmatmul.mubr.msk.f32.gmra.mxu0 %vm421_vm1, %v1391_v2 }
 0x28d   :  { %v1392_v12 = vmax.f32 %v1360_v41, 0.0  ;;  %v1287_v14 = vadd.f32 %v1286_v18, %v1061_v9  ;;  %v1363_v7 = vadd.f32 %v3533_v13, %v1292_v6  ;;  %v2820_v18 = vpop.f32.mrf.mxu1 }
 0x28e   :  { %v2751_v43 = vpop.f32.mrf.mxu0 }
 0x28f   :  { %v1362_v44 = vadd.f32 %v3533_v13, %v1287_v14  ;;  %v1302_v45 = vadd.f32 %v2811_v26, %v2751_v43  ;;  %2867 = vmatprep.mubr.msk.f32.mxu0 %vm421_vm1, %v1392_v12  ;;  %v1395_v50 = vmax.f32 %v1363_v7, 0.0  ;;  %v1326_v63 = vpop.f32.mrf.mxu1 }
 0x290   :  { %v1071_v46 = vpop.f32.mrf.mxu0  ;;  %2868 = vmatmul.mubr.msk.f32.gmra.mxu0 %vm421_vm1, %v1393_v42 }
 0x291   :  { %v1394_v48 = vmax.f32 %v1362_v44, 0.0  ;;  %v1297_v49 = vadd.f32 %v1296_v34, %v1071_v46  ;;  %v1365_v51 = vadd.f32 %v3533_v13, %v1302_v45 }
 0x292   :  { %v2754_v52 = vpop.f32.mrf.mxu0 }
 0x293   :  { %v1364_v53 = vadd.f32 %v3533_v13, %v1297_v49  ;;  %v1312_v54 = vadd.f32 %v2814_v32, %v2754_v52  ;;  %2870 = vmatprep.mubr.msk.f32.mxu0 %vm421_vm1, %v1394_v48  ;;  %v1397_v8 = vmax.f32 %v1365_v51, 0.0 }
 0x294   :  { %v1081_v56 = vpop.f32.mrf.mxu0  ;;  %2871 = vmatmul.mubr.msk.f32.gmra.mxu0 %vm421_vm1, %v1395_v50 }
 0x295   :  { %v1396_v58 = vmax.f32 %v1364_v53, 0.0  ;;  %v1307_v59 = vadd.f32 %v1306_v10, %v1081_v56  ;;  %v1367_v60 = vadd.f32 %v3533_v13, %v1312_v54 }
 0x296   :  { %v2757_v11 = vpop.f32.mrf.mxu0 }
 0x297   :  { %v1366_v15 = vadd.f32 %v3533_v13, %v1307_v59  ;;  %v1322_v17 = vadd.f32 %v2817_v47, %v2757_v11  ;;  %2873 = vmatprep.mubr.msk.f32.mxu0 %vm421_vm1, %v1396_v58  ;;  %v1399_v21 = vmax.f32 %v1367_v60, 0.0 }
 0x298   :  { %v1091_v61 = vpop.f32.mrf.mxu0  ;;  %2874 = vmatmul.mubr.msk.f32.gmra.mxu0 %vm421_vm1, %v1397_v8 }
 0x299   :  { %v1398_v19 = vmax.f32 %v1366_v15, 0.0  ;;  %v1317_v20 = vadd.f32 %v1316_v57, %v1091_v61  ;;  %v1369_v62 = vadd.f32 %v3533_v13, %v1322_v17 }
 0x29a   :  { %v2760_v22 = vpop.f32.mrf.mxu0 }
 0x29b   :  { %v1368_v24 = vadd.f32 %v3533_v13, %v1317_v20  ;;  %v1332_v25 = vadd.f32 %v2820_v18, %v2760_v22  ;;  %2876 = vmatprep.mubr.msk.f32.mxu0 %vm421_vm1, %v1398_v19  ;;  %v1401_v29 = vmax.f32 %v1369_v62, 0.0 }
 0x29c   :  { %v1101_v26 = vpop.f32.mrf.mxu0  ;;  %2877 = vmatmul.mubr.msk.f32.gmra.mxu0 %vm421_vm1, %v1399_v21 }
 0x29d   :  { %v1400_v27 = vmax.f32 %v1368_v24, 0.0  ;;  %v1327_v28 = vadd.f32 %v1326_v63, %v1101_v26  ;;  %v1371_v3 = vadd.f32 %v3533_v13, %v1332_v25 }
 0x29f   :  { %v1370_v30 = vadd.f32 %v3533_v13, %v1327_v28  ;;  %2879 = vmatprep.mubr.msk.f32.mxu0 %vm421_vm1, %v1400_v27  ;;  %v1403_v33 = vmax.f32 %v1371_v3, 0.0 }
 0x2a0   :  { %2880 = vmatmul.mubr.msk.f32.gmra.mxu0 %vm421_vm1, %v1401_v29 }
 0x2a1   :  { %v1402_v31 = vmax.f32 %v1370_v30, 0.0 }
 0x2a3   :  { %2882 = vmatprep.mubr.msk.f32.mxu0 %vm421_vm1, %v1402_v31 }
 0x2a4   :  { %2883 = vmatmul.mubr.msk.f32.gmra.mxu0 %vm421_vm1, %v1403_v33 }
 0x328   :  { %v2839_v34 = vpop.f32.mrf.mxu0 }
 0x329   :  { %v1585_v35 = vadd.f32 %v2839_v34, %v3618_v16 }
 0x32a   :  { %v1579_v36 = vpop.f32.mrf.mxu0 }
 0x32b   :  { %v1580_v13 = vadd.f32 %v3618_v16, %v1579_v36  ;;  %v1739_v38 = vmax.f32 %v1585_v35, 0.0 }
 0x32c   :  { %v2842_v37 = vpop.f32.mrf.mxu0 }
 0x32d   :  { %v1738_v23 = vmax.f32 %v1580_v13, 0.0  ;;  %v1595_v39 = vadd.f32 %v2842_v37, %v3618_v16 }
 0x32e   :  { %v1589_v40 = vpop.f32.mrf.mxu0 }
 0x32f   :  { %v1590_v55 = vadd.f32 %v3618_v16, %v1589_v40  ;;  %2901 = vmatprep.mubr.msk.f32.mxu1 %vm421_vm1, %v1738_v23  ;;  %v1741_v1 = vmax.f32 %v1595_v39, 0.0 }
 0x330   :  { %v2845_v32 = vpop.f32.mrf.mxu0  ;;  %2902 = vmatmul.mubr.msk.f32.vlgmr.msra.gmra.mxu1 %vm421_vm1, %v1739_v38 }
 0x331   :  { %v1740_v0 = vmax.f32 %v1590_v55, 0.0  ;;  %v1605_v2 = vadd.f32 %v2845_v32, %v3618_v16 }
 0x332   :  { %v1599_v4 = vpop.f32.mrf.mxu0 }
 0x333   :  { %v1600_v5 = vadd.f32 %v3618_v16, %v1599_v4  ;;  %2904 = vmatprep.mubr.msk.f32.mxu1 %vm421_vm1, %v1740_v0  ;;  %v1743_v9 = vmax.f32 %v1605_v2, 0.0 }
 0x334   :  { %v2848_v41 = vpop.f32.mrf.mxu0  ;;  %2905 = vmatmul.mubr.msk.f32.gmra.mxu1 %vm421_vm1, %v1741_v1 }
 0x335   :  { %v1742_v6 = vmax.f32 %v1600_v5, 0.0  ;;  %v1615_v10 = vadd.f32 %v2848_v41, %v3618_v16 }
 0x336   :  { %v1609_v12 = vpop.f32.mrf.mxu0 }
 0x337   :  { %v1610_v14 = vadd.f32 %v3618_v16, %v1609_v12  ;;  %2907 = vmatprep.mubr.msk.f32.mxu1 %vm421_vm1, %v1742_v6  ;;  %v1745_v43 = vmax.f32 %v1615_v10, 0.0 }
 0x338   :  { %v2851_v42 = vpop.f32.mrf.mxu0  ;;  %2908 = vmatmul.mubr.msk.f32.gmra.mxu1 %vm421_vm1, %v1743_v9 }
 0x339   :  { %v1744_v7 = vmax.f32 %v1610_v14, 0.0  ;;  %v1625_v44 = vadd.f32 %v2851_v42, %v3618_v16 }
 0x33a   :  { %v1619_v45 = vpop.f32.mrf.mxu0 }
 0x33b   :  { %v1620_v46 = vadd.f32 %v3618_v16, %v1619_v45  ;;  %2910 = vmatprep.mubr.msk.f32.mxu1 %vm421_vm1, %v1744_v7  ;;  %v1747_v49 = vmax.f32 %v1625_v44, 0.0 }
 0x33c   :  { %v2854_v47 = vpop.f32.mrf.mxu0  ;;  %2911 = vmatmul.mubr.msk.f32.gmra.mxu1 %vm421_vm1, %v1745_v43 }
 0x33d   :  { %v1746_v48 = vmax.f32 %v1620_v46, 0.0  ;;  %v1635_v50 = vadd.f32 %v2854_v47, %v3618_v16 }
 0x33e   :  { %v1629_v51 = vpop.f32.mrf.mxu0 }
 0x33f   :  { %v1630_v52 = vadd.f32 %v3618_v16, %v1629_v51  ;;  %2913 = vmatprep.mubr.msk.f32.mxu1 %vm421_vm1, %v1746_v48  ;;  %v1749_v56 = vmax.f32 %v1635_v50, 0.0 }
 0x340   :  { %v2857_v53 = vpop.f32.mrf.mxu0  ;;  %2914 = vmatmul.mubr.msk.f32.gmra.mxu1 %vm421_vm1, %v1747_v49 }
 0x341   :  { %v1748_v54 = vmax.f32 %v1630_v52, 0.0  ;;  %v1645_v57 = vadd.f32 %v2857_v53, %v3618_v16  ;;  %v3687_v52 = vld [vmem:[%s3817_s1 + $0x180] ss:$0 sm:$0xff] }
 0x342   :  { %v1639_v58 = vpop.f32.mrf.mxu0 }
 0x343   :  { %v1640_v59 = vadd.f32 %v3618_v16, %v1639_v58  ;;  %2916 = vmatprep.mubr.msk.f32.mxu1 %vm421_vm1, %v1748_v54  ;;  %v1751_v11 = vmax.f32 %v1645_v57, 0.0 }
 0x344   :  { %v2860_v8 = vpop.f32.mrf.mxu0  ;;  %2917 = vmatmul.mubr.msk.f32.gmra.mxu1 %vm421_vm1, %v1749_v56 }
 0x345   :  { %v1750_v60 = vmax.f32 %v1640_v59, 0.0  ;;  %v1655_v15 = vadd.f32 %v2860_v8, %v3618_v16 }
 0x346   :  { %v1649_v17 = vpop.f32.mrf.mxu0 }
 0x347   :  { %v1650_v61 = vadd.f32 %v3618_v16, %v1649_v17  ;;  %2919 = vmatprep.mubr.msk.f32.mxu1 %vm421_vm1, %v1750_v60  ;;  %v1753_v20 = vmax.f32 %v1655_v15, 0.0 }
 0x348   :  { %v2863_v18 = vpop.f32.mrf.mxu0  ;;  %2920 = vmatmul.mubr.msk.f32.gmra.mxu1 %vm421_vm1, %v1751_v11 }
 0x349   :  { %v1752_v19 = vmax.f32 %v1650_v61, 0.0  ;;  %v1665_v21 = vadd.f32 %v2863_v18, %v3618_v16 }
 0x34a   :  { %v1659_v62 = vpop.f32.mrf.mxu0 }
 0x34b   :  { %v1660_v22 = vadd.f32 %v3618_v16, %v1659_v62  ;;  %2922 = vmatprep.mubr.msk.f32.mxu1 %vm421_vm1, %v1752_v19  ;;  %v1755_v63 = vmax.f32 %v1665_v21, 0.0 }
 0x34c   :  { %v2866_v24 = vpop.f32.mrf.mxu0  ;;  %2923 = vmatmul.mubr.msk.f32.gmra.mxu1 %vm421_vm1, %v1753_v20 }
 0x34d   :  { %v1754_v25 = vmax.f32 %v1660_v22, 0.0  ;;  %v1675_v26 = vadd.f32 %v2866_v24, %v3618_v16 }
 0x34e   :  { %v1669_v27 = vpop.f32.mrf.mxu0 }
 0x34f   :  { %v1670_v28 = vadd.f32 %v3618_v16, %v1669_v27  ;;  %2925 = vmatprep.mubr.msk.f32.mxu1 %vm421_vm1, %v1754_v25  ;;  %v1757_v30 = vmax.f32 %v1675_v26, 0.0 }
 0x350   :  { %v2869_v29 = vpop.f32.mrf.mxu0  ;;  %2926 = vmatmul.mubr.msk.f32.gmra.mxu1 %vm421_vm1, %v1755_v63 }
 0x351   :  { %v1756_v3 = vmax.f32 %v1670_v28, 0.0  ;;  %v1685_v31 = vadd.f32 %v2869_v29, %v3618_v16 }
 0x352   :  { %v1679_v33 = vpop.f32.mrf.mxu0 }
 0x353   :  { %v1680_v34 = vadd.f32 %v3618_v16, %v1679_v33  ;;  %2928 = vmatprep.mubr.msk.f32.mxu1 %vm421_vm1, %v1756_v3  ;;  %v1759_v13 = vmax.f32 %v1685_v31, 0.0 }
 0x354   :  { %v2872_v35 = vpop.f32.mrf.mxu0  ;;  %2929 = vmatmul.mubr.msk.f32.gmra.mxu1 %vm421_vm1, %v1757_v30 }
 0x355   :  { %v1758_v36 = vmax.f32 %v1680_v34, 0.0  ;;  %v1695_v37 = vadd.f32 %v2872_v35, %v3618_v16 }
 0x356   :  { %v1689_v23 = vpop.f32.mrf.mxu0 }
 0x357   :  { %v1690_v38 = vadd.f32 %v3618_v16, %v1689_v23  ;;  %2931 = vmatprep.mubr.msk.f32.mxu1 %vm421_vm1, %v1758_v36  ;;  %v1761_v55 = vmax.f32 %v1695_v37, 0.0 }
 0x358   :  { %v2875_v39 = vpop.f32.mrf.mxu0  ;;  %2932 = vmatmul.mubr.msk.f32.gmra.mxu1 %vm421_vm1, %v1759_v13 }
 0x359   :  { %v1760_v40 = vmax.f32 %v1690_v38, 0.0  ;;  %v1705_v32 = vadd.f32 %v2875_v39, %v3618_v16 }
 0x35a   :  { %v1699_v0 = vpop.f32.mrf.mxu0 }
 0x35b   :  { %v1700_v1 = vadd.f32 %v3618_v16, %v1699_v0  ;;  %2934 = vmatprep.mubr.msk.f32.mxu1 %vm421_vm1, %v1760_v40  ;;  %v1763_v5 = vmax.f32 %v1705_v32, 0.0 }
 0x35c   :  { %v2878_v2 = vpop.f32.mrf.mxu0  ;;  %2935 = vmatmul.mubr.msk.f32.gmra.mxu1 %vm421_vm1, %v1761_v55 }
 0x35d   :  { %v1762_v4 = vmax.f32 %v1700_v1, 0.0  ;;  %v1715_v41 = vadd.f32 %v2878_v2, %v3618_v16 }
 0x35e   :  { %v1709_v6 = vpop.f32.mrf.mxu0 }
 0x35f   :  { %v1710_v9 = vadd.f32 %v3618_v16, %v1709_v6  ;;  %2937 = vmatprep.mubr.msk.f32.mxu1 %vm421_vm1, %v1762_v4  ;;  %v1765_v14 = vmax.f32 %v1715_v41, 0.0 }
 0x360   :  { %v2881_v10 = vpop.f32.mrf.mxu0  ;;  %2938 = vmatmul.mubr.msk.f32.gmra.mxu1 %vm421_vm1, %v1763_v5 }
 0x361   :  { %v1764_v12 = vmax.f32 %v1710_v9, 0.0  ;;  %v1725_v42 = vadd.f32 %v2881_v10, %v3618_v16 }
 0x362   :  { %v1719_v7 = vpop.f32.mrf.mxu0 }
 0x363   :  { %v1720_v43 = vadd.f32 %v3618_v16, %v1719_v7  ;;  %2940 = vmatprep.mubr.msk.f32.mxu1 %vm421_vm1, %v1764_v12  ;;  %v1767_v46 = vmax.f32 %v1725_v42, 0.0 }
 0x364   :  { %v2884_v44 = vpop.f32.mrf.mxu0  ;;  %2941 = vmatmul.mubr.msk.f32.gmra.mxu1 %vm421_vm1, %v1765_v14 }
 0x365   :  { %v1766_v45 = vmax.f32 %v1720_v43, 0.0  ;;  %v1735_v47 = vadd.f32 %v2884_v44, %v3618_v16 }
 0x366   :  { %v1729_v48 = vpop.f32.mrf.mxu0 }
 0x367   :  { %v1730_v49 = vadd.f32 %v3618_v16, %v1729_v48  ;;  %2943 = vmatprep.mubr.msk.f32.mxu1 %vm421_vm1, %v1766_v45  ;;  %v1769_v51 = vmax.f32 %v1735_v47, 0.0 }
 0x368   :  { %2944 = vmatmul.mubr.msk.f32.gmra.mxu1 %vm421_vm1, %v1767_v46 }
 0x369   :  { %v1768_v50 = vmax.f32 %v1730_v49, 0.0 }
 0x36b   :  { %2946 = vmatprep.mubr.msk.f32.mxu1 %vm421_vm1, %v1768_v50 }
 0x36c   :  { %2947 = vmatmul.mubr.msk.f32.gmra.mxu1 %vm421_vm1, %v1769_v51 }
 0x3f0   :  { %v2903_v53 = vpop.f32.mrf.mxu1 }
 0x3f1   :  { %v1951_v54 = vadd.f32 %v2903_v53, %v3687_v52 }
 0x3f2   :  { %v1945_v56 = vpop.f32.mrf.mxu1 }
 0x3f3   :  { %2105 = vst [vmem:[%s3819_s2 + $0x8] sm:$0xff] %v1951_v54  ;;  %v1946_v16 = vadd.f32 %v3687_v52, %v1945_v56 }
 0x3f4   :  { %v2906_v57 = vpop.f32.mrf.mxu1 }
 0x3f5   :  { %2104 = vst [vmem:[%s3819_s2] sm:$0xff] %v1946_v16  ;;  %v1961_v58 = vadd.f32 %v2906_v57, %v3687_v52 }
 0x3f6   :  { %v1955_v59 = vpop.f32.mrf.mxu1 }
 0x3f7   :  { %2107 = vst [vmem:[%s3819_s2 + $0x18] sm:$0xff] %v1961_v58  ;;  %v1956_v8 = vadd.f32 %v3687_v52, %v1955_v59 }
 0x3f8   :  { %v2909_v60 = vpop.f32.mrf.mxu1 }
 0x3f9   :  { %2106 = vst [vmem:[%s3819_s2 + $0x10] sm:$0xff] %v1956_v8  ;;  %v1971_v11 = vadd.f32 %v2909_v60, %v3687_v52 }
 0x3fa   :  { %v1965_v15 = vpop.f32.mrf.mxu1 }
 0x3fb   :  { %2109 = vst [vmem:[%s3819_s2 + $0x28] sm:$0xff] %v1971_v11  ;;  %v1966_v17 = vadd.f32 %v3687_v52, %v1965_v15 }
 0x3fc   :  { %v2912_v61 = vpop.f32.mrf.mxu1 }
 0x3fd   :  { %2108 = vst [vmem:[%s3819_s2 + $0x20] sm:$0xff] %v1966_v17  ;;  %v1981_v18 = vadd.f32 %v2912_v61, %v3687_v52 }
 0x3fe   :  { %v1975_v19 = vpop.f32.mrf.mxu1 }
 0x3ff   :  { %2111 = vst [vmem:[%s3819_s2 + $0x38] sm:$0xff] %v1981_v18  ;;  %v1976_v20 = vadd.f32 %v3687_v52, %v1975_v19 }
 0x400   :  { %v2915_v21 = vpop.f32.mrf.mxu1 }
 0x401   :  { %2110 = vst [vmem:[%s3819_s2 + $0x30] sm:$0xff] %v1976_v20  ;;  %v1991_v62 = vadd.f32 %v2915_v21, %v3687_v52 }
 0x402   :  { %v1985_v22 = vpop.f32.mrf.mxu1 }
 0x403   :  { %2113 = vst [vmem:[%s3819_s2 + $0x48] sm:$0xff] %v1991_v62  ;;  %v1986_v24 = vadd.f32 %v3687_v52, %v1985_v22 }
 0x404   :  { %v2918_v25 = vpop.f32.mrf.mxu1 }
 0x405   :  { %2112 = vst [vmem:[%s3819_s2 + $0x40] sm:$0xff] %v1986_v24  ;;  %v2001_v63 = vadd.f32 %v2918_v25, %v3687_v52 }
 0x406   :  { %v1995_v26 = vpop.f32.mrf.mxu1 }
 0x407   :  { %2115 = vst [vmem:[%s3819_s2 + $0x58] sm:$0xff] %v2001_v63  ;;  %v1996_v27 = vadd.f32 %v3687_v52, %v1995_v26 }
 0x408   :  { %v2921_v28 = vpop.f32.mrf.mxu1 }
 0x409   :  { %2114 = vst [vmem:[%s3819_s2 + $0x50] sm:$0xff] %v1996_v27  ;;  %v2011_v29 = vadd.f32 %v2921_v28, %v3687_v52 }
 0x40a   :  { %v2005_v3 = vpop.f32.mrf.mxu1 }
 0x40b   :  { %2117 = vst [vmem:[%s3819_s2 + $0x68] sm:$0xff] %v2011_v29  ;;  %v2006_v30 = vadd.f32 %v3687_v52, %v2005_v3 }
 0x40c   :  { %v2924_v31 = vpop.f32.mrf.mxu1 }
 0x40d   :  { %2116 = vst [vmem:[%s3819_s2 + $0x60] sm:$0xff] %v2006_v30  ;;  %v2021_v33 = vadd.f32 %v2924_v31, %v3687_v52 }
 0x40e   :  { %v2015_v34 = vpop.f32.mrf.mxu1 }
 0x40f   :  { %2119 = vst [vmem:[%s3819_s2 + $0x78] sm:$0xff] %v2021_v33  ;;  %v2016_v35 = vadd.f32 %v3687_v52, %v2015_v34 }
 0x410   :  { %v2927_v36 = vpop.f32.mrf.mxu1 }
 0x411   :  { %2118 = vst [vmem:[%s3819_s2 + $0x70] sm:$0xff] %v2016_v35  ;;  %v2031_v13 = vadd.f32 %v2927_v36, %v3687_v52 }
 0x412   :  { %v2025_v37 = vpop.f32.mrf.mxu1 }
 0x413   :  { %2121 = vst [vmem:[%s3819_s2 + $0x88] sm:$0xff] %v2031_v13  ;;  %v2026_v23 = vadd.f32 %v3687_v52, %v2025_v37 }
 0x414   :  { %v2930_v38 = vpop.f32.mrf.mxu1 }
 0x415   :  { %2120 = vst [vmem:[%s3819_s2 + $0x80] sm:$0xff] %v2026_v23  ;;  %v2041_v39 = vadd.f32 %v2930_v38, %v3687_v52 }
 0x416   :  { %v2035_v40 = vpop.f32.mrf.mxu1 }
 0x417   :  { %2123 = vst [vmem:[%s3819_s2 + $0x98] sm:$0xff] %v2041_v39  ;;  %v2036_v55 = vadd.f32 %v3687_v52, %v2035_v40 }
 0x418   :  { %v2933_v32 = vpop.f32.mrf.mxu1 }
 0x419   :  { %2122 = vst [vmem:[%s3819_s2 + $0x90] sm:$0xff] %v2036_v55  ;;  %v2051_v0 = vadd.f32 %v2933_v32, %v3687_v52 }
 0x41a   :  { %v2045_v1 = vpop.f32.mrf.mxu1 }
 0x41b   :  { %2125 = vst [vmem:[%s3819_s2 + $0xa8] sm:$0xff] %v2051_v0  ;;  %v2046_v2 = vadd.f32 %v3687_v52, %v2045_v1 }
 0x41c   :  { %v2936_v4 = vpop.f32.mrf.mxu1 }
 0x41d   :  { %2124 = vst [vmem:[%s3819_s2 + $0xa0] sm:$0xff] %v2046_v2  ;;  %v2061_v5 = vadd.f32 %v2936_v4, %v3687_v52 }
 0x41e   :  { %v2055_v41 = vpop.f32.mrf.mxu1 }
 0x41f   :  { %2127 = vst [vmem:[%s3819_s2 + $0xb8] sm:$0xff] %v2061_v5  ;;  %v2056_v6 = vadd.f32 %v3687_v52, %v2055_v41 }
 0x420   :  { %v2939_v9 = vpop.f32.mrf.mxu1 }
 0x421   :  { %2126 = vst [vmem:[%s3819_s2 + $0xb0] sm:$0xff] %v2056_v6  ;;  %v2071_v10 = vadd.f32 %v2939_v9, %v3687_v52 }
 0x422   :  { %v2065_v12 = vpop.f32.mrf.mxu1 }
 0x423   :  { %2129 = vst [vmem:[%s3819_s2 + $0xc8] sm:$0xff] %v2071_v10  ;;  %v2066_v14 = vadd.f32 %v3687_v52, %v2065_v12 }
 0x424   :  { %v2942_v42 = vpop.f32.mrf.mxu1 }
 0x425   :  { %2128 = vst [vmem:[%s3819_s2 + $0xc0] sm:$0xff] %v2066_v14  ;;  %v2081_v7 = vadd.f32 %v2942_v42, %v3687_v52 }
 0x426   :  { %v2075_v43 = vpop.f32.mrf.mxu1 }
 0x427   :  { %2131 = vst [vmem:[%s3819_s2 + $0xd8] sm:$0xff] %v2081_v7  ;;  %v2076_v44 = vadd.f32 %v3687_v52, %v2075_v43 }
 0x428   :  { %v2945_v45 = vpop.f32.mrf.mxu1 }
 0x429   :  { %2130 = vst [vmem:[%s3819_s2 + $0xd0] sm:$0xff] %v2076_v44  ;;  %v2091_v46 = vadd.f32 %v2945_v45, %v3687_v52 }
 0x42a   :  { %v2085_v47 = vpop.f32.mrf.mxu1 }
 0x42b   :  { %2133 = vst [vmem:[%s3819_s2 + $0xe8] sm:$0xff] %v2091_v46  ;;  %v2086_v48 = vadd.f32 %v3687_v52, %v2085_v47 }
 0x42c   :  { %v2948_v49 = vpop.f32.mrf.mxu1 }
 0x42d   :  { %2132 = vst [vmem:[%s3819_s2 + $0xe0] sm:$0xff] %v2086_v48  ;;  %v2101_v50 = vadd.f32 %v2948_v49, %v3687_v52 }
 0x42e   :  { %v2095_v51 = vpop.f32.mrf.mxu1 }
 0x42f   :  { %2135 = vst [vmem:[%s3819_s2 + $0xf8] sm:$0xff] %v2101_v50  ;;  %v2096_v53 = vadd.f32 %v3687_v52, %v2095_v51 }
 0x431   :  { %2134 = vst [vmem:[%s3819_s2 + $0xf0] sm:$0xff] %v2096_v53 }

</bundles_post_ra>
